<compile_context>
chip_gen: v7x
topology: tpu7x:2x2x1
jax: 0.10.0
libtpu: 0.0.40
codegen_flags: <defaults>
</compile_context>

<pallas_src>
import functools

import jax
import jax.numpy as jnp
from jax.experimental import pallas as pl
from jax.experimental.pallas import tpu as pltpu


def _sigmoid(x):
    # hand-rolled sigmoid: exp (EUP) + divide, guaranteed clean Mosaic lowering
    return 1.0 / (1.0 + jnp.exp(-x))


# -----------------------------------------------------------------------------
# Fused forward kernel (one batch block of size Bb per grid step)
#   ids_ref  : (1, Tt+Tc, Bb) int32, time-major token ids (target rows then claim)
#   emb_ref  : (V, E) embedding table (row 0 = padding, zeros)
#   *_wih    : (2, E, 3H)  [direction][r|z|n fused on lanes] input->hidden weights
#   *_whh    : (2, H, 3H)  hidden->hidden weights
#   *_bih/bhh: (2, 1, 3H)  biases
#   wt, wc   : (2, H, 2H)  t_linear / c_linear weights split into fwd/bwd input halves
#   wa       : (1, 2H), ba: (1, 1)   attn_linear
#   wl       : (2, H, O),  bl: (1, O) output linear (fwd/bwd input halves)
#   out_ref  : (1, Bb, O)
#   cf_ref/cb_ref : (Tc, Bb, H) VMEM scratch for claim fwd/bwd hidden states
# -----------------------------------------------------------------------------
def model_kernel(ids_ref, emb_ref,
                 t_wih_ref, t_whh_ref, t_bih_ref, t_bhh_ref,
                 c_wih_ref, c_whh_ref, c_bih_ref, c_bhh_ref,
                 wt_ref, bt_ref, wc_ref, bc_ref, wa_ref, ba_ref, wl_ref, bl_ref,
                 out_ref, cf_ref, cb_ref, *, Bb, Tt, Tc):
    f32 = jnp.float32
    V, E = emb_ref.shape
    H = t_whh_ref.shape[1]                     # whh: (2, H, 3H)
    Ttot = Tt + Tc

    # ---- fused one-hot embedding lookup (target + claim in ONE matmul) ----
    # TODO(synk): at realistic vocab sizes replace the one-hot matmul with a
    # scalar-prefetched DMA row gather from HBM (emb in pl.ANY) to fit v7x VMEM.
    ids = ids_ref[...].reshape(Ttot * Bb, 1)                        # row = t*Bb + b
    iota = jax.lax.broadcasted_iota(jnp.int32, (Ttot * Bb, V), 1)
    onehot = (ids == iota).astype(f32)
    x_all = jnp.dot(onehot, emb_ref[...], preferred_element_type=f32)   # (rows, E)
    xt = x_all[:Tt * Bb]                                            # (Tt*Bb, E) t-major
    xc = x_all[Tt * Bb:]                                            # (Tc*Bb, E) t-major

    # ---- hoisted fused-gate input projections (one matmul per direction) ----
    # TODO(synk): for large T, spill gi_* to VMEM scratch + lax.fori_loop to keep
    # vreg pressure flat instead of the fully unrolled Python loop.
    def input_proj(x, T, wih_ref, bih_ref, d):
        gi = jnp.dot(x, wih_ref[d], preferred_element_type=f32) + bih_ref[d]  # (T*Bb, 3H)
        gi_r = gi[:, :H].reshape(T, Bb, H)
        gi_z = gi[:, H:2 * H].reshape(T, Bb, H)
        gi_n = gi[:, 2 * H:].reshape(T, Bb, H)
        return gi_r, gi_z, gi_n

    gi_cf = input_proj(xc, Tc, c_wih_ref, c_bih_ref, 0)
    gi_cb = input_proj(xc, Tc, c_wih_ref, c_bih_ref, 1)
    gi_tf = input_proj(xt, Tt, t_wih_ref, t_bih_ref, 0)

    whh_cf, bhh_cf = c_whh_ref[0], c_bhh_ref[0]
    whh_cb, bhh_cb = c_whh_ref[1], c_bhh_ref[1]
    whh_tf, bhh_tf = t_whh_ref[0], t_bhh_ref[0]

    # one fused-gate GRU cell step; h is None at t==0 (h == 0 -> skip h @ W_hh)
    def gru_step(h, gi_r, gi_z, gi_n, whh, bhh):
        if h is None:
            gh = bhh                                                # (1, 3H)
        else:
            gh = jnp.dot(h, whh, preferred_element_type=f32) + bhh  # (Bb, 3H)
        r = _sigmoid(gi_r + gh[:, :H])
        z = _sigmoid(gi_z + gh[:, H:2 * H])
        n = jnp.tanh(gi_n + r * gh[:, 2 * H:])
        h_new = (1.0 - z) * n
        if h is not None:
            h_new = h_new + z * h
        return h_new

    # ---- target backward direction: output[:, -1] needs only ONE backward step ----
    xt_last = xt[(Tt - 1) * Bb: Tt * Bb]                            # (Bb, E)
    gi_tb = jnp.dot(xt_last, t_wih_ref[1], preferred_element_type=f32) + t_bih_ref[1]
    h_tb = gru_step(None, gi_tb[:, :H], gi_tb[:, H:2 * H], gi_tb[:, 2 * H:],
                    t_whh_ref[1], t_bhh_ref[1])

    # ---- interleaved serial recurrences: claim-fwd / claim-bwd / target-fwd ----
    h_cf = h_cb = h_tf = None
    for step in range(max(Tt, Tc)):                                 # static -> unrolled
        if step < Tc:
            tb_t = Tc - 1 - step
            h_cf = gru_step(h_cf, gi_cf[0][step], gi_cf[1][step], gi_cf[2][step],
                            whh_cf, bhh_cf)
            h_cb = gru_step(h_cb, gi_cb[0][tb_t], gi_cb[1][tb_t], gi_cb[2][tb_t],
                            whh_cb, bhh_cb)
        if step < Tt:
            h_tf = gru_step(h_tf, gi_tf[0][step], gi_tf[1][step], gi_tf[2][step],
                            whh_tf, bhh_tf)
        if step < Tc:
            cf_ref[step] = h_cf                                     # leading-dim store
            cb_ref[Tc - 1 - step] = h_cb

    claim_f = cf_ref[...]                                           # (Tc, Bb, H)
    claim_b = cb_ref[...]

    # ---- additive attention (fwd/bwd halves kept split: no lane-dim concat) ----
    t_proj = (jnp.dot(h_tf, wt_ref[0], preferred_element_type=f32)
              + jnp.dot(h_tb, wt_ref[1], preferred_element_type=f32)
              + bt_ref[...])                                        # (Bb, 2H)
    c_proj = (jnp.dot(claim_f.reshape(Tc * Bb, H), wc_ref[0], preferred_element_type=f32)
              + jnp.dot(claim_b.reshape(Tc * Bb, H), wc_ref[1], preferred_element_type=f32)
              + bc_ref[...]).reshape(Tc, Bb, 2 * H)                 # (Tc, Bb, 2H)

    e = jnp.tanh(t_proj[None, :, :] + c_proj)                       # (Tc, Bb, 2H)
    w = jnp.sum(e * wa_ref[...], axis=2, keepdims=True) + ba_ref[...]    # (Tc, Bb, 1)

    # softmax over claim timesteps (axis 0), numerically stable, EUP reciprocal
    m = jnp.max(w, axis=0, keepdims=True)
    ew = jnp.exp(w - m)
    wn = ew * pl.reciprocal(jnp.sum(ew, axis=0, keepdims=True), approx=True)

    # weighted pooling: VPU broadcast-multiply + leading-axis reduce
    r_f = jnp.sum(wn * claim_f, axis=0)                             # (Bb, H)
    r_b = jnp.sum(wn * claim_b, axis=0)                             # (Bb, H)

    out = (jnp.dot(r_f, wl_ref[0], preferred_element_type=f32)
           + jnp.dot(r_b, wl_ref[1], preferred_element_type=f32)
           + bl_ref[...])                                           # (Bb, O)
    out_ref[...] = out.reshape(1, Bb, out.shape[-1])


# -----------------------------------------------------------------------------
# Wrapper: one pallas_call, batch-parallel grid
# -----------------------------------------------------------------------------
@jax.jit
def base_model_forward(params, batch_target, batch_claim):
    B, Tt = batch_target.shape
    _, Tc = batch_claim.shape
    H = params['tgt'][1].shape[1]          # whh: (2, H, 3H)
    O = params['head'][6].shape[-1]        # wl : (2, H, O)
    Ttot = Tt + Tc

    # split the batch across grid steps so both v7x TensorCores get work
    # ("parallel"); on 1-TC chips this is just a 2-iteration serial loop.
    n_blocks = 2 if (B % 2 == 0) else 1
    Bb = B // n_blocks

    # time-major, batch-blocked id layout: ids_blk[blk, t, j] = ids[blk*Bb + j, t]
    ids = jnp.concatenate([batch_target, batch_claim], axis=1).astype(jnp.int32)  # (B, Ttot)
    ids_blk = ids.T.reshape(Ttot, n_blocks, Bb).transpose(1, 0, 2)                # (nb, Ttot, Bb)

    args = (ids_blk, params['emb'], *params['tgt'], *params['clm'], *params['head'])

    def full_block(a):
        return pl.BlockSpec(a.shape, lambda i, n=a.ndim: (0,) * n)

    in_specs = [pl.BlockSpec((1, Ttot, Bb), lambda i: (i, 0, 0))]
    in_specs += [full_block(a) for a in args[1:]]

    kernel = functools.partial(model_kernel, Bb=Bb, Tt=Tt, Tc=Tc)

    # TODO(synk): for production sizes (large V/T/H), store emb + matmul weights in
    # bf16 (f32 accumulation), tile the claim sequence, and budget VMEM for v7x's
    # 64 MiB instead of holding everything whole in VMEM.
    out3 = pl.pallas_call(
        kernel,
        grid=(n_blocks,),
        out_shape=jax.ShapeDtypeStruct((n_blocks, Bb, O), jnp.float32),
        in_specs=in_specs,
        out_specs=pl.BlockSpec((1, Bb, O), lambda i: (i, 0, 0)),
        scratch_shapes=[pltpu.VMEM((Tc, Bb, H), jnp.float32),   # claim fwd states
                        pltpu.VMEM((Tc, Bb, H), jnp.float32)],  # claim bwd states
        compiler_params=pltpu.CompilerParams(
            dimension_semantics=("parallel",),
            vmem_limit_bytes=32 * 1024 * 1024),
    )(*args)
    return out3.reshape(B, O)


# -----------------------------------------------------------------------------
# Parameter init (deterministic, synthetic) in the kernel's fused-gate layouts
# -----------------------------------------------------------------------------
def init_params(key, V, E, H, O):
    D = 2 * H
    key_box = [key]

    def nk():
        key_box[0], sub = jax.random.split(key_box[0])
        return sub

    def u(shape, scale):
        return jax.random.uniform(nk(), shape, jnp.float32, -scale, scale)

    emb = jax.random.normal(nk(), (V, E), jnp.float32) * 0.1
    emb = emb.at[0].set(0.0)            # padding_idx = 0

    s = 1.0 / (H ** 0.5)

    def gru_params():
        # [direction (fwd, bwd)] with gates (r, z, n) fused along the last dim
        wih = u((2, E, 3 * H), s)
        whh = u((2, H, 3 * H), s)
        bih = u((2, 1, 3 * H), s)
        bhh = u((2, 1, 3 * H), s)
        return (wih, whh, bih, bhh)

    tgt = gru_params()
    clm = gru_params()

    sl = 1.0 / (D ** 0.5)
    wt, bt = u((2, H, D), sl), u((1, D), sl)      # t_linear (input split fwd/bwd)
    wc, bc = u((2, H, D), sl), u((1, D), sl)      # c_linear
    wa, ba = u((1, D), sl), u((1, 1), sl)         # attn_linear
    wl, bl = u((2, H, O), sl), u((1, O), sl)      # output linear

    return dict(emb=emb, tgt=tgt, clm=clm,
                head=(wt, bt, wc, bc, wa, ba, wl, bl))


if __name__ == "__main__":
    B, Tt, Tc = 2, 8, 8
    V, E, H, O = 50, 32, 32, 4     # num_embeddings, embedding_dim, hidden_dim, output_dim

    root = jax.random.PRNGKey(0)
    k_params, k1, k2 = jax.random.split(root, 3)

    params = init_params(k_params, V, E, H, O)
    batch_target = jax.random.randint(k1, (B, Tt), 1, V, dtype=jnp.int32)
    batch_claim = jax.random.randint(k2, (B, Tc), 1, V, dtype=jnp.int32)

    out = base_model_forward(params, batch_target, batch_claim)
    out = jax.block_until_ready(out)
    assert out.shape == (B, O) and out.dtype == jnp.float32
    print("KERNEL_OK")
</pallas_src>

<mosaic_0001>
module attributes {stable_mosaic.version = 11 : i64} {
  func.func @model_kernel(%arg0: i32, %arg1: memref<1x16x1xi32, #tpu.memory_space<vmem>>, %arg2: memref<50x32xf32, #tpu.memory_space<vmem>>, %arg3: memref<2x32x96xf32, #tpu.memory_space<vmem>>, %arg4: memref<2x32x96xf32, #tpu.memory_space<vmem>>, %arg5: memref<2x1x96xf32, #tpu.memory_space<vmem>>, %arg6: memref<2x1x96xf32, #tpu.memory_space<vmem>>, %arg7: memref<2x32x96xf32, #tpu.memory_space<vmem>>, %arg8: memref<2x32x96xf32, #tpu.memory_space<vmem>>, %arg9: memref<2x1x96xf32, #tpu.memory_space<vmem>>, %arg10: memref<2x1x96xf32, #tpu.memory_space<vmem>>, %arg11: memref<2x32x64xf32, #tpu.memory_space<vmem>>, %arg12: memref<1x64xf32, #tpu.memory_space<vmem>>, %arg13: memref<2x32x64xf32, #tpu.memory_space<vmem>>, %arg14: memref<1x64xf32, #tpu.memory_space<vmem>>, %arg15: memref<1x64xf32, #tpu.memory_space<vmem>>, %arg16: memref<1x1xf32, #tpu.memory_space<vmem>>, %arg17: memref<2x32x4xf32, #tpu.memory_space<vmem>>, %arg18: memref<1x4xf32, #tpu.memory_space<vmem>>, %arg19: memref<1x1x4xf32, #tpu.memory_space<vmem>>, %arg20: memref<8x1x32xf32, #tpu.memory_space<vmem>>, %arg21: memref<8x1x32xf32, #tpu.memory_space<vmem>>) attributes {dimension_semantics = [#tpu.dimension_semantics<parallel>], iteration_bounds = array<i64: 2>, scalar_prefetch = 0 : i64, scratch_operands = 2 : i64, tpu.core_type = #tpu.core_type<tc>, window_params = [{transform_indices = @transform_0, window_bounds = array<i64: 1, 16, 1>}, {pipeline_mode = #tpu.pipeline_mode<synchronous>, transform_indices = @transform_1, window_bounds = array<i64: 50, 32>}, {pipeline_mode = #tpu.pipeline_mode<synchronous>, transform_indices = @transform_2, window_bounds = array<i64: 2, 32, 96>}, {pipeline_mode = #tpu.pipeline_mode<synchronous>, transform_indices = @transform_3, window_bounds = array<i64: 2, 32, 96>}, {pipeline_mode = #tpu.pipeline_mode<synchronous>, transform_indices = @transform_4, window_bounds = array<i64: 2, 1, 96>}, {pipeline_mode = #tpu.pipeline_mode<synchronous>, transform_indices = @transform_5, window_bounds = array<i64: 2, 1, 96>}, {pipeline_mode = #tpu.pipeline_mode<synchronous>, transform_indices = @transform_6, window_bounds = array<i64: 2, 32, 96>}, {pipeline_mode = #tpu.pipeline_mode<synchronous>, transform_indices = @transform_7, window_bounds = array<i64: 2, 32, 96>}, {pipeline_mode = #tpu.pipeline_mode<synchronous>, transform_indices = @transform_8, window_bounds = array<i64: 2, 1, 96>}, {pipeline_mode = #tpu.pipeline_mode<synchronous>, transform_indices = @transform_9, window_bounds = array<i64: 2, 1, 96>}, {pipeline_mode = #tpu.pipeline_mode<synchronous>, transform_indices = @transform_10, window_bounds = array<i64: 2, 32, 64>}, {pipeline_mode = #tpu.pipeline_mode<synchronous>, transform_indices = @transform_11, window_bounds = array<i64: 1, 64>}, {pipeline_mode = #tpu.pipeline_mode<synchronous>, transform_indices = @transform_12, window_bounds = array<i64: 2, 32, 64>}, {pipeline_mode = #tpu.pipeline_mode<synchronous>, transform_indices = @transform_13, window_bounds = array<i64: 1, 64>}, {pipeline_mode = #tpu.pipeline_mode<synchronous>, transform_indices = @transform_14, window_bounds = array<i64: 1, 64>}, {pipeline_mode = #tpu.pipeline_mode<synchronous>, transform_indices = @transform_15, window_bounds = array<i64: 1, 1>}, {pipeline_mode = #tpu.pipeline_mode<synchronous>, transform_indices = @transform_16, window_bounds = array<i64: 2, 32, 4>}, {pipeline_mode = #tpu.pipeline_mode<synchronous>, transform_indices = @transform_17, window_bounds = array<i64: 1, 4>}, {transform_indices = @transform_18, window_bounds = array<i64: 1, 1, 4>}]} {
    %c0 = arith.constant 0 : index
    %c0_0 = arith.constant 0 : index
    %c0_1 = arith.constant 0 : index
    %0 = vector.load %arg1[%c0, %c0_0, %c0_1] : memref<1x16x1xi32, #tpu.memory_space<vmem>>, vector<1x16x1xi32>
    %1 = vector.shape_cast %0 : vector<1x16x1xi32> to vector<16x1xi32>
    %2 = tpu.iota {dimensions = array<i32: 1>} : vector<16x50xi32>
    %3 = vector.broadcast %1 : vector<16x1xi32> to vector<16x50xi32>
    %4 = arith.cmpi eq, %3, %2 : vector<16x50xi32>
    %5 = arith.extui %4 : vector<16x50xi1> to vector<16x50xi32>
    %6 = arith.sitofp %5 : vector<16x50xi32> to vector<16x50xf32>
    %c0_2 = arith.constant 0 : index
    %c0_3 = arith.constant 0 : index
    %7 = vector.load %arg2[%c0_2, %c0_3] : memref<50x32xf32, #tpu.memory_space<vmem>>, vector<50x32xf32>
    %cst = arith.constant dense<0.000000e+00> : vector<16x32xf32>
    %8 = tpu.matmul %6, %7, %cst {dimension_numbers = #tpu.dot_dimension_numbers<[1], [0], [0], [1], [0, 0, 1, 1], [], []>} : vector<16x50xf32>, vector<50x32xf32>, vector<16x32xf32> -> vector<16x32xf32>
    %9 = vector.extract_strided_slice %8 {offsets = [0, 0], sizes = [8, 32], strides = [1, 1]} : vector<16x32xf32> to vector<8x32xf32>
    %10 = vector.extract_strided_slice %8 {offsets = [8, 0], sizes = [8, 32], strides = [1, 1]} : vector<16x32xf32> to vector<8x32xf32>
    %c0_4 = arith.constant 0 : index
    %c0_5 = arith.constant 0 : index
    %c0_6 = arith.constant 0 : index
    %11 = vector.load %arg7[%c0_4, %c0_5, %c0_6] : memref<2x32x96xf32, #tpu.memory_space<vmem>>, vector<1x32x96xf32>
    %12 = vector.shape_cast %11 : vector<1x32x96xf32> to vector<32x96xf32>
    %cst_7 = arith.constant dense<0.000000e+00> : vector<8x96xf32>
    %13 = tpu.matmul %10, %12, %cst_7 {dimension_numbers = #tpu.dot_dimension_numbers<[1], [0], [0], [1], [0, 0, 1, 1], [], []>} : vector<8x32xf32>, vector<32x96xf32>, vector<8x96xf32> -> vector<8x96xf32>
    %c0_8 = arith.constant 0 : index
    %c0_9 = arith.constant 0 : index
    %c0_10 = arith.constant 0 : index
    %14 = vector.load %arg9[%c0_8, %c0_9, %c0_10] : memref<2x1x96xf32, #tpu.memory_space<vmem>>, vector<1x1x96xf32>
    %15 = vector.shape_cast %14 : vector<1x1x96xf32> to vector<1x96xf32>
    %16 = vector.broadcast %15 : vector<1x96xf32> to vector<8x96xf32>
    %17 = arith.addf %13, %16 : vector<8x96xf32>
    %18 = vector.extract_strided_slice %17 {offsets = [0, 0], sizes = [8, 32], strides = [1, 1]} : vector<8x96xf32> to vector<8x32xf32>
    %19 = vector.shape_cast %18 : vector<8x32xf32> to vector<8x1x32xf32>
    %20 = vector.extract_strided_slice %17 {offsets = [0, 32], sizes = [8, 32], strides = [1, 1]} : vector<8x96xf32> to vector<8x32xf32>
    %21 = vector.shape_cast %20 : vector<8x32xf32> to vector<8x1x32xf32>
    %22 = vector.extract_strided_slice %17 {offsets = [0, 64], sizes = [8, 32], strides = [1, 1]} : vector<8x96xf32> to vector<8x32xf32>
    %23 = vector.shape_cast %22 : vector<8x32xf32> to vector<8x1x32xf32>
    %c1 = arith.constant 1 : index
    %c0_11 = arith.constant 0 : index
    %c0_12 = arith.constant 0 : index
    %24 = vector.load %arg7[%c1, %c0_11, %c0_12] : memref<2x32x96xf32, #tpu.memory_space<vmem>>, vector<1x32x96xf32>
    %25 = vector.shape_cast %24 : vector<1x32x96xf32> to vector<32x96xf32>
    %cst_13 = arith.constant dense<0.000000e+00> : vector<8x96xf32>
    %26 = tpu.matmul %10, %25, %cst_13 {dimension_numbers = #tpu.dot_dimension_numbers<[1], [0], [0], [1], [0, 0, 1, 1], [], []>} : vector<8x32xf32>, vector<32x96xf32>, vector<8x96xf32> -> vector<8x96xf32>
    %c1_14 = arith.constant 1 : index
    %c0_15 = arith.constant 0 : index
    %c0_16 = arith.constant 0 : index
    %27 = vector.load %arg9[%c1_14, %c0_15, %c0_16] : memref<2x1x96xf32, #tpu.memory_space<vmem>>, vector<1x1x96xf32>
    %28 = vector.shape_cast %27 : vector<1x1x96xf32> to vector<1x96xf32>
    %29 = vector.broadcast %28 : vector<1x96xf32> to vector<8x96xf32>
    %30 = arith.addf %26, %29 : vector<8x96xf32>
    %31 = vector.extract_strided_slice %30 {offsets = [0, 0], sizes = [8, 32], strides = [1, 1]} : vector<8x96xf32> to vector<8x32xf32>
    %32 = vector.shape_cast %31 : vector<8x32xf32> to vector<8x1x32xf32>
    %33 = vector.extract_strided_slice %30 {offsets = [0, 32], sizes = [8, 32], strides = [1, 1]} : vector<8x96xf32> to vector<8x32xf32>
    %34 = vector.shape_cast %33 : vector<8x32xf32> to vector<8x1x32xf32>
    %35 = vector.extract_strided_slice %30 {offsets = [0, 64], sizes = [8, 32], strides = [1, 1]} : vector<8x96xf32> to vector<8x32xf32>
    %36 = vector.shape_cast %35 : vector<8x32xf32> to vector<8x1x32xf32>
    %c0_17 = arith.constant 0 : index
    %c0_18 = arith.constant 0 : index
    %c0_19 = arith.constant 0 : index
    %37 = vector.load %arg3[%c0_17, %c0_18, %c0_19] : memref<2x32x96xf32, #tpu.memory_space<vmem>>, vector<1x32x96xf32>
    %38 = vector.shape_cast %37 : vector<1x32x96xf32> to vector<32x96xf32>
    %cst_20 = arith.constant dense<0.000000e+00> : vector<8x96xf32>
    %39 = tpu.matmul %9, %38, %cst_20 {dimension_numbers = #tpu.dot_dimension_numbers<[1], [0], [0], [1], [0, 0, 1, 1], [], []>} : vector<8x32xf32>, vector<32x96xf32>, vector<8x96xf32> -> vector<8x96xf32>
    %c0_21 = arith.constant 0 : index
    %c0_22 = arith.constant 0 : index
    %c0_23 = arith.constant 0 : index
    %40 = vector.load %arg5[%c0_21, %c0_22, %c0_23] : memref<2x1x96xf32, #tpu.memory_space<vmem>>, vector<1x1x96xf32>
    %41 = vector.shape_cast %40 : vector<1x1x96xf32> to vector<1x96xf32>
    %42 = vector.broadcast %41 : vector<1x96xf32> to vector<8x96xf32>
    %43 = arith.addf %39, %42 : vector<8x96xf32>
    %44 = vector.extract_strided_slice %43 {offsets = [0, 0], sizes = [8, 32], strides = [1, 1]} : vector<8x96xf32> to vector<8x32xf32>
    %45 = vector.shape_cast %44 : vector<8x32xf32> to vector<8x1x32xf32>
    %46 = vector.extract_strided_slice %43 {offsets = [0, 32], sizes = [8, 32], strides = [1, 1]} : vector<8x96xf32> to vector<8x32xf32>
    %47 = vector.shape_cast %46 : vector<8x32xf32> to vector<8x1x32xf32>
    %48 = vector.extract_strided_slice %43 {offsets = [0, 64], sizes = [8, 32], strides = [1, 1]} : vector<8x96xf32> to vector<8x32xf32>
    %49 = vector.shape_cast %48 : vector<8x32xf32> to vector<8x1x32xf32>
    %c0_24 = arith.constant 0 : index
    %c0_25 = arith.constant 0 : index
    %c0_26 = arith.constant 0 : index
    %50 = vector.load %arg8[%c0_24, %c0_25, %c0_26] : memref<2x32x96xf32, #tpu.memory_space<vmem>>, vector<1x32x96xf32>
    %51 = vector.shape_cast %50 : vector<1x32x96xf32> to vector<32x96xf32>
    %c0_27 = arith.constant 0 : index
    %c0_28 = arith.constant 0 : index
    %c0_29 = arith.constant 0 : index
    %52 = vector.load %arg10[%c0_27, %c0_28, %c0_29] : memref<2x1x96xf32, #tpu.memory_space<vmem>>, vector<1x1x96xf32>
    %53 = vector.shape_cast %52 : vector<1x1x96xf32> to vector<1x96xf32>
    %c1_30 = arith.constant 1 : index
    %c0_31 = arith.constant 0 : index
    %c0_32 = arith.constant 0 : index
    %54 = vector.load %arg8[%c1_30, %c0_31, %c0_32] : memref<2x32x96xf32, #tpu.memory_space<vmem>>, vector<1x32x96xf32>
    %55 = vector.shape_cast %54 : vector<1x32x96xf32> to vector<32x96xf32>
    %c1_33 = arith.constant 1 : index
    %c0_34 = arith.constant 0 : index
    %c0_35 = arith.constant 0 : index
    %56 = vector.load %arg10[%c1_33, %c0_34, %c0_35] : memref<2x1x96xf32, #tpu.memory_space<vmem>>, vector<1x1x96xf32>
    %57 = vector.shape_cast %56 : vector<1x1x96xf32> to vector<1x96xf32>
    %c0_36 = arith.constant 0 : index
    %c0_37 = arith.constant 0 : index
    %c0_38 = arith.constant 0 : index
    %58 = vector.load %arg4[%c0_36, %c0_37, %c0_38] : memref<2x32x96xf32, #tpu.memory_space<vmem>>, vector<1x32x96xf32>
    %59 = vector.shape_cast %58 : vector<1x32x96xf32> to vector<32x96xf32>
    %c0_39 = arith.constant 0 : index
    %c0_40 = arith.constant 0 : index
    %c0_41 = arith.constant 0 : index
    %60 = vector.load %arg6[%c0_39, %c0_40, %c0_41] : memref<2x1x96xf32, #tpu.memory_space<vmem>>, vector<1x1x96xf32>
    %61 = vector.shape_cast %60 : vector<1x1x96xf32> to vector<1x96xf32>
    %62 = vector.extract_strided_slice %9 {offsets = [7, 0], sizes = [1, 32], strides = [1, 1]} : vector<8x32xf32> to vector<1x32xf32>
    %c1_42 = arith.constant 1 : index
    %c0_43 = arith.constant 0 : index
    %c0_44 = arith.constant 0 : index
    %63 = vector.load %arg3[%c1_42, %c0_43, %c0_44] : memref<2x32x96xf32, #tpu.memory_space<vmem>>, vector<1x32x96xf32>
    %64 = vector.shape_cast %63 : vector<1x32x96xf32> to vector<32x96xf32>
    %cst_45 = arith.constant dense<0.000000e+00> : vector<1x96xf32>
    %65 = tpu.matmul %62, %64, %cst_45 {dimension_numbers = #tpu.dot_dimension_numbers<[1], [0], [0], [1], [0, 0, 1, 1], [], []>} : vector<1x32xf32>, vector<32x96xf32>, vector<1x96xf32> -> vector<1x96xf32>
    %c1_46 = arith.constant 1 : index
    %c0_47 = arith.constant 0 : index
    %c0_48 = arith.constant 0 : index
    %66 = vector.load %arg5[%c1_46, %c0_47, %c0_48] : memref<2x1x96xf32, #tpu.memory_space<vmem>>, vector<1x1x96xf32>
    %67 = vector.shape_cast %66 : vector<1x1x96xf32> to vector<1x96xf32>
    %68 = arith.addf %65, %67 : vector<1x96xf32>
    %69 = vector.extract_strided_slice %68 {offsets = [0, 0], sizes = [1, 32], strides = [1, 1]} : vector<1x96xf32> to vector<1x32xf32>
    %70 = vector.extract_strided_slice %68 {offsets = [0, 32], sizes = [1, 32], strides = [1, 1]} : vector<1x96xf32> to vector<1x32xf32>
    %71 = vector.extract_strided_slice %68 {offsets = [0, 64], sizes = [1, 32], strides = [1, 1]} : vector<1x96xf32> to vector<1x32xf32>
    %c1_49 = arith.constant 1 : index
    %c0_50 = arith.constant 0 : index
    %c0_51 = arith.constant 0 : index
    %72 = vector.load %arg6[%c1_49, %c0_50, %c0_51] : memref<2x1x96xf32, #tpu.memory_space<vmem>>, vector<1x1x96xf32>
    %73 = vector.shape_cast %72 : vector<1x1x96xf32> to vector<1x96xf32>
    %74 = vector.extract_strided_slice %73 {offsets = [0, 0], sizes = [1, 32], strides = [1, 1]} : vector<1x96xf32> to vector<1x32xf32>
    %75 = arith.addf %69, %74 : vector<1x32xf32>
    %cst_52 = arith.constant 0.000000e+00 : f32
    %76 = vector.broadcast %cst_52 : f32 to vector<1x32xf32>
    %77 = arith.subf %76, %75 : vector<1x32xf32>
    %78 = math.exp %77 : vector<1x32xf32>
    %cst_53 = arith.constant 1.000000e+00 : f32
    %79 = vector.broadcast %cst_53 : f32 to vector<1x32xf32>
    %80 = arith.addf %79, %78 : vector<1x32xf32>
    %cst_54 = arith.constant 1.000000e+00 : f32
    %81 = vector.broadcast %cst_54 : f32 to vector<1x32xf32>
    %82 = arith.divf %81, %80 : vector<1x32xf32>
    %83 = vector.extract_strided_slice %73 {offsets = [0, 32], sizes = [1, 32], strides = [1, 1]} : vector<1x96xf32> to vector<1x32xf32>
    %84 = arith.addf %70, %83 : vector<1x32xf32>
    %cst_55 = arith.constant 0.000000e+00 : f32
    %85 = vector.broadcast %cst_55 : f32 to vector<1x32xf32>
    %86 = arith.subf %85, %84 : vector<1x32xf32>
    %87 = math.exp %86 : vector<1x32xf32>
    %cst_56 = arith.constant 1.000000e+00 : f32
    %88 = vector.broadcast %cst_56 : f32 to vector<1x32xf32>
    %89 = arith.addf %88, %87 : vector<1x32xf32>
    %cst_57 = arith.constant 1.000000e+00 : f32
    %90 = vector.broadcast %cst_57 : f32 to vector<1x32xf32>
    %91 = arith.divf %90, %89 : vector<1x32xf32>
    %92 = vector.extract_strided_slice %73 {offsets = [0, 64], sizes = [1, 32], strides = [1, 1]} : vector<1x96xf32> to vector<1x32xf32>
    %93 = arith.mulf %82, %92 : vector<1x32xf32>
    %94 = arith.addf %71, %93 : vector<1x32xf32>
    %95 = math.tanh %94 : vector<1x32xf32>
    %cst_58 = arith.constant 1.000000e+00 : f32
    %96 = vector.broadcast %cst_58 : f32 to vector<1x32xf32>
    %97 = arith.subf %96, %91 : vector<1x32xf32>
    %98 = arith.mulf %97, %95 : vector<1x32xf32>
    %99 = vector.extract_strided_slice %19 {offsets = [0, 0, 0], sizes = [1, 1, 32], strides = [1, 1, 1]} : vector<8x1x32xf32> to vector<1x1x32xf32>
    %100 = vector.shape_cast %99 : vector<1x1x32xf32> to vector<1x32xf32>
    %101 = vector.extract_strided_slice %21 {offsets = [0, 0, 0], sizes = [1, 1, 32], strides = [1, 1, 1]} : vector<8x1x32xf32> to vector<1x1x32xf32>
    %102 = vector.shape_cast %101 : vector<1x1x32xf32> to vector<1x32xf32>
    %103 = vector.extract_strided_slice %23 {offsets = [0, 0, 0], sizes = [1, 1, 32], strides = [1, 1, 1]} : vector<8x1x32xf32> to vector<1x1x32xf32>
    %104 = vector.shape_cast %103 : vector<1x1x32xf32> to vector<1x32xf32>
    %105 = vector.extract_strided_slice %53 {offsets = [0, 0], sizes = [1, 32], strides = [1, 1]} : vector<1x96xf32> to vector<1x32xf32>
    %106 = arith.addf %100, %105 : vector<1x32xf32>
    %cst_59 = arith.constant 0.000000e+00 : f32
    %107 = vector.broadcast %cst_59 : f32 to vector<1x32xf32>
    %108 = arith.subf %107, %106 : vector<1x32xf32>
    %109 = math.exp %108 : vector<1x32xf32>
    %cst_60 = arith.constant 1.000000e+00 : f32
    %110 = vector.broadcast %cst_60 : f32 to vector<1x32xf32>
    %111 = arith.addf %110, %109 : vector<1x32xf32>
    %cst_61 = arith.constant 1.000000e+00 : f32
    %112 = vector.broadcast %cst_61 : f32 to vector<1x32xf32>
    %113 = arith.divf %112, %111 : vector<1x32xf32>
    %114 = vector.extract_strided_slice %53 {offsets = [0, 32], sizes = [1, 32], strides = [1, 1]} : vector<1x96xf32> to vector<1x32xf32>
    %115 = arith.addf %102, %114 : vector<1x32xf32>
    %cst_62 = arith.constant 0.000000e+00 : f32
    %116 = vector.broadcast %cst_62 : f32 to vector<1x32xf32>
    %117 = arith.subf %116, %115 : vector<1x32xf32>
    %118 = math.exp %117 : vector<1x32xf32>
    %cst_63 = arith.constant 1.000000e+00 : f32
    %119 = vector.broadcast %cst_63 : f32 to vector<1x32xf32>
    %120 = arith.addf %119, %118 : vector<1x32xf32>
    %cst_64 = arith.constant 1.000000e+00 : f32
    %121 = vector.broadcast %cst_64 : f32 to vector<1x32xf32>
    %122 = arith.divf %121, %120 : vector<1x32xf32>
    %123 = vector.extract_strided_slice %53 {offsets = [0, 64], sizes = [1, 32], strides = [1, 1]} : vector<1x96xf32> to vector<1x32xf32>
    %124 = arith.mulf %113, %123 : vector<1x32xf32>
    %125 = arith.addf %104, %124 : vector<1x32xf32>
    %126 = math.tanh %125 : vector<1x32xf32>
    %cst_65 = arith.constant 1.000000e+00 : f32
    %127 = vector.broadcast %cst_65 : f32 to vector<1x32xf32>
    %128 = arith.subf %127, %122 : vector<1x32xf32>
    %129 = arith.mulf %128, %126 : vector<1x32xf32>
    %130 = vector.extract_strided_slice %32 {offsets = [7, 0, 0], sizes = [1, 1, 32], strides = [1, 1, 1]} : vector<8x1x32xf32> to vector<1x1x32xf32>
    %131 = vector.shape_cast %130 : vector<1x1x32xf32> to vector<1x32xf32>
    %132 = vector.extract_strided_slice %34 {offsets = [7, 0, 0], sizes = [1, 1, 32], strides = [1, 1, 1]} : vector<8x1x32xf32> to vector<1x1x32xf32>
    %133 = vector.shape_cast %132 : vector<1x1x32xf32> to vector<1x32xf32>
    %134 = vector.extract_strided_slice %36 {offsets = [7, 0, 0], sizes = [1, 1, 32], strides = [1, 1, 1]} : vector<8x1x32xf32> to vector<1x1x32xf32>
    %135 = vector.shape_cast %134 : vector<1x1x32xf32> to vector<1x32xf32>
    %136 = vector.extract_strided_slice %57 {offsets = [0, 0], sizes = [1, 32], strides = [1, 1]} : vector<1x96xf32> to vector<1x32xf32>
    %137 = arith.addf %131, %136 : vector<1x32xf32>
    %cst_66 = arith.constant 0.000000e+00 : f32
    %138 = vector.broadcast %cst_66 : f32 to vector<1x32xf32>
    %139 = arith.subf %138, %137 : vector<1x32xf32>
    %140 = math.exp %139 : vector<1x32xf32>
    %cst_67 = arith.constant 1.000000e+00 : f32
    %141 = vector.broadcast %cst_67 : f32 to vector<1x32xf32>
    %142 = arith.addf %141, %140 : vector<1x32xf32>
    %cst_68 = arith.constant 1.000000e+00 : f32
    %143 = vector.broadcast %cst_68 : f32 to vector<1x32xf32>
    %144 = arith.divf %143, %142 : vector<1x32xf32>
    %145 = vector.extract_strided_slice %57 {offsets = [0, 32], sizes = [1, 32], strides = [1, 1]} : vector<1x96xf32> to vector<1x32xf32>
    %146 = arith.addf %133, %145 : vector<1x32xf32>
    %cst_69 = arith.constant 0.000000e+00 : f32
    %147 = vector.broadcast %cst_69 : f32 to vector<1x32xf32>
    %148 = arith.subf %147, %146 : vector<1x32xf32>
    %149 = math.exp %148 : vector<1x32xf32>
    %cst_70 = arith.constant 1.000000e+00 : f32
    %150 = vector.broadcast %cst_70 : f32 to vector<1x32xf32>
    %151 = arith.addf %150, %149 : vector<1x32xf32>
    %cst_71 = arith.constant 1.000000e+00 : f32
    %152 = vector.broadcast %cst_71 : f32 to vector<1x32xf32>
    %153 = arith.divf %152, %151 : vector<1x32xf32>
    %154 = vector.extract_strided_slice %57 {offsets = [0, 64], sizes = [1, 32], strides = [1, 1]} : vector<1x96xf32> to vector<1x32xf32>
    %155 = arith.mulf %144, %154 : vector<1x32xf32>
    %156 = arith.addf %135, %155 : vector<1x32xf32>
    %157 = math.tanh %156 : vector<1x32xf32>
    %cst_72 = arith.constant 1.000000e+00 : f32
    %158 = vector.broadcast %cst_72 : f32 to vector<1x32xf32>
    %159 = arith.subf %158, %153 : vector<1x32xf32>
    %160 = arith.mulf %159, %157 : vector<1x32xf32>
    %161 = vector.extract_strided_slice %45 {offsets = [0, 0, 0], sizes = [1, 1, 32], strides = [1, 1, 1]} : vector<8x1x32xf32> to vector<1x1x32xf32>
    %162 = vector.shape_cast %161 : vector<1x1x32xf32> to vector<1x32xf32>
    %163 = vector.extract_strided_slice %47 {offsets = [0, 0, 0], sizes = [1, 1, 32], strides = [1, 1, 1]} : vector<8x1x32xf32> to vector<1x1x32xf32>
    %164 = vector.shape_cast %163 : vector<1x1x32xf32> to vector<1x32xf32>
    %165 = vector.extract_strided_slice %49 {offsets = [0, 0, 0], sizes = [1, 1, 32], strides = [1, 1, 1]} : vector<8x1x32xf32> to vector<1x1x32xf32>
    %166 = vector.shape_cast %165 : vector<1x1x32xf32> to vector<1x32xf32>
    %167 = vector.extract_strided_slice %61 {offsets = [0, 0], sizes = [1, 32], strides = [1, 1]} : vector<1x96xf32> to vector<1x32xf32>
    %168 = arith.addf %162, %167 : vector<1x32xf32>
    %cst_73 = arith.constant 0.000000e+00 : f32
    %169 = vector.broadcast %cst_73 : f32 to vector<1x32xf32>
    %170 = arith.subf %169, %168 : vector<1x32xf32>
    %171 = math.exp %170 : vector<1x32xf32>
    %cst_74 = arith.constant 1.000000e+00 : f32
    %172 = vector.broadcast %cst_74 : f32 to vector<1x32xf32>
    %173 = arith.addf %172, %171 : vector<1x32xf32>
    %cst_75 = arith.constant 1.000000e+00 : f32
    %174 = vector.broadcast %cst_75 : f32 to vector<1x32xf32>
    %175 = arith.divf %174, %173 : vector<1x32xf32>
    %176 = vector.extract_strided_slice %61 {offsets = [0, 32], sizes = [1, 32], strides = [1, 1]} : vector<1x96xf32> to vector<1x32xf32>
    %177 = arith.addf %164, %176 : vector<1x32xf32>
    %cst_76 = arith.constant 0.000000e+00 : f32
    %178 = vector.broadcast %cst_76 : f32 to vector<1x32xf32>
    %179 = arith.subf %178, %177 : vector<1x32xf32>
    %180 = math.exp %179 : vector<1x32xf32>
    %cst_77 = arith.constant 1.000000e+00 : f32
    %181 = vector.broadcast %cst_77 : f32 to vector<1x32xf32>
    %182 = arith.addf %181, %180 : vector<1x32xf32>
    %cst_78 = arith.constant 1.000000e+00 : f32
    %183 = vector.broadcast %cst_78 : f32 to vector<1x32xf32>
    %184 = arith.divf %183, %182 : vector<1x32xf32>
    %185 = vector.extract_strided_slice %61 {offsets = [0, 64], sizes = [1, 32], strides = [1, 1]} : vector<1x96xf32> to vector<1x32xf32>
    %186 = arith.mulf %175, %185 : vector<1x32xf32>
    %187 = arith.addf %166, %186 : vector<1x32xf32>
    %188 = math.tanh %187 : vector<1x32xf32>
    %cst_79 = arith.constant 1.000000e+00 : f32
    %189 = vector.broadcast %cst_79 : f32 to vector<1x32xf32>
    %190 = arith.subf %189, %184 : vector<1x32xf32>
    %191 = arith.mulf %190, %188 : vector<1x32xf32>
    %c0_80 = arith.constant 0 : index
    %c0_81 = arith.constant 0 : index
    %c0_82 = arith.constant 0 : index
    %192 = vector.load %arg20[%c0_80, %c0_81, %c0_82] : memref<8x1x32xf32, #tpu.memory_space<vmem>>, vector<1x1x32xf32>
    %193 = vector.shape_cast %192 : vector<1x1x32xf32> to vector<1x32xf32>
    %194 = vector.shape_cast %129 : vector<1x32xf32> to vector<1x1x32xf32>
    tpu.vector_store %arg20[%c0_80, %c0_81, %c0_82], %194 {strides = array<i32>} : memref<8x1x32xf32, #tpu.memory_space<vmem>>, vector<1x1x32xf32>,
    %c7 = arith.constant 7 : index
    %c0_83 = arith.constant 0 : index
    %c0_84 = arith.constant 0 : index
    %195 = vector.load %arg21[%c7, %c0_83, %c0_84] : memref<8x1x32xf32, #tpu.memory_space<vmem>>, vector<1x1x32xf32>
    %196 = vector.shape_cast %195 : vector<1x1x32xf32> to vector<1x32xf32>
    %197 = vector.shape_cast %160 : vector<1x32xf32> to vector<1x1x32xf32>
    tpu.vector_store %arg21[%c7, %c0_83, %c0_84], %197 {strides = array<i32>} : memref<8x1x32xf32, #tpu.memory_space<vmem>>, vector<1x1x32xf32>,
    %198 = vector.extract_strided_slice %19 {offsets = [1, 0, 0], sizes = [1, 1, 32], strides = [1, 1, 1]} : vector<8x1x32xf32> to vector<1x1x32xf32>
    %199 = vector.shape_cast %198 : vector<1x1x32xf32> to vector<1x32xf32>
    %200 = vector.extract_strided_slice %21 {offsets = [1, 0, 0], sizes = [1, 1, 32], strides = [1, 1, 1]} : vector<8x1x32xf32> to vector<1x1x32xf32>
    %201 = vector.shape_cast %200 : vector<1x1x32xf32> to vector<1x32xf32>
    %202 = vector.extract_strided_slice %23 {offsets = [1, 0, 0], sizes = [1, 1, 32], strides = [1, 1, 1]} : vector<8x1x32xf32> to vector<1x1x32xf32>
    %203 = vector.shape_cast %202 : vector<1x1x32xf32> to vector<1x32xf32>
    %cst_85 = arith.constant dense<0.000000e+00> : vector<1x96xf32>
    %204 = tpu.matmul %129, %51, %cst_85 {dimension_numbers = #tpu.dot_dimension_numbers<[1], [0], [0], [1], [0, 0, 1, 1], [], []>} : vector<1x32xf32>, vector<32x96xf32>, vector<1x96xf32> -> vector<1x96xf32>
    %205 = arith.addf %204, %53 : vector<1x96xf32>
    %206 = vector.extract_strided_slice %205 {offsets = [0, 0], sizes = [1, 32], strides = [1, 1]} : vector<1x96xf32> to vector<1x32xf32>
    %207 = arith.addf %199, %206 : vector<1x32xf32>
    %cst_86 = arith.constant 0.000000e+00 : f32
    %208 = vector.broadcast %cst_86 : f32 to vector<1x32xf32>
    %209 = arith.subf %208, %207 : vector<1x32xf32>
    %210 = math.exp %209 : vector<1x32xf32>
    %cst_87 = arith.constant 1.000000e+00 : f32
    %211 = vector.broadcast %cst_87 : f32 to vector<1x32xf32>
    %212 = arith.addf %211, %210 : vector<1x32xf32>
    %cst_88 = arith.constant 1.000000e+00 : f32
    %213 = vector.broadcast %cst_88 : f32 to vector<1x32xf32>
    %214 = arith.divf %213, %212 : vector<1x32xf32>
    %215 = vector.extract_strided_slice %205 {offsets = [0, 32], sizes = [1, 32], strides = [1, 1]} : vector<1x96xf32> to vector<1x32xf32>
    %216 = arith.addf %201, %215 : vector<1x32xf32>
    %cst_89 = arith.constant 0.000000e+00 : f32
    %217 = vector.broadcast %cst_89 : f32 to vector<1x32xf32>
    %218 = arith.subf %217, %216 : vector<1x32xf32>
    %219 = math.exp %218 : vector<1x32xf32>
    %cst_90 = arith.constant 1.000000e+00 : f32
    %220 = vector.broadcast %cst_90 : f32 to vector<1x32xf32>
    %221 = arith.addf %220, %219 : vector<1x32xf32>
    %cst_91 = arith.constant 1.000000e+00 : f32
    %222 = vector.broadcast %cst_91 : f32 to vector<1x32xf32>
    %223 = arith.divf %222, %221 : vector<1x32xf32>
    %224 = vector.extract_strided_slice %205 {offsets = [0, 64], sizes = [1, 32], strides = [1, 1]} : vector<1x96xf32> to vector<1x32xf32>
    %225 = arith.mulf %214, %224 : vector<1x32xf32>
    %226 = arith.addf %203, %225 : vector<1x32xf32>
    %227 = math.tanh %226 : vector<1x32xf32>
    %cst_92 = arith.constant 1.000000e+00 : f32
    %228 = vector.broadcast %cst_92 : f32 to vector<1x32xf32>
    %229 = arith.subf %228, %223 : vector<1x32xf32>
    %230 = arith.mulf %229, %227 : vector<1x32xf32>
    %231 = arith.mulf %223, %129 : vector<1x32xf32>
    %232 = arith.addf %230, %231 : vector<1x32xf32>
    %233 = vector.extract_strided_slice %32 {offsets = [6, 0, 0], sizes = [1, 1, 32], strides = [1, 1, 1]} : vector<8x1x32xf32> to vector<1x1x32xf32>
    %234 = vector.shape_cast %233 : vector<1x1x32xf32> to vector<1x32xf32>
    %235 = vector.extract_strided_slice %34 {offsets = [6, 0, 0], sizes = [1, 1, 32], strides = [1, 1, 1]} : vector<8x1x32xf32> to vector<1x1x32xf32>
    %236 = vector.shape_cast %235 : vector<1x1x32xf32> to vector<1x32xf32>
    %237 = vector.extract_strided_slice %36 {offsets = [6, 0, 0], sizes = [1, 1, 32], strides = [1, 1, 1]} : vector<8x1x32xf32> to vector<1x1x32xf32>
    %238 = vector.shape_cast %237 : vector<1x1x32xf32> to vector<1x32xf32>
    %cst_93 = arith.constant dense<0.000000e+00> : vector<1x96xf32>
    %239 = tpu.matmul %160, %55, %cst_93 {dimension_numbers = #tpu.dot_dimension_numbers<[1], [0], [0], [1], [0, 0, 1, 1], [], []>} : vector<1x32xf32>, vector<32x96xf32>, vector<1x96xf32> -> vector<1x96xf32>
    %240 = arith.addf %239, %57 : vector<1x96xf32>
    %241 = vector.extract_strided_slice %240 {offsets = [0, 0], sizes = [1, 32], strides = [1, 1]} : vector<1x96xf32> to vector<1x32xf32>
    %242 = arith.addf %234, %241 : vector<1x32xf32>
    %cst_94 = arith.constant 0.000000e+00 : f32
    %243 = vector.broadcast %cst_94 : f32 to vector<1x32xf32>
    %244 = arith.subf %243, %242 : vector<1x32xf32>
    %245 = math.exp %244 : vector<1x32xf32>
    %cst_95 = arith.constant 1.000000e+00 : f32
    %246 = vector.broadcast %cst_95 : f32 to vector<1x32xf32>
    %247 = arith.addf %246, %245 : vector<1x32xf32>
    %cst_96 = arith.constant 1.000000e+00 : f32
    %248 = vector.broadcast %cst_96 : f32 to vector<1x32xf32>
    %249 = arith.divf %248, %247 : vector<1x32xf32>
    %250 = vector.extract_strided_slice %240 {offsets = [0, 32], sizes = [1, 32], strides = [1, 1]} : vector<1x96xf32> to vector<1x32xf32>
    %251 = arith.addf %236, %250 : vector<1x32xf32>
    %cst_97 = arith.constant 0.000000e+00 : f32
    %252 = vector.broadcast %cst_97 : f32 to vector<1x32xf32>
    %253 = arith.subf %252, %251 : vector<1x32xf32>
    %254 = math.exp %253 : vector<1x32xf32>
    %cst_98 = arith.constant 1.000000e+00 : f32
    %255 = vector.broadcast %cst_98 : f32 to vector<1x32xf32>
    %256 = arith.addf %255, %254 : vector<1x32xf32>
    %cst_99 = arith.constant 1.000000e+00 : f32
    %257 = vector.broadcast %cst_99 : f32 to vector<1x32xf32>
    %258 = arith.divf %257, %256 : vector<1x32xf32>
    %259 = vector.extract_strided_slice %240 {offsets = [0, 64], sizes = [1, 32], strides = [1, 1]} : vector<1x96xf32> to vector<1x32xf32>
    %260 = arith.mulf %249, %259 : vector<1x32xf32>
    %261 = arith.addf %238, %260 : vector<1x32xf32>
    %262 = math.tanh %261 : vector<1x32xf32>
    %cst_100 = arith.constant 1.000000e+00 : f32
    %263 = vector.broadcast %cst_100 : f32 to vector<1x32xf32>
    %264 = arith.subf %263, %258 : vector<1x32xf32>
    %265 = arith.mulf %264, %262 : vector<1x32xf32>
    %266 = arith.mulf %258, %160 : vector<1x32xf32>
    %267 = arith.addf %265, %266 : vector<1x32xf32>
    %268 = vector.extract_strided_slice %45 {offsets = [1, 0, 0], sizes = [1, 1, 32], strides = [1, 1, 1]} : vector<8x1x32xf32> to vector<1x1x32xf32>
    %269 = vector.shape_cast %268 : vector<1x1x32xf32> to vector<1x32xf32>
    %270 = vector.extract_strided_slice %47 {offsets = [1, 0, 0], sizes = [1, 1, 32], strides = [1, 1, 1]} : vector<8x1x32xf32> to vector<1x1x32xf32>
    %271 = vector.shape_cast %270 : vector<1x1x32xf32> to vector<1x32xf32>
    %272 = vector.extract_strided_slice %49 {offsets = [1, 0, 0], sizes = [1, 1, 32], strides = [1, 1, 1]} : vector<8x1x32xf32> to vector<1x1x32xf32>
    %273 = vector.shape_cast %272 : vector<1x1x32xf32> to vector<1x32xf32>
    %cst_101 = arith.constant dense<0.000000e+00> : vector<1x96xf32>
    %274 = tpu.matmul %191, %59, %cst_101 {dimension_numbers = #tpu.dot_dimension_numbers<[1], [0], [0], [1], [0, 0, 1, 1], [], []>} : vector<1x32xf32>, vector<32x96xf32>, vector<1x96xf32> -> vector<1x96xf32>
    %275 = arith.addf %274, %61 : vector<1x96xf32>
    %276 = vector.extract_strided_slice %275 {offsets = [0, 0], sizes = [1, 32], strides = [1, 1]} : vector<1x96xf32> to vector<1x32xf32>
    %277 = arith.addf %269, %276 : vector<1x32xf32>
    %cst_102 = arith.constant 0.000000e+00 : f32
    %278 = vector.broadcast %cst_102 : f32 to vector<1x32xf32>
    %279 = arith.subf %278, %277 : vector<1x32xf32>
    %280 = math.exp %279 : vector<1x32xf32>
    %cst_103 = arith.constant 1.000000e+00 : f32
    %281 = vector.broadcast %cst_103 : f32 to vector<1x32xf32>
    %282 = arith.addf %281, %280 : vector<1x32xf32>
    %cst_104 = arith.constant 1.000000e+00 : f32
    %283 = vector.broadcast %cst_104 : f32 to vector<1x32xf32>
    %284 = arith.divf %283, %282 : vector<1x32xf32>
    %285 = vector.extract_strided_slice %275 {offsets = [0, 32], sizes = [1, 32], strides = [1, 1]} : vector<1x96xf32> to vector<1x32xf32>
    %286 = arith.addf %271, %285 : vector<1x32xf32>
    %cst_105 = arith.constant 0.000000e+00 : f32
    %287 = vector.broadcast %cst_105 : f32 to vector<1x32xf32>
    %288 = arith.subf %287, %286 : vector<1x32xf32>
    %289 = math.exp %288 : vector<1x32xf32>
    %cst_106 = arith.constant 1.000000e+00 : f32
    %290 = vector.broadcast %cst_106 : f32 to vector<1x32xf32>
    %291 = arith.addf %290, %289 : vector<1x32xf32>
    %cst_107 = arith.constant 1.000000e+00 : f32
    %292 = vector.broadcast %cst_107 : f32 to vector<1x32xf32>
    %293 = arith.divf %292, %291 : vector<1x32xf32>
    %294 = vector.extract_strided_slice %275 {offsets = [0, 64], sizes = [1, 32], strides = [1, 1]} : vector<1x96xf32> to vector<1x32xf32>
    %295 = arith.mulf %284, %294 : vector<1x32xf32>
    %296 = arith.addf %273, %295 : vector<1x32xf32>
    %297 = math.tanh %296 : vector<1x32xf32>
    %cst_108 = arith.constant 1.000000e+00 : f32
    %298 = vector.broadcast %cst_108 : f32 to vector<1x32xf32>
    %299 = arith.subf %298, %293 : vector<1x32xf32>
    %300 = arith.mulf %299, %297 : vector<1x32xf32>
    %301 = arith.mulf %293, %191 : vector<1x32xf32>
    %302 = arith.addf %300, %301 : vector<1x32xf32>
    %c1_109 = arith.constant 1 : index
    %c0_110 = arith.constant 0 : index
    %c0_111 = arith.constant 0 : index
    %303 = vector.load %arg20[%c1_109, %c0_110, %c0_111] : memref<8x1x32xf32, #tpu.memory_space<vmem>>, vector<1x1x32xf32>
    %304 = vector.shape_cast %303 : vector<1x1x32xf32> to vector<1x32xf32>
    %305 = vector.shape_cast %232 : vector<1x32xf32> to vector<1x1x32xf32>
    tpu.vector_store %arg20[%c1_109, %c0_110, %c0_111], %305 {strides = array<i32>} : memref<8x1x32xf32, #tpu.memory_space<vmem>>, vector<1x1x32xf32>,
    %c6 = arith.constant 6 : index
    %c0_112 = arith.constant 0 : index
    %c0_113 = arith.constant 0 : index
    %306 = vector.load %arg21[%c6, %c0_112, %c0_113] : memref<8x1x32xf32, #tpu.memory_space<vmem>>, vector<1x1x32xf32>
    %307 = vector.shape_cast %306 : vector<1x1x32xf32> to vector<1x32xf32>
    %308 = vector.shape_cast %267 : vector<1x32xf32> to vector<1x1x32xf32>
    tpu.vector_store %arg21[%c6, %c0_112, %c0_113], %308 {strides = array<i32>} : memref<8x1x32xf32, #tpu.memory_space<vmem>>, vector<1x1x32xf32>,
    %309 = vector.extract_strided_slice %19 {offsets = [2, 0, 0], sizes = [1, 1, 32], strides = [1, 1, 1]} : vector<8x1x32xf32> to vector<1x1x32xf32>
    %310 = vector.shape_cast %309 : vector<1x1x32xf32> to vector<1x32xf32>
    %311 = vector.extract_strided_slice %21 {offsets = [2, 0, 0], sizes = [1, 1, 32], strides = [1, 1, 1]} : vector<8x1x32xf32> to vector<1x1x32xf32>
    %312 = vector.shape_cast %311 : vector<1x1x32xf32> to vector<1x32xf32>
    %313 = vector.extract_strided_slice %23 {offsets = [2, 0, 0], sizes = [1, 1, 32], strides = [1, 1, 1]} : vector<8x1x32xf32> to vector<1x1x32xf32>
    %314 = vector.shape_cast %313 : vector<1x1x32xf32> to vector<1x32xf32>
    %cst_114 = arith.constant dense<0.000000e+00> : vector<1x96xf32>
    %315 = tpu.matmul %232, %51, %cst_114 {dimension_numbers = #tpu.dot_dimension_numbers<[1], [0], [0], [1], [0, 0, 1, 1], [], []>} : vector<1x32xf32>, vector<32x96xf32>, vector<1x96xf32> -> vector<1x96xf32>
    %316 = arith.addf %315, %53 : vector<1x96xf32>
    %317 = vector.extract_strided_slice %316 {offsets = [0, 0], sizes = [1, 32], strides = [1, 1]} : vector<1x96xf32> to vector<1x32xf32>
    %318 = arith.addf %310, %317 : vector<1x32xf32>
    %cst_115 = arith.constant 0.000000e+00 : f32
    %319 = vector.broadcast %cst_115 : f32 to vector<1x32xf32>
    %320 = arith.subf %319, %318 : vector<1x32xf32>
    %321 = math.exp %320 : vector<1x32xf32>
    %cst_116 = arith.constant 1.000000e+00 : f32
    %322 = vector.broadcast %cst_116 : f32 to vector<1x32xf32>
    %323 = arith.addf %322, %321 : vector<1x32xf32>
    %cst_117 = arith.constant 1.000000e+00 : f32
    %324 = vector.broadcast %cst_117 : f32 to vector<1x32xf32>
    %325 = arith.divf %324, %323 : vector<1x32xf32>
    %326 = vector.extract_strided_slice %316 {offsets = [0, 32], sizes = [1, 32], strides = [1, 1]} : vector<1x96xf32> to vector<1x32xf32>
    %327 = arith.addf %312, %326 : vector<1x32xf32>
    %cst_118 = arith.constant 0.000000e+00 : f32
    %328 = vector.broadcast %cst_118 : f32 to vector<1x32xf32>
    %329 = arith.subf %328, %327 : vector<1x32xf32>
    %330 = math.exp %329 : vector<1x32xf32>
    %cst_119 = arith.constant 1.000000e+00 : f32
    %331 = vector.broadcast %cst_119 : f32 to vector<1x32xf32>
    %332 = arith.addf %331, %330 : vector<1x32xf32>
    %cst_120 = arith.constant 1.000000e+00 : f32
    %333 = vector.broadcast %cst_120 : f32 to vector<1x32xf32>
    %334 = arith.divf %333, %332 : vector<1x32xf32>
    %335 = vector.extract_strided_slice %316 {offsets = [0, 64], sizes = [1, 32], strides = [1, 1]} : vector<1x96xf32> to vector<1x32xf32>
    %336 = arith.mulf %325, %335 : vector<1x32xf32>
    %337 = arith.addf %314, %336 : vector<1x32xf32>
    %338 = math.tanh %337 : vector<1x32xf32>
    %cst_121 = arith.constant 1.000000e+00 : f32
    %339 = vector.broadcast %cst_121 : f32 to vector<1x32xf32>
    %340 = arith.subf %339, %334 : vector<1x32xf32>
    %341 = arith.mulf %340, %338 : vector<1x32xf32>
    %342 = arith.mulf %334, %232 : vector<1x32xf32>
    %343 = arith.addf %341, %342 : vector<1x32xf32>
    %344 = vector.extract_strided_slice %32 {offsets = [5, 0, 0], sizes = [1, 1, 32], strides = [1, 1, 1]} : vector<8x1x32xf32> to vector<1x1x32xf32>
    %345 = vector.shape_cast %344 : vector<1x1x32xf32> to vector<1x32xf32>
    %346 = vector.extract_strided_slice %34 {offsets = [5, 0, 0], sizes = [1, 1, 32], strides = [1, 1, 1]} : vector<8x1x32xf32> to vector<1x1x32xf32>
    %347 = vector.shape_cast %346 : vector<1x1x32xf32> to vector<1x32xf32>
    %348 = vector.extract_strided_slice %36 {offsets = [5, 0, 0], sizes = [1, 1, 32], strides = [1, 1, 1]} : vector<8x1x32xf32> to vector<1x1x32xf32>
    %349 = vector.shape_cast %348 : vector<1x1x32xf32> to vector<1x32xf32>
    %cst_122 = arith.constant dense<0.000000e+00> : vector<1x96xf32>
    %350 = tpu.matmul %267, %55, %cst_122 {dimension_numbers = #tpu.dot_dimension_numbers<[1], [0], [0], [1], [0, 0, 1, 1], [], []>} : vector<1x32xf32>, vector<32x96xf32>, vector<1x96xf32> -> vector<1x96xf32>
    %351 = arith.addf %350, %57 : vector<1x96xf32>
    %352 = vector.extract_strided_slice %351 {offsets = [0, 0], sizes = [1, 32], strides = [1, 1]} : vector<1x96xf32> to vector<1x32xf32>
    %353 = arith.addf %345, %352 : vector<1x32xf32>
    %cst_123 = arith.constant 0.000000e+00 : f32
    %354 = vector.broadcast %cst_123 : f32 to vector<1x32xf32>
    %355 = arith.subf %354, %353 : vector<1x32xf32>
    %356 = math.exp %355 : vector<1x32xf32>
    %cst_124 = arith.constant 1.000000e+00 : f32
    %357 = vector.broadcast %cst_124 : f32 to vector<1x32xf32>
    %358 = arith.addf %357, %356 : vector<1x32xf32>
    %cst_125 = arith.constant 1.000000e+00 : f32
    %359 = vector.broadcast %cst_125 : f32 to vector<1x32xf32>
    %360 = arith.divf %359, %358 : vector<1x32xf32>
    %361 = vector.extract_strided_slice %351 {offsets = [0, 32], sizes = [1, 32], strides = [1, 1]} : vector<1x96xf32> to vector<1x32xf32>
    %362 = arith.addf %347, %361 : vector<1x32xf32>
    %cst_126 = arith.constant 0.000000e+00 : f32
    %363 = vector.broadcast %cst_126 : f32 to vector<1x32xf32>
    %364 = arith.subf %363, %362 : vector<1x32xf32>
    %365 = math.exp %364 : vector<1x32xf32>
    %cst_127 = arith.constant 1.000000e+00 : f32
    %366 = vector.broadcast %cst_127 : f32 to vector<1x32xf32>
    %367 = arith.addf %366, %365 : vector<1x32xf32>
    %cst_128 = arith.constant 1.000000e+00 : f32
    %368 = vector.broadcast %cst_128 : f32 to vector<1x32xf32>
    %369 = arith.divf %368, %367 : vector<1x32xf32>
    %370 = vector.extract_strided_slice %351 {offsets = [0, 64], sizes = [1, 32], strides = [1, 1]} : vector<1x96xf32> to vector<1x32xf32>
    %371 = arith.mulf %360, %370 : vector<1x32xf32>
    %372 = arith.addf %349, %371 : vector<1x32xf32>
    %373 = math.tanh %372 : vector<1x32xf32>
    %cst_129 = arith.constant 1.000000e+00 : f32
    %374 = vector.broadcast %cst_129 : f32 to vector<1x32xf32>
    %375 = arith.subf %374, %369 : vector<1x32xf32>
    %376 = arith.mulf %375, %373 : vector<1x32xf32>
    %377 = arith.mulf %369, %267 : vector<1x32xf32>
    %378 = arith.addf %376, %377 : vector<1x32xf32>
    %379 = vector.extract_strided_slice %45 {offsets = [2, 0, 0], sizes = [1, 1, 32], strides = [1, 1, 1]} : vector<8x1x32xf32> to vector<1x1x32xf32>
    %380 = vector.shape_cast %379 : vector<1x1x32xf32> to vector<1x32xf32>
    %381 = vector.extract_strided_slice %47 {offsets = [2, 0, 0], sizes = [1, 1, 32], strides = [1, 1, 1]} : vector<8x1x32xf32> to vector<1x1x32xf32>
    %382 = vector.shape_cast %381 : vector<1x1x32xf32> to vector<1x32xf32>
    %383 = vector.extract_strided_slice %49 {offsets = [2, 0, 0], sizes = [1, 1, 32], strides = [1, 1, 1]} : vector<8x1x32xf32> to vector<1x1x32xf32>
    %384 = vector.shape_cast %383 : vector<1x1x32xf32> to vector<1x32xf32>
    %cst_130 = arith.constant dense<0.000000e+00> : vector<1x96xf32>
    %385 = tpu.matmul %302, %59, %cst_130 {dimension_numbers = #tpu.dot_dimension_numbers<[1], [0], [0], [1], [0, 0, 1, 1], [], []>} : vector<1x32xf32>, vector<32x96xf32>, vector<1x96xf32> -> vector<1x96xf32>
    %386 = arith.addf %385, %61 : vector<1x96xf32>
    %387 = vector.extract_strided_slice %386 {offsets = [0, 0], sizes = [1, 32], strides = [1, 1]} : vector<1x96xf32> to vector<1x32xf32>
    %388 = arith.addf %380, %387 : vector<1x32xf32>
    %cst_131 = arith.constant 0.000000e+00 : f32
    %389 = vector.broadcast %cst_131 : f32 to vector<1x32xf32>
    %390 = arith.subf %389, %388 : vector<1x32xf32>
    %391 = math.exp %390 : vector<1x32xf32>
    %cst_132 = arith.constant 1.000000e+00 : f32
    %392 = vector.broadcast %cst_132 : f32 to vector<1x32xf32>
    %393 = arith.addf %392, %391 : vector<1x32xf32>
    %cst_133 = arith.constant 1.000000e+00 : f32
    %394 = vector.broadcast %cst_133 : f32 to vector<1x32xf32>
    %395 = arith.divf %394, %393 : vector<1x32xf32>
    %396 = vector.extract_strided_slice %386 {offsets = [0, 32], sizes = [1, 32], strides = [1, 1]} : vector<1x96xf32> to vector<1x32xf32>
    %397 = arith.addf %382, %396 : vector<1x32xf32>
    %cst_134 = arith.constant 0.000000e+00 : f32
    %398 = vector.broadcast %cst_134 : f32 to vector<1x32xf32>
    %399 = arith.subf %398, %397 : vector<1x32xf32>
    %400 = math.exp %399 : vector<1x32xf32>
    %cst_135 = arith.constant 1.000000e+00 : f32
    %401 = vector.broadcast %cst_135 : f32 to vector<1x32xf32>
    %402 = arith.addf %401, %400 : vector<1x32xf32>
    %cst_136 = arith.constant 1.000000e+00 : f32
    %403 = vector.broadcast %cst_136 : f32 to vector<1x32xf32>
    %404 = arith.divf %403, %402 : vector<1x32xf32>
    %405 = vector.extract_strided_slice %386 {offsets = [0, 64], sizes = [1, 32], strides = [1, 1]} : vector<1x96xf32> to vector<1x32xf32>
    %406 = arith.mulf %395, %405 : vector<1x32xf32>
    %407 = arith.addf %384, %406 : vector<1x32xf32>
    %408 = math.tanh %407 : vector<1x32xf32>
    %cst_137 = arith.constant 1.000000e+00 : f32
    %409 = vector.broadcast %cst_137 : f32 to vector<1x32xf32>
    %410 = arith.subf %409, %404 : vector<1x32xf32>
    %411 = arith.mulf %410, %408 : vector<1x32xf32>
    %412 = arith.mulf %404, %302 : vector<1x32xf32>
    %413 = arith.addf %411, %412 : vector<1x32xf32>
    %c2 = arith.constant 2 : index
    %c0_138 = arith.constant 0 : index
    %c0_139 = arith.constant 0 : index
    %414 = vector.load %arg20[%c2, %c0_138, %c0_139] : memref<8x1x32xf32, #tpu.memory_space<vmem>>, vector<1x1x32xf32>
    %415 = vector.shape_cast %414 : vector<1x1x32xf32> to vector<1x32xf32>
    %416 = vector.shape_cast %343 : vector<1x32xf32> to vector<1x1x32xf32>
    tpu.vector_store %arg20[%c2, %c0_138, %c0_139], %416 {strides = array<i32>} : memref<8x1x32xf32, #tpu.memory_space<vmem>>, vector<1x1x32xf32>,
    %c5 = arith.constant 5 : index
    %c0_140 = arith.constant 0 : index
    %c0_141 = arith.constant 0 : index
    %417 = vector.load %arg21[%c5, %c0_140, %c0_141] : memref<8x1x32xf32, #tpu.memory_space<vmem>>, vector<1x1x32xf32>
    %418 = vector.shape_cast %417 : vector<1x1x32xf32> to vector<1x32xf32>
    %419 = vector.shape_cast %378 : vector<1x32xf32> to vector<1x1x32xf32>
    tpu.vector_store %arg21[%c5, %c0_140, %c0_141], %419 {strides = array<i32>} : memref<8x1x32xf32, #tpu.memory_space<vmem>>, vector<1x1x32xf32>,
    %420 = vector.extract_strided_slice %19 {offsets = [3, 0, 0], sizes = [1, 1, 32], strides = [1, 1, 1]} : vector<8x1x32xf32> to vector<1x1x32xf32>
    %421 = vector.shape_cast %420 : vector<1x1x32xf32> to vector<1x32xf32>
    %422 = vector.extract_strided_slice %21 {offsets = [3, 0, 0], sizes = [1, 1, 32], strides = [1, 1, 1]} : vector<8x1x32xf32> to vector<1x1x32xf32>
    %423 = vector.shape_cast %422 : vector<1x1x32xf32> to vector<1x32xf32>
    %424 = vector.extract_strided_slice %23 {offsets = [3, 0, 0], sizes = [1, 1, 32], strides = [1, 1, 1]} : vector<8x1x32xf32> to vector<1x1x32xf32>
    %425 = vector.shape_cast %424 : vector<1x1x32xf32> to vector<1x32xf32>
    %cst_142 = arith.constant dense<0.000000e+00> : vector<1x96xf32>
    %426 = tpu.matmul %343, %51, %cst_142 {dimension_numbers = #tpu.dot_dimension_numbers<[1], [0], [0], [1], [0, 0, 1, 1], [], []>} : vector<1x32xf32>, vector<32x96xf32>, vector<1x96xf32> -> vector<1x96xf32>
    %427 = arith.addf %426, %53 : vector<1x96xf32>
    %428 = vector.extract_strided_slice %427 {offsets = [0, 0], sizes = [1, 32], strides = [1, 1]} : vector<1x96xf32> to vector<1x32xf32>
    %429 = arith.addf %421, %428 : vector<1x32xf32>
    %cst_143 = arith.constant 0.000000e+00 : f32
    %430 = vector.broadcast %cst_143 : f32 to vector<1x32xf32>
    %431 = arith.subf %430, %429 : vector<1x32xf32>
    %432 = math.exp %431 : vector<1x32xf32>
    %cst_144 = arith.constant 1.000000e+00 : f32
    %433 = vector.broadcast %cst_144 : f32 to vector<1x32xf32>
    %434 = arith.addf %433, %432 : vector<1x32xf32>
    %cst_145 = arith.constant 1.000000e+00 : f32
    %435 = vector.broadcast %cst_145 : f32 to vector<1x32xf32>
    %436 = arith.divf %435, %434 : vector<1x32xf32>
    %437 = vector.extract_strided_slice %427 {offsets = [0, 32], sizes = [1, 32], strides = [1, 1]} : vector<1x96xf32> to vector<1x32xf32>
    %438 = arith.addf %423, %437 : vector<1x32xf32>
    %cst_146 = arith.constant 0.000000e+00 : f32
    %439 = vector.broadcast %cst_146 : f32 to vector<1x32xf32>
    %440 = arith.subf %439, %438 : vector<1x32xf32>
    %441 = math.exp %440 : vector<1x32xf32>
    %cst_147 = arith.constant 1.000000e+00 : f32
    %442 = vector.broadcast %cst_147 : f32 to vector<1x32xf32>
    %443 = arith.addf %442, %441 : vector<1x32xf32>
    %cst_148 = arith.constant 1.000000e+00 : f32
    %444 = vector.broadcast %cst_148 : f32 to vector<1x32xf32>
    %445 = arith.divf %444, %443 : vector<1x32xf32>
    %446 = vector.extract_strided_slice %427 {offsets = [0, 64], sizes = [1, 32], strides = [1, 1]} : vector<1x96xf32> to vector<1x32xf32>
    %447 = arith.mulf %436, %446 : vector<1x32xf32>
    %448 = arith.addf %425, %447 : vector<1x32xf32>
    %449 = math.tanh %448 : vector<1x32xf32>
    %cst_149 = arith.constant 1.000000e+00 : f32
    %450 = vector.broadcast %cst_149 : f32 to vector<1x32xf32>
    %451 = arith.subf %450, %445 : vector<1x32xf32>
    %452 = arith.mulf %451, %449 : vector<1x32xf32>
    %453 = arith.mulf %445, %343 : vector<1x32xf32>
    %454 = arith.addf %452, %453 : vector<1x32xf32>
    %455 = vector.extract_strided_slice %32 {offsets = [4, 0, 0], sizes = [1, 1, 32], strides = [1, 1, 1]} : vector<8x1x32xf32> to vector<1x1x32xf32>
    %456 = vector.shape_cast %455 : vector<1x1x32xf32> to vector<1x32xf32>
    %457 = vector.extract_strided_slice %34 {offsets = [4, 0, 0], sizes = [1, 1, 32], strides = [1, 1, 1]} : vector<8x1x32xf32> to vector<1x1x32xf32>
    %458 = vector.shape_cast %457 : vector<1x1x32xf32> to vector<1x32xf32>
    %459 = vector.extract_strided_slice %36 {offsets = [4, 0, 0], sizes = [1, 1, 32], strides = [1, 1, 1]} : vector<8x1x32xf32> to vector<1x1x32xf32>
    %460 = vector.shape_cast %459 : vector<1x1x32xf32> to vector<1x32xf32>
    %cst_150 = arith.constant dense<0.000000e+00> : vector<1x96xf32>
    %461 = tpu.matmul %378, %55, %cst_150 {dimension_numbers = #tpu.dot_dimension_numbers<[1], [0], [0], [1], [0, 0, 1, 1], [], []>} : vector<1x32xf32>, vector<32x96xf32>, vector<1x96xf32> -> vector<1x96xf32>
    %462 = arith.addf %461, %57 : vector<1x96xf32>
    %463 = vector.extract_strided_slice %462 {offsets = [0, 0], sizes = [1, 32], strides = [1, 1]} : vector<1x96xf32> to vector<1x32xf32>
    %464 = arith.addf %456, %463 : vector<1x32xf32>
    %cst_151 = arith.constant 0.000000e+00 : f32
    %465 = vector.broadcast %cst_151 : f32 to vector<1x32xf32>
    %466 = arith.subf %465, %464 : vector<1x32xf32>
    %467 = math.exp %466 : vector<1x32xf32>
    %cst_152 = arith.constant 1.000000e+00 : f32
    %468 = vector.broadcast %cst_152 : f32 to vector<1x32xf32>
    %469 = arith.addf %468, %467 : vector<1x32xf32>
    %cst_153 = arith.constant 1.000000e+00 : f32
    %470 = vector.broadcast %cst_153 : f32 to vector<1x32xf32>
    %471 = arith.divf %470, %469 : vector<1x32xf32>
    %472 = vector.extract_strided_slice %462 {offsets = [0, 32], sizes = [1, 32], strides = [1, 1]} : vector<1x96xf32> to vector<1x32xf32>
    %473 = arith.addf %458, %472 : vector<1x32xf32>
    %cst_154 = arith.constant 0.000000e+00 : f32
    %474 = vector.broadcast %cst_154 : f32 to vector<1x32xf32>
    %475 = arith.subf %474, %473 : vector<1x32xf32>
    %476 = math.exp %475 : vector<1x32xf32>
    %cst_155 = arith.constant 1.000000e+00 : f32
    %477 = vector.broadcast %cst_155 : f32 to vector<1x32xf32>
    %478 = arith.addf %477, %476 : vector<1x32xf32>
    %cst_156 = arith.constant 1.000000e+00 : f32
    %479 = vector.broadcast %cst_156 : f32 to vector<1x32xf32>
    %480 = arith.divf %479, %478 : vector<1x32xf32>
    %481 = vector.extract_strided_slice %462 {offsets = [0, 64], sizes = [1, 32], strides = [1, 1]} : vector<1x96xf32> to vector<1x32xf32>
    %482 = arith.mulf %471, %481 : vector<1x32xf32>
    %483 = arith.addf %460, %482 : vector<1x32xf32>
    %484 = math.tanh %483 : vector<1x32xf32>
    %cst_157 = arith.constant 1.000000e+00 : f32
    %485 = vector.broadcast %cst_157 : f32 to vector<1x32xf32>
    %486 = arith.subf %485, %480 : vector<1x32xf32>
    %487 = arith.mulf %486, %484 : vector<1x32xf32>
    %488 = arith.mulf %480, %378 : vector<1x32xf32>
    %489 = arith.addf %487, %488 : vector<1x32xf32>
    %490 = vector.extract_strided_slice %45 {offsets = [3, 0, 0], sizes = [1, 1, 32], strides = [1, 1, 1]} : vector<8x1x32xf32> to vector<1x1x32xf32>
    %491 = vector.shape_cast %490 : vector<1x1x32xf32> to vector<1x32xf32>
    %492 = vector.extract_strided_slice %47 {offsets = [3, 0, 0], sizes = [1, 1, 32], strides = [1, 1, 1]} : vector<8x1x32xf32> to vector<1x1x32xf32>
    %493 = vector.shape_cast %492 : vector<1x1x32xf32> to vector<1x32xf32>
    %494 = vector.extract_strided_slice %49 {offsets = [3, 0, 0], sizes = [1, 1, 32], strides = [1, 1, 1]} : vector<8x1x32xf32> to vector<1x1x32xf32>
    %495 = vector.shape_cast %494 : vector<1x1x32xf32> to vector<1x32xf32>
    %cst_158 = arith.constant dense<0.000000e+00> : vector<1x96xf32>
    %496 = tpu.matmul %413, %59, %cst_158 {dimension_numbers = #tpu.dot_dimension_numbers<[1], [0], [0], [1], [0, 0, 1, 1], [], []>} : vector<1x32xf32>, vector<32x96xf32>, vector<1x96xf32> -> vector<1x96xf32>
    %497 = arith.addf %496, %61 : vector<1x96xf32>
    %498 = vector.extract_strided_slice %497 {offsets = [0, 0], sizes = [1, 32], strides = [1, 1]} : vector<1x96xf32> to vector<1x32xf32>
    %499 = arith.addf %491, %498 : vector<1x32xf32>
    %cst_159 = arith.constant 0.000000e+00 : f32
    %500 = vector.broadcast %cst_159 : f32 to vector<1x32xf32>
    %501 = arith.subf %500, %499 : vector<1x32xf32>
    %502 = math.exp %501 : vector<1x32xf32>
    %cst_160 = arith.constant 1.000000e+00 : f32
    %503 = vector.broadcast %cst_160 : f32 to vector<1x32xf32>
    %504 = arith.addf %503, %502 : vector<1x32xf32>
    %cst_161 = arith.constant 1.000000e+00 : f32
    %505 = vector.broadcast %cst_161 : f32 to vector<1x32xf32>
    %506 = arith.divf %505, %504 : vector<1x32xf32>
    %507 = vector.extract_strided_slice %497 {offsets = [0, 32], sizes = [1, 32], strides = [1, 1]} : vector<1x96xf32> to vector<1x32xf32>
    %508 = arith.addf %493, %507 : vector<1x32xf32>
    %cst_162 = arith.constant 0.000000e+00 : f32
    %509 = vector.broadcast %cst_162 : f32 to vector<1x32xf32>
    %510 = arith.subf %509, %508 : vector<1x32xf32>
    %511 = math.exp %510 : vector<1x32xf32>
    %cst_163 = arith.constant 1.000000e+00 : f32
    %512 = vector.broadcast %cst_163 : f32 to vector<1x32xf32>
    %513 = arith.addf %512, %511 : vector<1x32xf32>
    %cst_164 = arith.constant 1.000000e+00 : f32
    %514 = vector.broadcast %cst_164 : f32 to vector<1x32xf32>
    %515 = arith.divf %514, %513 : vector<1x32xf32>
    %516 = vector.extract_strided_slice %497 {offsets = [0, 64], sizes = [1, 32], strides = [1, 1]} : vector<1x96xf32> to vector<1x32xf32>
    %517 = arith.mulf %506, %516 : vector<1x32xf32>
    %518 = arith.addf %495, %517 : vector<1x32xf32>
    %519 = math.tanh %518 : vector<1x32xf32>
    %cst_165 = arith.constant 1.000000e+00 : f32
    %520 = vector.broadcast %cst_165 : f32 to vector<1x32xf32>
    %521 = arith.subf %520, %515 : vector<1x32xf32>
    %522 = arith.mulf %521, %519 : vector<1x32xf32>
    %523 = arith.mulf %515, %413 : vector<1x32xf32>
    %524 = arith.addf %522, %523 : vector<1x32xf32>
    %c3 = arith.constant 3 : index
    %c0_166 = arith.constant 0 : index
    %c0_167 = arith.constant 0 : index
    %525 = vector.load %arg20[%c3, %c0_166, %c0_167] : memref<8x1x32xf32, #tpu.memory_space<vmem>>, vector<1x1x32xf32>
    %526 = vector.shape_cast %525 : vector<1x1x32xf32> to vector<1x32xf32>
    %527 = vector.shape_cast %454 : vector<1x32xf32> to vector<1x1x32xf32>
    tpu.vector_store %arg20[%c3, %c0_166, %c0_167], %527 {strides = array<i32>} : memref<8x1x32xf32, #tpu.memory_space<vmem>>, vector<1x1x32xf32>,
    %c4 = arith.constant 4 : index
    %c0_168 = arith.constant 0 : index
    %c0_169 = arith.constant 0 : index
    %528 = vector.load %arg21[%c4, %c0_168, %c0_169] : memref<8x1x32xf32, #tpu.memory_space<vmem>>, vector<1x1x32xf32>
    %529 = vector.shape_cast %528 : vector<1x1x32xf32> to vector<1x32xf32>
    %530 = vector.shape_cast %489 : vector<1x32xf32> to vector<1x1x32xf32>
    tpu.vector_store %arg21[%c4, %c0_168, %c0_169], %530 {strides = array<i32>} : memref<8x1x32xf32, #tpu.memory_space<vmem>>, vector<1x1x32xf32>,
    %531 = vector.extract_strided_slice %19 {offsets = [4, 0, 0], sizes = [1, 1, 32], strides = [1, 1, 1]} : vector<8x1x32xf32> to vector<1x1x32xf32>
    %532 = vector.shape_cast %531 : vector<1x1x32xf32> to vector<1x32xf32>
    %533 = vector.extract_strided_slice %21 {offsets = [4, 0, 0], sizes = [1, 1, 32], strides = [1, 1, 1]} : vector<8x1x32xf32> to vector<1x1x32xf32>
    %534 = vector.shape_cast %533 : vector<1x1x32xf32> to vector<1x32xf32>
    %535 = vector.extract_strided_slice %23 {offsets = [4, 0, 0], sizes = [1, 1, 32], strides = [1, 1, 1]} : vector<8x1x32xf32> to vector<1x1x32xf32>
    %536 = vector.shape_cast %535 : vector<1x1x32xf32> to vector<1x32xf32>
    %cst_170 = arith.constant dense<0.000000e+00> : vector<1x96xf32>
    %537 = tpu.matmul %454, %51, %cst_170 {dimension_numbers = #tpu.dot_dimension_numbers<[1], [0], [0], [1], [0, 0, 1, 1], [], []>} : vector<1x32xf32>, vector<32x96xf32>, vector<1x96xf32> -> vector<1x96xf32>
    %538 = arith.addf %537, %53 : vector<1x96xf32>
    %539 = vector.extract_strided_slice %538 {offsets = [0, 0], sizes = [1, 32], strides = [1, 1]} : vector<1x96xf32> to vector<1x32xf32>
    %540 = arith.addf %532, %539 : vector<1x32xf32>
    %cst_171 = arith.constant 0.000000e+00 : f32
    %541 = vector.broadcast %cst_171 : f32 to vector<1x32xf32>
    %542 = arith.subf %541, %540 : vector<1x32xf32>
    %543 = math.exp %542 : vector<1x32xf32>
    %cst_172 = arith.constant 1.000000e+00 : f32
    %544 = vector.broadcast %cst_172 : f32 to vector<1x32xf32>
    %545 = arith.addf %544, %543 : vector<1x32xf32>
    %cst_173 = arith.constant 1.000000e+00 : f32
    %546 = vector.broadcast %cst_173 : f32 to vector<1x32xf32>
    %547 = arith.divf %546, %545 : vector<1x32xf32>
    %548 = vector.extract_strided_slice %538 {offsets = [0, 32], sizes = [1, 32], strides = [1, 1]} : vector<1x96xf32> to vector<1x32xf32>
    %549 = arith.addf %534, %548 : vector<1x32xf32>
    %cst_174 = arith.constant 0.000000e+00 : f32
    %550 = vector.broadcast %cst_174 : f32 to vector<1x32xf32>
    %551 = arith.subf %550, %549 : vector<1x32xf32>
    %552 = math.exp %551 : vector<1x32xf32>
    %cst_175 = arith.constant 1.000000e+00 : f32
    %553 = vector.broadcast %cst_175 : f32 to vector<1x32xf32>
    %554 = arith.addf %553, %552 : vector<1x32xf32>
    %cst_176 = arith.constant 1.000000e+00 : f32
    %555 = vector.broadcast %cst_176 : f32 to vector<1x32xf32>
    %556 = arith.divf %555, %554 : vector<1x32xf32>
    %557 = vector.extract_strided_slice %538 {offsets = [0, 64], sizes = [1, 32], strides = [1, 1]} : vector<1x96xf32> to vector<1x32xf32>
    %558 = arith.mulf %547, %557 : vector<1x32xf32>
    %559 = arith.addf %536, %558 : vector<1x32xf32>
    %560 = math.tanh %559 : vector<1x32xf32>
    %cst_177 = arith.constant 1.000000e+00 : f32
    %561 = vector.broadcast %cst_177 : f32 to vector<1x32xf32>
    %562 = arith.subf %561, %556 : vector<1x32xf32>
    %563 = arith.mulf %562, %560 : vector<1x32xf32>
    %564 = arith.mulf %556, %454 : vector<1x32xf32>
    %565 = arith.addf %563, %564 : vector<1x32xf32>
    %566 = vector.extract_strided_slice %32 {offsets = [3, 0, 0], sizes = [1, 1, 32], strides = [1, 1, 1]} : vector<8x1x32xf32> to vector<1x1x32xf32>
    %567 = vector.shape_cast %566 : vector<1x1x32xf32> to vector<1x32xf32>
    %568 = vector.extract_strided_slice %34 {offsets = [3, 0, 0], sizes = [1, 1, 32], strides = [1, 1, 1]} : vector<8x1x32xf32> to vector<1x1x32xf32>
    %569 = vector.shape_cast %568 : vector<1x1x32xf32> to vector<1x32xf32>
    %570 = vector.extract_strided_slice %36 {offsets = [3, 0, 0], sizes = [1, 1, 32], strides = [1, 1, 1]} : vector<8x1x32xf32> to vector<1x1x32xf32>
    %571 = vector.shape_cast %570 : vector<1x1x32xf32> to vector<1x32xf32>
    %cst_178 = arith.constant dense<0.000000e+00> : vector<1x96xf32>
    %572 = tpu.matmul %489, %55, %cst_178 {dimension_numbers = #tpu.dot_dimension_numbers<[1], [0], [0], [1], [0, 0, 1, 1], [], []>} : vector<1x32xf32>, vector<32x96xf32>, vector<1x96xf32> -> vector<1x96xf32>
    %573 = arith.addf %572, %57 : vector<1x96xf32>
    %574 = vector.extract_strided_slice %573 {offsets = [0, 0], sizes = [1, 32], strides = [1, 1]} : vector<1x96xf32> to vector<1x32xf32>
    %575 = arith.addf %567, %574 : vector<1x32xf32>
    %cst_179 = arith.constant 0.000000e+00 : f32
    %576 = vector.broadcast %cst_179 : f32 to vector<1x32xf32>
    %577 = arith.subf %576, %575 : vector<1x32xf32>
    %578 = math.exp %577 : vector<1x32xf32>
    %cst_180 = arith.constant 1.000000e+00 : f32
    %579 = vector.broadcast %cst_180 : f32 to vector<1x32xf32>
    %580 = arith.addf %579, %578 : vector<1x32xf32>
    %cst_181 = arith.constant 1.000000e+00 : f32
    %581 = vector.broadcast %cst_181 : f32 to vector<1x32xf32>
    %582 = arith.divf %581, %580 : vector<1x32xf32>
    %583 = vector.extract_strided_slice %573 {offsets = [0, 32], sizes = [1, 32], strides = [1, 1]} : vector<1x96xf32> to vector<1x32xf32>
    %584 = arith.addf %569, %583 : vector<1x32xf32>
    %cst_182 = arith.constant 0.000000e+00 : f32
    %585 = vector.broadcast %cst_182 : f32 to vector<1x32xf32>
    %586 = arith.subf %585, %584 : vector<1x32xf32>
    %587 = math.exp %586 : vector<1x32xf32>
    %cst_183 = arith.constant 1.000000e+00 : f32
    %588 = vector.broadcast %cst_183 : f32 to vector<1x32xf32>
    %589 = arith.addf %588, %587 : vector<1x32xf32>
    %cst_184 = arith.constant 1.000000e+00 : f32
    %590 = vector.broadcast %cst_184 : f32 to vector<1x32xf32>
    %591 = arith.divf %590, %589 : vector<1x32xf32>
    %592 = vector.extract_strided_slice %573 {offsets = [0, 64], sizes = [1, 32], strides = [1, 1]} : vector<1x96xf32> to vector<1x32xf32>
    %593 = arith.mulf %582, %592 : vector<1x32xf32>
    %594 = arith.addf %571, %593 : vector<1x32xf32>
    %595 = math.tanh %594 : vector<1x32xf32>
    %cst_185 = arith.constant 1.000000e+00 : f32
    %596 = vector.broadcast %cst_185 : f32 to vector<1x32xf32>
    %597 = arith.subf %596, %591 : vector<1x32xf32>
    %598 = arith.mulf %597, %595 : vector<1x32xf32>
    %599 = arith.mulf %591, %489 : vector<1x32xf32>
    %600 = arith.addf %598, %599 : vector<1x32xf32>
    %601 = vector.extract_strided_slice %45 {offsets = [4, 0, 0], sizes = [1, 1, 32], strides = [1, 1, 1]} : vector<8x1x32xf32> to vector<1x1x32xf32>
    %602 = vector.shape_cast %601 : vector<1x1x32xf32> to vector<1x32xf32>
    %603 = vector.extract_strided_slice %47 {offsets = [4, 0, 0], sizes = [1, 1, 32], strides = [1, 1, 1]} : vector<8x1x32xf32> to vector<1x1x32xf32>
    %604 = vector.shape_cast %603 : vector<1x1x32xf32> to vector<1x32xf32>
    %605 = vector.extract_strided_slice %49 {offsets = [4, 0, 0], sizes = [1, 1, 32], strides = [1, 1, 1]} : vector<8x1x32xf32> to vector<1x1x32xf32>
    %606 = vector.shape_cast %605 : vector<1x1x32xf32> to vector<1x32xf32>
    %cst_186 = arith.constant dense<0.000000e+00> : vector<1x96xf32>
    %607 = tpu.matmul %524, %59, %cst_186 {dimension_numbers = #tpu.dot_dimension_numbers<[1], [0], [0], [1], [0, 0, 1, 1], [], []>} : vector<1x32xf32>, vector<32x96xf32>, vector<1x96xf32> -> vector<1x96xf32>
    %608 = arith.addf %607, %61 : vector<1x96xf32>
    %609 = vector.extract_strided_slice %608 {offsets = [0, 0], sizes = [1, 32], strides = [1, 1]} : vector<1x96xf32> to vector<1x32xf32>
    %610 = arith.addf %602, %609 : vector<1x32xf32>
    %cst_187 = arith.constant 0.000000e+00 : f32
    %611 = vector.broadcast %cst_187 : f32 to vector<1x32xf32>
    %612 = arith.subf %611, %610 : vector<1x32xf32>
    %613 = math.exp %612 : vector<1x32xf32>
    %cst_188 = arith.constant 1.000000e+00 : f32
    %614 = vector.broadcast %cst_188 : f32 to vector<1x32xf32>
    %615 = arith.addf %614, %613 : vector<1x32xf32>
    %cst_189 = arith.constant 1.000000e+00 : f32
    %616 = vector.broadcast %cst_189 : f32 to vector<1x32xf32>
    %617 = arith.divf %616, %615 : vector<1x32xf32>
    %618 = vector.extract_strided_slice %608 {offsets = [0, 32], sizes = [1, 32], strides = [1, 1]} : vector<1x96xf32> to vector<1x32xf32>
    %619 = arith.addf %604, %618 : vector<1x32xf32>
    %cst_190 = arith.constant 0.000000e+00 : f32
    %620 = vector.broadcast %cst_190 : f32 to vector<1x32xf32>
    %621 = arith.subf %620, %619 : vector<1x32xf32>
    %622 = math.exp %621 : vector<1x32xf32>
    %cst_191 = arith.constant 1.000000e+00 : f32
    %623 = vector.broadcast %cst_191 : f32 to vector<1x32xf32>
    %624 = arith.addf %623, %622 : vector<1x32xf32>
    %cst_192 = arith.constant 1.000000e+00 : f32
    %625 = vector.broadcast %cst_192 : f32 to vector<1x32xf32>
    %626 = arith.divf %625, %624 : vector<1x32xf32>
    %627 = vector.extract_strided_slice %608 {offsets = [0, 64], sizes = [1, 32], strides = [1, 1]} : vector<1x96xf32> to vector<1x32xf32>
    %628 = arith.mulf %617, %627 : vector<1x32xf32>
    %629 = arith.addf %606, %628 : vector<1x32xf32>
    %630 = math.tanh %629 : vector<1x32xf32>
    %cst_193 = arith.constant 1.000000e+00 : f32
    %631 = vector.broadcast %cst_193 : f32 to vector<1x32xf32>
    %632 = arith.subf %631, %626 : vector<1x32xf32>
    %633 = arith.mulf %632, %630 : vector<1x32xf32>
    %634 = arith.mulf %626, %524 : vector<1x32xf32>
    %635 = arith.addf %633, %634 : vector<1x32xf32>
    %c4_194 = arith.constant 4 : index
    %c0_195 = arith.constant 0 : index
    %c0_196 = arith.constant 0 : index
    %636 = vector.load %arg20[%c4_194, %c0_195, %c0_196] : memref<8x1x32xf32, #tpu.memory_space<vmem>>, vector<1x1x32xf32>
    %637 = vector.shape_cast %636 : vector<1x1x32xf32> to vector<1x32xf32>
    %638 = vector.shape_cast %565 : vector<1x32xf32> to vector<1x1x32xf32>
    tpu.vector_store %arg20[%c4_194, %c0_195, %c0_196], %638 {strides = array<i32>} : memref<8x1x32xf32, #tpu.memory_space<vmem>>, vector<1x1x32xf32>,
    %c3_197 = arith.constant 3 : index
    %c0_198 = arith.constant 0 : index
    %c0_199 = arith.constant 0 : index
    %639 = vector.load %arg21[%c3_197, %c0_198, %c0_199] : memref<8x1x32xf32, #tpu.memory_space<vmem>>, vector<1x1x32xf32>
    %640 = vector.shape_cast %639 : vector<1x1x32xf32> to vector<1x32xf32>
    %641 = vector.shape_cast %600 : vector<1x32xf32> to vector<1x1x32xf32>
    tpu.vector_store %arg21[%c3_197, %c0_198, %c0_199], %641 {strides = array<i32>} : memref<8x1x32xf32, #tpu.memory_space<vmem>>, vector<1x1x32xf32>,
    %642 = vector.extract_strided_slice %19 {offsets = [5, 0, 0], sizes = [1, 1, 32], strides = [1, 1, 1]} : vector<8x1x32xf32> to vector<1x1x32xf32>
    %643 = vector.shape_cast %642 : vector<1x1x32xf32> to vector<1x32xf32>
    %644 = vector.extract_strided_slice %21 {offsets = [5, 0, 0], sizes = [1, 1, 32], strides = [1, 1, 1]} : vector<8x1x32xf32> to vector<1x1x32xf32>
    %645 = vector.shape_cast %644 : vector<1x1x32xf32> to vector<1x32xf32>
    %646 = vector.extract_strided_slice %23 {offsets = [5, 0, 0], sizes = [1, 1, 32], strides = [1, 1, 1]} : vector<8x1x32xf32> to vector<1x1x32xf32>
    %647 = vector.shape_cast %646 : vector<1x1x32xf32> to vector<1x32xf32>
    %cst_200 = arith.constant dense<0.000000e+00> : vector<1x96xf32>
    %648 = tpu.matmul %565, %51, %cst_200 {dimension_numbers = #tpu.dot_dimension_numbers<[1], [0], [0], [1], [0, 0, 1, 1], [], []>} : vector<1x32xf32>, vector<32x96xf32>, vector<1x96xf32> -> vector<1x96xf32>
    %649 = arith.addf %648, %53 : vector<1x96xf32>
    %650 = vector.extract_strided_slice %649 {offsets = [0, 0], sizes = [1, 32], strides = [1, 1]} : vector<1x96xf32> to vector<1x32xf32>
    %651 = arith.addf %643, %650 : vector<1x32xf32>
    %cst_201 = arith.constant 0.000000e+00 : f32
    %652 = vector.broadcast %cst_201 : f32 to vector<1x32xf32>
    %653 = arith.subf %652, %651 : vector<1x32xf32>
    %654 = math.exp %653 : vector<1x32xf32>
    %cst_202 = arith.constant 1.000000e+00 : f32
    %655 = vector.broadcast %cst_202 : f32 to vector<1x32xf32>
    %656 = arith.addf %655, %654 : vector<1x32xf32>
    %cst_203 = arith.constant 1.000000e+00 : f32
    %657 = vector.broadcast %cst_203 : f32 to vector<1x32xf32>
    %658 = arith.divf %657, %656 : vector<1x32xf32>
    %659 = vector.extract_strided_slice %649 {offsets = [0, 32], sizes = [1, 32], strides = [1, 1]} : vector<1x96xf32> to vector<1x32xf32>
    %660 = arith.addf %645, %659 : vector<1x32xf32>
    %cst_204 = arith.constant 0.000000e+00 : f32
    %661 = vector.broadcast %cst_204 : f32 to vector<1x32xf32>
    %662 = arith.subf %661, %660 : vector<1x32xf32>
    %663 = math.exp %662 : vector<1x32xf32>
    %cst_205 = arith.constant 1.000000e+00 : f32
    %664 = vector.broadcast %cst_205 : f32 to vector<1x32xf32>
    %665 = arith.addf %664, %663 : vector<1x32xf32>
    %cst_206 = arith.constant 1.000000e+00 : f32
    %666 = vector.broadcast %cst_206 : f32 to vector<1x32xf32>
    %667 = arith.divf %666, %665 : vector<1x32xf32>
    %668 = vector.extract_strided_slice %649 {offsets = [0, 64], sizes = [1, 32], strides = [1, 1]} : vector<1x96xf32> to vector<1x32xf32>
    %669 = arith.mulf %658, %668 : vector<1x32xf32>
    %670 = arith.addf %647, %669 : vector<1x32xf32>
    %671 = math.tanh %670 : vector<1x32xf32>
    %cst_207 = arith.constant 1.000000e+00 : f32
    %672 = vector.broadcast %cst_207 : f32 to vector<1x32xf32>
    %673 = arith.subf %672, %667 : vector<1x32xf32>
    %674 = arith.mulf %673, %671 : vector<1x32xf32>
    %675 = arith.mulf %667, %565 : vector<1x32xf32>
    %676 = arith.addf %674, %675 : vector<1x32xf32>
    %677 = vector.extract_strided_slice %32 {offsets = [2, 0, 0], sizes = [1, 1, 32], strides = [1, 1, 1]} : vector<8x1x32xf32> to vector<1x1x32xf32>
    %678 = vector.shape_cast %677 : vector<1x1x32xf32> to vector<1x32xf32>
    %679 = vector.extract_strided_slice %34 {offsets = [2, 0, 0], sizes = [1, 1, 32], strides = [1, 1, 1]} : vector<8x1x32xf32> to vector<1x1x32xf32>
    %680 = vector.shape_cast %679 : vector<1x1x32xf32> to vector<1x32xf32>
    %681 = vector.extract_strided_slice %36 {offsets = [2, 0, 0], sizes = [1, 1, 32], strides = [1, 1, 1]} : vector<8x1x32xf32> to vector<1x1x32xf32>
    %682 = vector.shape_cast %681 : vector<1x1x32xf32> to vector<1x32xf32>
    %cst_208 = arith.constant dense<0.000000e+00> : vector<1x96xf32>
    %683 = tpu.matmul %600, %55, %cst_208 {dimension_numbers = #tpu.dot_dimension_numbers<[1], [0], [0], [1], [0, 0, 1, 1], [], []>} : vector<1x32xf32>, vector<32x96xf32>, vector<1x96xf32> -> vector<1x96xf32>
    %684 = arith.addf %683, %57 : vector<1x96xf32>
    %685 = vector.extract_strided_slice %684 {offsets = [0, 0], sizes = [1, 32], strides = [1, 1]} : vector<1x96xf32> to vector<1x32xf32>
    %686 = arith.addf %678, %685 : vector<1x32xf32>
    %cst_209 = arith.constant 0.000000e+00 : f32
    %687 = vector.broadcast %cst_209 : f32 to vector<1x32xf32>
    %688 = arith.subf %687, %686 : vector<1x32xf32>
    %689 = math.exp %688 : vector<1x32xf32>
    %cst_210 = arith.constant 1.000000e+00 : f32
    %690 = vector.broadcast %cst_210 : f32 to vector<1x32xf32>
    %691 = arith.addf %690, %689 : vector<1x32xf32>
    %cst_211 = arith.constant 1.000000e+00 : f32
    %692 = vector.broadcast %cst_211 : f32 to vector<1x32xf32>
    %693 = arith.divf %692, %691 : vector<1x32xf32>
    %694 = vector.extract_strided_slice %684 {offsets = [0, 32], sizes = [1, 32], strides = [1, 1]} : vector<1x96xf32> to vector<1x32xf32>
    %695 = arith.addf %680, %694 : vector<1x32xf32>
    %cst_212 = arith.constant 0.000000e+00 : f32
    %696 = vector.broadcast %cst_212 : f32 to vector<1x32xf32>
    %697 = arith.subf %696, %695 : vector<1x32xf32>
    %698 = math.exp %697 : vector<1x32xf32>
    %cst_213 = arith.constant 1.000000e+00 : f32
    %699 = vector.broadcast %cst_213 : f32 to vector<1x32xf32>
    %700 = arith.addf %699, %698 : vector<1x32xf32>
    %cst_214 = arith.constant 1.000000e+00 : f32
    %701 = vector.broadcast %cst_214 : f32 to vector<1x32xf32>
    %702 = arith.divf %701, %700 : vector<1x32xf32>
    %703 = vector.extract_strided_slice %684 {offsets = [0, 64], sizes = [1, 32], strides = [1, 1]} : vector<1x96xf32> to vector<1x32xf32>
    %704 = arith.mulf %693, %703 : vector<1x32xf32>
    %705 = arith.addf %682, %704 : vector<1x32xf32>
    %706 = math.tanh %705 : vector<1x32xf32>
    %cst_215 = arith.constant 1.000000e+00 : f32
    %707 = vector.broadcast %cst_215 : f32 to vector<1x32xf32>
    %708 = arith.subf %707, %702 : vector<1x32xf32>
    %709 = arith.mulf %708, %706 : vector<1x32xf32>
    %710 = arith.mulf %702, %600 : vector<1x32xf32>
    %711 = arith.addf %709, %710 : vector<1x32xf32>
    %712 = vector.extract_strided_slice %45 {offsets = [5, 0, 0], sizes = [1, 1, 32], strides = [1, 1, 1]} : vector<8x1x32xf32> to vector<1x1x32xf32>
    %713 = vector.shape_cast %712 : vector<1x1x32xf32> to vector<1x32xf32>
    %714 = vector.extract_strided_slice %47 {offsets = [5, 0, 0], sizes = [1, 1, 32], strides = [1, 1, 1]} : vector<8x1x32xf32> to vector<1x1x32xf32>
    %715 = vector.shape_cast %714 : vector<1x1x32xf32> to vector<1x32xf32>
    %716 = vector.extract_strided_slice %49 {offsets = [5, 0, 0], sizes = [1, 1, 32], strides = [1, 1, 1]} : vector<8x1x32xf32> to vector<1x1x32xf32>
    %717 = vector.shape_cast %716 : vector<1x1x32xf32> to vector<1x32xf32>
    %cst_216 = arith.constant dense<0.000000e+00> : vector<1x96xf32>
    %718 = tpu.matmul %635, %59, %cst_216 {dimension_numbers = #tpu.dot_dimension_numbers<[1], [0], [0], [1], [0, 0, 1, 1], [], []>} : vector<1x32xf32>, vector<32x96xf32>, vector<1x96xf32> -> vector<1x96xf32>
    %719 = arith.addf %718, %61 : vector<1x96xf32>
    %720 = vector.extract_strided_slice %719 {offsets = [0, 0], sizes = [1, 32], strides = [1, 1]} : vector<1x96xf32> to vector<1x32xf32>
    %721 = arith.addf %713, %720 : vector<1x32xf32>
    %cst_217 = arith.constant 0.000000e+00 : f32
    %722 = vector.broadcast %cst_217 : f32 to vector<1x32xf32>
    %723 = arith.subf %722, %721 : vector<1x32xf32>
    %724 = math.exp %723 : vector<1x32xf32>
    %cst_218 = arith.constant 1.000000e+00 : f32
    %725 = vector.broadcast %cst_218 : f32 to vector<1x32xf32>
    %726 = arith.addf %725, %724 : vector<1x32xf32>
    %cst_219 = arith.constant 1.000000e+00 : f32
    %727 = vector.broadcast %cst_219 : f32 to vector<1x32xf32>
    %728 = arith.divf %727, %726 : vector<1x32xf32>
    %729 = vector.extract_strided_slice %719 {offsets = [0, 32], sizes = [1, 32], strides = [1, 1]} : vector<1x96xf32> to vector<1x32xf32>
    %730 = arith.addf %715, %729 : vector<1x32xf32>
    %cst_220 = arith.constant 0.000000e+00 : f32
    %731 = vector.broadcast %cst_220 : f32 to vector<1x32xf32>
    %732 = arith.subf %731, %730 : vector<1x32xf32>
    %733 = math.exp %732 : vector<1x32xf32>
    %cst_221 = arith.constant 1.000000e+00 : f32
    %734 = vector.broadcast %cst_221 : f32 to vector<1x32xf32>
    %735 = arith.addf %734, %733 : vector<1x32xf32>
    %cst_222 = arith.constant 1.000000e+00 : f32
    %736 = vector.broadcast %cst_222 : f32 to vector<1x32xf32>
    %737 = arith.divf %736, %735 : vector<1x32xf32>
    %738 = vector.extract_strided_slice %719 {offsets = [0, 64], sizes = [1, 32], strides = [1, 1]} : vector<1x96xf32> to vector<1x32xf32>
    %739 = arith.mulf %728, %738 : vector<1x32xf32>
    %740 = arith.addf %717, %739 : vector<1x32xf32>
    %741 = math.tanh %740 : vector<1x32xf32>
    %cst_223 = arith.constant 1.000000e+00 : f32
    %742 = vector.broadcast %cst_223 : f32 to vector<1x32xf32>
    %743 = arith.subf %742, %737 : vector<1x32xf32>
    %744 = arith.mulf %743, %741 : vector<1x32xf32>
    %745 = arith.mulf %737, %635 : vector<1x32xf32>
    %746 = arith.addf %744, %745 : vector<1x32xf32>
    %c5_224 = arith.constant 5 : index
    %c0_225 = arith.constant 0 : index
    %c0_226 = arith.constant 0 : index
    %747 = vector.load %arg20[%c5_224, %c0_225, %c0_226] : memref<8x1x32xf32, #tpu.memory_space<vmem>>, vector<1x1x32xf32>
    %748 = vector.shape_cast %747 : vector<1x1x32xf32> to vector<1x32xf32>
    %749 = vector.shape_cast %676 : vector<1x32xf32> to vector<1x1x32xf32>
    tpu.vector_store %arg20[%c5_224, %c0_225, %c0_226], %749 {strides = array<i32>} : memref<8x1x32xf32, #tpu.memory_space<vmem>>, vector<1x1x32xf32>,
    %c2_227 = arith.constant 2 : index
    %c0_228 = arith.constant 0 : index
    %c0_229 = arith.constant 0 : index
    %750 = vector.load %arg21[%c2_227, %c0_228, %c0_229] : memref<8x1x32xf32, #tpu.memory_space<vmem>>, vector<1x1x32xf32>
    %751 = vector.shape_cast %750 : vector<1x1x32xf32> to vector<1x32xf32>
    %752 = vector.shape_cast %711 : vector<1x32xf32> to vector<1x1x32xf32>
    tpu.vector_store %arg21[%c2_227, %c0_228, %c0_229], %752 {strides = array<i32>} : memref<8x1x32xf32, #tpu.memory_space<vmem>>, vector<1x1x32xf32>,
    %753 = vector.extract_strided_slice %19 {offsets = [6, 0, 0], sizes = [1, 1, 32], strides = [1, 1, 1]} : vector<8x1x32xf32> to vector<1x1x32xf32>
    %754 = vector.shape_cast %753 : vector<1x1x32xf32> to vector<1x32xf32>
    %755 = vector.extract_strided_slice %21 {offsets = [6, 0, 0], sizes = [1, 1, 32], strides = [1, 1, 1]} : vector<8x1x32xf32> to vector<1x1x32xf32>
    %756 = vector.shape_cast %755 : vector<1x1x32xf32> to vector<1x32xf32>
    %757 = vector.extract_strided_slice %23 {offsets = [6, 0, 0], sizes = [1, 1, 32], strides = [1, 1, 1]} : vector<8x1x32xf32> to vector<1x1x32xf32>
    %758 = vector.shape_cast %757 : vector<1x1x32xf32> to vector<1x32xf32>
    %cst_230 = arith.constant dense<0.000000e+00> : vector<1x96xf32>
    %759 = tpu.matmul %676, %51, %cst_230 {dimension_numbers = #tpu.dot_dimension_numbers<[1], [0], [0], [1], [0, 0, 1, 1], [], []>} : vector<1x32xf32>, vector<32x96xf32>, vector<1x96xf32> -> vector<1x96xf32>
    %760 = arith.addf %759, %53 : vector<1x96xf32>
    %761 = vector.extract_strided_slice %760 {offsets = [0, 0], sizes = [1, 32], strides = [1, 1]} : vector<1x96xf32> to vector<1x32xf32>
    %762 = arith.addf %754, %761 : vector<1x32xf32>
    %cst_231 = arith.constant 0.000000e+00 : f32
    %763 = vector.broadcast %cst_231 : f32 to vector<1x32xf32>
    %764 = arith.subf %763, %762 : vector<1x32xf32>
    %765 = math.exp %764 : vector<1x32xf32>
    %cst_232 = arith.constant 1.000000e+00 : f32
    %766 = vector.broadcast %cst_232 : f32 to vector<1x32xf32>
    %767 = arith.addf %766, %765 : vector<1x32xf32>
    %cst_233 = arith.constant 1.000000e+00 : f32
    %768 = vector.broadcast %cst_233 : f32 to vector<1x32xf32>
    %769 = arith.divf %768, %767 : vector<1x32xf32>
    %770 = vector.extract_strided_slice %760 {offsets = [0, 32], sizes = [1, 32], strides = [1, 1]} : vector<1x96xf32> to vector<1x32xf32>
    %771 = arith.addf %756, %770 : vector<1x32xf32>
    %cst_234 = arith.constant 0.000000e+00 : f32
    %772 = vector.broadcast %cst_234 : f32 to vector<1x32xf32>
    %773 = arith.subf %772, %771 : vector<1x32xf32>
    %774 = math.exp %773 : vector<1x32xf32>
    %cst_235 = arith.constant 1.000000e+00 : f32
    %775 = vector.broadcast %cst_235 : f32 to vector<1x32xf32>
    %776 = arith.addf %775, %774 : vector<1x32xf32>
    %cst_236 = arith.constant 1.000000e+00 : f32
    %777 = vector.broadcast %cst_236 : f32 to vector<1x32xf32>
    %778 = arith.divf %777, %776 : vector<1x32xf32>
    %779 = vector.extract_strided_slice %760 {offsets = [0, 64], sizes = [1, 32], strides = [1, 1]} : vector<1x96xf32> to vector<1x32xf32>
    %780 = arith.mulf %769, %779 : vector<1x32xf32>
    %781 = arith.addf %758, %780 : vector<1x32xf32>
    %782 = math.tanh %781 : vector<1x32xf32>
    %cst_237 = arith.constant 1.000000e+00 : f32
    %783 = vector.broadcast %cst_237 : f32 to vector<1x32xf32>
    %784 = arith.subf %783, %778 : vector<1x32xf32>
    %785 = arith.mulf %784, %782 : vector<1x32xf32>
    %786 = arith.mulf %778, %676 : vector<1x32xf32>
    %787 = arith.addf %785, %786 : vector<1x32xf32>
    %788 = vector.extract_strided_slice %32 {offsets = [1, 0, 0], sizes = [1, 1, 32], strides = [1, 1, 1]} : vector<8x1x32xf32> to vector<1x1x32xf32>
    %789 = vector.shape_cast %788 : vector<1x1x32xf32> to vector<1x32xf32>
    %790 = vector.extract_strided_slice %34 {offsets = [1, 0, 0], sizes = [1, 1, 32], strides = [1, 1, 1]} : vector<8x1x32xf32> to vector<1x1x32xf32>
    %791 = vector.shape_cast %790 : vector<1x1x32xf32> to vector<1x32xf32>
    %792 = vector.extract_strided_slice %36 {offsets = [1, 0, 0], sizes = [1, 1, 32], strides = [1, 1, 1]} : vector<8x1x32xf32> to vector<1x1x32xf32>
    %793 = vector.shape_cast %792 : vector<1x1x32xf32> to vector<1x32xf32>
    %cst_238 = arith.constant dense<0.000000e+00> : vector<1x96xf32>
    %794 = tpu.matmul %711, %55, %cst_238 {dimension_numbers = #tpu.dot_dimension_numbers<[1], [0], [0], [1], [0, 0, 1, 1], [], []>} : vector<1x32xf32>, vector<32x96xf32>, vector<1x96xf32> -> vector<1x96xf32>
    %795 = arith.addf %794, %57 : vector<1x96xf32>
    %796 = vector.extract_strided_slice %795 {offsets = [0, 0], sizes = [1, 32], strides = [1, 1]} : vector<1x96xf32> to vector<1x32xf32>
    %797 = arith.addf %789, %796 : vector<1x32xf32>
    %cst_239 = arith.constant 0.000000e+00 : f32
    %798 = vector.broadcast %cst_239 : f32 to vector<1x32xf32>
    %799 = arith.subf %798, %797 : vector<1x32xf32>
    %800 = math.exp %799 : vector<1x32xf32>
    %cst_240 = arith.constant 1.000000e+00 : f32
    %801 = vector.broadcast %cst_240 : f32 to vector<1x32xf32>
    %802 = arith.addf %801, %800 : vector<1x32xf32>
    %cst_241 = arith.constant 1.000000e+00 : f32
    %803 = vector.broadcast %cst_241 : f32 to vector<1x32xf32>
    %804 = arith.divf %803, %802 : vector<1x32xf32>
    %805 = vector.extract_strided_slice %795 {offsets = [0, 32], sizes = [1, 32], strides = [1, 1]} : vector<1x96xf32> to vector<1x32xf32>
    %806 = arith.addf %791, %805 : vector<1x32xf32>
    %cst_242 = arith.constant 0.000000e+00 : f32
    %807 = vector.broadcast %cst_242 : f32 to vector<1x32xf32>
    %808 = arith.subf %807, %806 : vector<1x32xf32>
    %809 = math.exp %808 : vector<1x32xf32>
    %cst_243 = arith.constant 1.000000e+00 : f32
    %810 = vector.broadcast %cst_243 : f32 to vector<1x32xf32>
    %811 = arith.addf %810, %809 : vector<1x32xf32>
    %cst_244 = arith.constant 1.000000e+00 : f32
    %812 = vector.broadcast %cst_244 : f32 to vector<1x32xf32>
    %813 = arith.divf %812, %811 : vector<1x32xf32>
    %814 = vector.extract_strided_slice %795 {offsets = [0, 64], sizes = [1, 32], strides = [1, 1]} : vector<1x96xf32> to vector<1x32xf32>
    %815 = arith.mulf %804, %814 : vector<1x32xf32>
    %816 = arith.addf %793, %815 : vector<1x32xf32>
    %817 = math.tanh %816 : vector<1x32xf32>
    %cst_245 = arith.constant 1.000000e+00 : f32
    %818 = vector.broadcast %cst_245 : f32 to vector<1x32xf32>
    %819 = arith.subf %818, %813 : vector<1x32xf32>
    %820 = arith.mulf %819, %817 : vector<1x32xf32>
    %821 = arith.mulf %813, %711 : vector<1x32xf32>
    %822 = arith.addf %820, %821 : vector<1x32xf32>
    %823 = vector.extract_strided_slice %45 {offsets = [6, 0, 0], sizes = [1, 1, 32], strides = [1, 1, 1]} : vector<8x1x32xf32> to vector<1x1x32xf32>
    %824 = vector.shape_cast %823 : vector<1x1x32xf32> to vector<1x32xf32>
    %825 = vector.extract_strided_slice %47 {offsets = [6, 0, 0], sizes = [1, 1, 32], strides = [1, 1, 1]} : vector<8x1x32xf32> to vector<1x1x32xf32>
    %826 = vector.shape_cast %825 : vector<1x1x32xf32> to vector<1x32xf32>
    %827 = vector.extract_strided_slice %49 {offsets = [6, 0, 0], sizes = [1, 1, 32], strides = [1, 1, 1]} : vector<8x1x32xf32> to vector<1x1x32xf32>
    %828 = vector.shape_cast %827 : vector<1x1x32xf32> to vector<1x32xf32>
    %cst_246 = arith.constant dense<0.000000e+00> : vector<1x96xf32>
    %829 = tpu.matmul %746, %59, %cst_246 {dimension_numbers = #tpu.dot_dimension_numbers<[1], [0], [0], [1], [0, 0, 1, 1], [], []>} : vector<1x32xf32>, vector<32x96xf32>, vector<1x96xf32> -> vector<1x96xf32>
    %830 = arith.addf %829, %61 : vector<1x96xf32>
    %831 = vector.extract_strided_slice %830 {offsets = [0, 0], sizes = [1, 32], strides = [1, 1]} : vector<1x96xf32> to vector<1x32xf32>
    %832 = arith.addf %824, %831 : vector<1x32xf32>
    %cst_247 = arith.constant 0.000000e+00 : f32
    %833 = vector.broadcast %cst_247 : f32 to vector<1x32xf32>
    %834 = arith.subf %833, %832 : vector<1x32xf32>
    %835 = math.exp %834 : vector<1x32xf32>
    %cst_248 = arith.constant 1.000000e+00 : f32
    %836 = vector.broadcast %cst_248 : f32 to vector<1x32xf32>
    %837 = arith.addf %836, %835 : vector<1x32xf32>
    %cst_249 = arith.constant 1.000000e+00 : f32
    %838 = vector.broadcast %cst_249 : f32 to vector<1x32xf32>
    %839 = arith.divf %838, %837 : vector<1x32xf32>
    %840 = vector.extract_strided_slice %830 {offsets = [0, 32], sizes = [1, 32], strides = [1, 1]} : vector<1x96xf32> to vector<1x32xf32>
    %841 = arith.addf %826, %840 : vector<1x32xf32>
    %cst_250 = arith.constant 0.000000e+00 : f32
    %842 = vector.broadcast %cst_250 : f32 to vector<1x32xf32>
    %843 = arith.subf %842, %841 : vector<1x32xf32>
    %844 = math.exp %843 : vector<1x32xf32>
    %cst_251 = arith.constant 1.000000e+00 : f32
    %845 = vector.broadcast %cst_251 : f32 to vector<1x32xf32>
    %846 = arith.addf %845, %844 : vector<1x32xf32>
    %cst_252 = arith.constant 1.000000e+00 : f32
    %847 = vector.broadcast %cst_252 : f32 to vector<1x32xf32>
    %848 = arith.divf %847, %846 : vector<1x32xf32>
    %849 = vector.extract_strided_slice %830 {offsets = [0, 64], sizes = [1, 32], strides = [1, 1]} : vector<1x96xf32> to vector<1x32xf32>
    %850 = arith.mulf %839, %849 : vector<1x32xf32>
    %851 = arith.addf %828, %850 : vector<1x32xf32>
    %852 = math.tanh %851 : vector<1x32xf32>
    %cst_253 = arith.constant 1.000000e+00 : f32
    %853 = vector.broadcast %cst_253 : f32 to vector<1x32xf32>
    %854 = arith.subf %853, %848 : vector<1x32xf32>
    %855 = arith.mulf %854, %852 : vector<1x32xf32>
    %856 = arith.mulf %848, %746 : vector<1x32xf32>
    %857 = arith.addf %855, %856 : vector<1x32xf32>
    %c6_254 = arith.constant 6 : index
    %c0_255 = arith.constant 0 : index
    %c0_256 = arith.constant 0 : index
    %858 = vector.load %arg20[%c6_254, %c0_255, %c0_256] : memref<8x1x32xf32, #tpu.memory_space<vmem>>, vector<1x1x32xf32>
    %859 = vector.shape_cast %858 : vector<1x1x32xf32> to vector<1x32xf32>
    %860 = vector.shape_cast %787 : vector<1x32xf32> to vector<1x1x32xf32>
    tpu.vector_store %arg20[%c6_254, %c0_255, %c0_256], %860 {strides = array<i32>} : memref<8x1x32xf32, #tpu.memory_space<vmem>>, vector<1x1x32xf32>,
    %c1_257 = arith.constant 1 : index
    %c0_258 = arith.constant 0 : index
    %c0_259 = arith.constant 0 : index
    %861 = vector.load %arg21[%c1_257, %c0_258, %c0_259] : memref<8x1x32xf32, #tpu.memory_space<vmem>>, vector<1x1x32xf32>
    %862 = vector.shape_cast %861 : vector<1x1x32xf32> to vector<1x32xf32>
    %863 = vector.shape_cast %822 : vector<1x32xf32> to vector<1x1x32xf32>
    tpu.vector_store %arg21[%c1_257, %c0_258, %c0_259], %863 {strides = array<i32>} : memref<8x1x32xf32, #tpu.memory_space<vmem>>, vector<1x1x32xf32>,
    %864 = vector.extract_strided_slice %19 {offsets = [7, 0, 0], sizes = [1, 1, 32], strides = [1, 1, 1]} : vector<8x1x32xf32> to vector<1x1x32xf32>
    %865 = vector.shape_cast %864 : vector<1x1x32xf32> to vector<1x32xf32>
    %866 = vector.extract_strided_slice %21 {offsets = [7, 0, 0], sizes = [1, 1, 32], strides = [1, 1, 1]} : vector<8x1x32xf32> to vector<1x1x32xf32>
    %867 = vector.shape_cast %866 : vector<1x1x32xf32> to vector<1x32xf32>
    %868 = vector.extract_strided_slice %23 {offsets = [7, 0, 0], sizes = [1, 1, 32], strides = [1, 1, 1]} : vector<8x1x32xf32> to vector<1x1x32xf32>
    %869 = vector.shape_cast %868 : vector<1x1x32xf32> to vector<1x32xf32>
    %cst_260 = arith.constant dense<0.000000e+00> : vector<1x96xf32>
    %870 = tpu.matmul %787, %51, %cst_260 {dimension_numbers = #tpu.dot_dimension_numbers<[1], [0], [0], [1], [0, 0, 1, 1], [], []>} : vector<1x32xf32>, vector<32x96xf32>, vector<1x96xf32> -> vector<1x96xf32>
    %871 = arith.addf %870, %53 : vector<1x96xf32>
    %872 = vector.extract_strided_slice %871 {offsets = [0, 0], sizes = [1, 32], strides = [1, 1]} : vector<1x96xf32> to vector<1x32xf32>
    %873 = arith.addf %865, %872 : vector<1x32xf32>
    %cst_261 = arith.constant 0.000000e+00 : f32
    %874 = vector.broadcast %cst_261 : f32 to vector<1x32xf32>
    %875 = arith.subf %874, %873 : vector<1x32xf32>
    %876 = math.exp %875 : vector<1x32xf32>
    %cst_262 = arith.constant 1.000000e+00 : f32
    %877 = vector.broadcast %cst_262 : f32 to vector<1x32xf32>
    %878 = arith.addf %877, %876 : vector<1x32xf32>
    %cst_263 = arith.constant 1.000000e+00 : f32
    %879 = vector.broadcast %cst_263 : f32 to vector<1x32xf32>
    %880 = arith.divf %879, %878 : vector<1x32xf32>
    %881 = vector.extract_strided_slice %871 {offsets = [0, 32], sizes = [1, 32], strides = [1, 1]} : vector<1x96xf32> to vector<1x32xf32>
    %882 = arith.addf %867, %881 : vector<1x32xf32>
    %cst_264 = arith.constant 0.000000e+00 : f32
    %883 = vector.broadcast %cst_264 : f32 to vector<1x32xf32>
    %884 = arith.subf %883, %882 : vector<1x32xf32>
    %885 = math.exp %884 : vector<1x32xf32>
    %cst_265 = arith.constant 1.000000e+00 : f32
    %886 = vector.broadcast %cst_265 : f32 to vector<1x32xf32>
    %887 = arith.addf %886, %885 : vector<1x32xf32>
    %cst_266 = arith.constant 1.000000e+00 : f32
    %888 = vector.broadcast %cst_266 : f32 to vector<1x32xf32>
    %889 = arith.divf %888, %887 : vector<1x32xf32>
    %890 = vector.extract_strided_slice %871 {offsets = [0, 64], sizes = [1, 32], strides = [1, 1]} : vector<1x96xf32> to vector<1x32xf32>
    %891 = arith.mulf %880, %890 : vector<1x32xf32>
    %892 = arith.addf %869, %891 : vector<1x32xf32>
    %893 = math.tanh %892 : vector<1x32xf32>
    %cst_267 = arith.constant 1.000000e+00 : f32
    %894 = vector.broadcast %cst_267 : f32 to vector<1x32xf32>
    %895 = arith.subf %894, %889 : vector<1x32xf32>
    %896 = arith.mulf %895, %893 : vector<1x32xf32>
    %897 = arith.mulf %889, %787 : vector<1x32xf32>
    %898 = arith.addf %896, %897 : vector<1x32xf32>
    %899 = vector.extract_strided_slice %32 {offsets = [0, 0, 0], sizes = [1, 1, 32], strides = [1, 1, 1]} : vector<8x1x32xf32> to vector<1x1x32xf32>
    %900 = vector.shape_cast %899 : vector<1x1x32xf32> to vector<1x32xf32>
    %901 = vector.extract_strided_slice %34 {offsets = [0, 0, 0], sizes = [1, 1, 32], strides = [1, 1, 1]} : vector<8x1x32xf32> to vector<1x1x32xf32>
    %902 = vector.shape_cast %901 : vector<1x1x32xf32> to vector<1x32xf32>
    %903 = vector.extract_strided_slice %36 {offsets = [0, 0, 0], sizes = [1, 1, 32], strides = [1, 1, 1]} : vector<8x1x32xf32> to vector<1x1x32xf32>
    %904 = vector.shape_cast %903 : vector<1x1x32xf32> to vector<1x32xf32>
    %cst_268 = arith.constant dense<0.000000e+00> : vector<1x96xf32>
    %905 = tpu.matmul %822, %55, %cst_268 {dimension_numbers = #tpu.dot_dimension_numbers<[1], [0], [0], [1], [0, 0, 1, 1], [], []>} : vector<1x32xf32>, vector<32x96xf32>, vector<1x96xf32> -> vector<1x96xf32>
    %906 = arith.addf %905, %57 : vector<1x96xf32>
    %907 = vector.extract_strided_slice %906 {offsets = [0, 0], sizes = [1, 32], strides = [1, 1]} : vector<1x96xf32> to vector<1x32xf32>
    %908 = arith.addf %900, %907 : vector<1x32xf32>
    %cst_269 = arith.constant 0.000000e+00 : f32
    %909 = vector.broadcast %cst_269 : f32 to vector<1x32xf32>
    %910 = arith.subf %909, %908 : vector<1x32xf32>
    %911 = math.exp %910 : vector<1x32xf32>
    %cst_270 = arith.constant 1.000000e+00 : f32
    %912 = vector.broadcast %cst_270 : f32 to vector<1x32xf32>
    %913 = arith.addf %912, %911 : vector<1x32xf32>
    %cst_271 = arith.constant 1.000000e+00 : f32
    %914 = vector.broadcast %cst_271 : f32 to vector<1x32xf32>
    %915 = arith.divf %914, %913 : vector<1x32xf32>
    %916 = vector.extract_strided_slice %906 {offsets = [0, 32], sizes = [1, 32], strides = [1, 1]} : vector<1x96xf32> to vector<1x32xf32>
    %917 = arith.addf %902, %916 : vector<1x32xf32>
    %cst_272 = arith.constant 0.000000e+00 : f32
    %918 = vector.broadcast %cst_272 : f32 to vector<1x32xf32>
    %919 = arith.subf %918, %917 : vector<1x32xf32>
    %920 = math.exp %919 : vector<1x32xf32>
    %cst_273 = arith.constant 1.000000e+00 : f32
    %921 = vector.broadcast %cst_273 : f32 to vector<1x32xf32>
    %922 = arith.addf %921, %920 : vector<1x32xf32>
    %cst_274 = arith.constant 1.000000e+00 : f32
    %923 = vector.broadcast %cst_274 : f32 to vector<1x32xf32>
    %924 = arith.divf %923, %922 : vector<1x32xf32>
    %925 = vector.extract_strided_slice %906 {offsets = [0, 64], sizes = [1, 32], strides = [1, 1]} : vector<1x96xf32> to vector<1x32xf32>
    %926 = arith.mulf %915, %925 : vector<1x32xf32>
    %927 = arith.addf %904, %926 : vector<1x32xf32>
    %928 = math.tanh %927 : vector<1x32xf32>
    %cst_275 = arith.constant 1.000000e+00 : f32
    %929 = vector.broadcast %cst_275 : f32 to vector<1x32xf32>
    %930 = arith.subf %929, %924 : vector<1x32xf32>
    %931 = arith.mulf %930, %928 : vector<1x32xf32>
    %932 = arith.mulf %924, %822 : vector<1x32xf32>
    %933 = arith.addf %931, %932 : vector<1x32xf32>
    %934 = vector.extract_strided_slice %45 {offsets = [7, 0, 0], sizes = [1, 1, 32], strides = [1, 1, 1]} : vector<8x1x32xf32> to vector<1x1x32xf32>
    %935 = vector.shape_cast %934 : vector<1x1x32xf32> to vector<1x32xf32>
    %936 = vector.extract_strided_slice %47 {offsets = [7, 0, 0], sizes = [1, 1, 32], strides = [1, 1, 1]} : vector<8x1x32xf32> to vector<1x1x32xf32>
    %937 = vector.shape_cast %936 : vector<1x1x32xf32> to vector<1x32xf32>
    %938 = vector.extract_strided_slice %49 {offsets = [7, 0, 0], sizes = [1, 1, 32], strides = [1, 1, 1]} : vector<8x1x32xf32> to vector<1x1x32xf32>
    %939 = vector.shape_cast %938 : vector<1x1x32xf32> to vector<1x32xf32>
    %cst_276 = arith.constant dense<0.000000e+00> : vector<1x96xf32>
    %940 = tpu.matmul %857, %59, %cst_276 {dimension_numbers = #tpu.dot_dimension_numbers<[1], [0], [0], [1], [0, 0, 1, 1], [], []>} : vector<1x32xf32>, vector<32x96xf32>, vector<1x96xf32> -> vector<1x96xf32>
    %941 = arith.addf %940, %61 : vector<1x96xf32>
    %942 = vector.extract_strided_slice %941 {offsets = [0, 0], sizes = [1, 32], strides = [1, 1]} : vector<1x96xf32> to vector<1x32xf32>
    %943 = arith.addf %935, %942 : vector<1x32xf32>
    %cst_277 = arith.constant 0.000000e+00 : f32
    %944 = vector.broadcast %cst_277 : f32 to vector<1x32xf32>
    %945 = arith.subf %944, %943 : vector<1x32xf32>
    %946 = math.exp %945 : vector<1x32xf32>
    %cst_278 = arith.constant 1.000000e+00 : f32
    %947 = vector.broadcast %cst_278 : f32 to vector<1x32xf32>
    %948 = arith.addf %947, %946 : vector<1x32xf32>
    %cst_279 = arith.constant 1.000000e+00 : f32
    %949 = vector.broadcast %cst_279 : f32 to vector<1x32xf32>
    %950 = arith.divf %949, %948 : vector<1x32xf32>
    %951 = vector.extract_strided_slice %941 {offsets = [0, 32], sizes = [1, 32], strides = [1, 1]} : vector<1x96xf32> to vector<1x32xf32>
    %952 = arith.addf %937, %951 : vector<1x32xf32>
    %cst_280 = arith.constant 0.000000e+00 : f32
    %953 = vector.broadcast %cst_280 : f32 to vector<1x32xf32>
    %954 = arith.subf %953, %952 : vector<1x32xf32>
    %955 = math.exp %954 : vector<1x32xf32>
    %cst_281 = arith.constant 1.000000e+00 : f32
    %956 = vector.broadcast %cst_281 : f32 to vector<1x32xf32>
    %957 = arith.addf %956, %955 : vector<1x32xf32>
    %cst_282 = arith.constant 1.000000e+00 : f32
    %958 = vector.broadcast %cst_282 : f32 to vector<1x32xf32>
    %959 = arith.divf %958, %957 : vector<1x32xf32>
    %960 = vector.extract_strided_slice %941 {offsets = [0, 64], sizes = [1, 32], strides = [1, 1]} : vector<1x96xf32> to vector<1x32xf32>
    %961 = arith.mulf %950, %960 : vector<1x32xf32>
    %962 = arith.addf %939, %961 : vector<1x32xf32>
    %963 = math.tanh %962 : vector<1x32xf32>
    %cst_283 = arith.constant 1.000000e+00 : f32
    %964 = vector.broadcast %cst_283 : f32 to vector<1x32xf32>
    %965 = arith.subf %964, %959 : vector<1x32xf32>
    %966 = arith.mulf %965, %963 : vector<1x32xf32>
    %967 = arith.mulf %959, %857 : vector<1x32xf32>
    %968 = arith.addf %966, %967 : vector<1x32xf32>
    %c7_284 = arith.constant 7 : index
    %c0_285 = arith.constant 0 : index
    %c0_286 = arith.constant 0 : index
    %969 = vector.load %arg20[%c7_284, %c0_285, %c0_286] : memref<8x1x32xf32, #tpu.memory_space<vmem>>, vector<1x1x32xf32>
    %970 = vector.shape_cast %969 : vector<1x1x32xf32> to vector<1x32xf32>
    %971 = vector.shape_cast %898 : vector<1x32xf32> to vector<1x1x32xf32>
    tpu.vector_store %arg20[%c7_284, %c0_285, %c0_286], %971 {strides = array<i32>} : memref<8x1x32xf32, #tpu.memory_space<vmem>>, vector<1x1x32xf32>,
    %c0_287 = arith.constant 0 : index
    %c0_288 = arith.constant 0 : index
    %c0_289 = arith.constant 0 : index
    %972 = vector.load %arg21[%c0_287, %c0_288, %c0_289] : memref<8x1x32xf32, #tpu.memory_space<vmem>>, vector<1x1x32xf32>
    %973 = vector.shape_cast %972 : vector<1x1x32xf32> to vector<1x32xf32>
    %974 = vector.shape_cast %933 : vector<1x32xf32> to vector<1x1x32xf32>
    tpu.vector_store %arg21[%c0_287, %c0_288, %c0_289], %974 {strides = array<i32>} : memref<8x1x32xf32, #tpu.memory_space<vmem>>, vector<1x1x32xf32>,
    %c0_290 = arith.constant 0 : index
    %c0_291 = arith.constant 0 : index
    %c0_292 = arith.constant 0 : index
    %975 = vector.load %arg20[%c0_290, %c0_291, %c0_292] : memref<8x1x32xf32, #tpu.memory_space<vmem>>, vector<8x1x32xf32>
    %c0_293 = arith.constant 0 : index
    %c0_294 = arith.constant 0 : index
    %c0_295 = arith.constant 0 : index
    %976 = vector.load %arg21[%c0_293, %c0_294, %c0_295] : memref<8x1x32xf32, #tpu.memory_space<vmem>>, vector<8x1x32xf32>
    %c0_296 = arith.constant 0 : index
    %c0_297 = arith.constant 0 : index
    %c0_298 = arith.constant 0 : index
    %977 = vector.load %arg11[%c0_296, %c0_297, %c0_298] : memref<2x32x64xf32, #tpu.memory_space<vmem>>, vector<1x32x64xf32>
    %978 = vector.shape_cast %977 : vector<1x32x64xf32> to vector<32x64xf32>
    %cst_299 = arith.constant dense<0.000000e+00> : vector<1x64xf32>
    %979 = tpu.matmul %968, %978, %cst_299 {dimension_numbers = #tpu.dot_dimension_numbers<[1], [0], [0], [1], [0, 0, 1, 1], [], []>} : vector<1x32xf32>, vector<32x64xf32>, vector<1x64xf32> -> vector<1x64xf32>
    %c1_300 = arith.constant 1 : index
    %c0_301 = arith.constant 0 : index
    %c0_302 = arith.constant 0 : index
    %980 = vector.load %arg11[%c1_300, %c0_301, %c0_302] : memref<2x32x64xf32, #tpu.memory_space<vmem>>, vector<1x32x64xf32>
    %981 = vector.shape_cast %980 : vector<1x32x64xf32> to vector<32x64xf32>
    %cst_303 = arith.constant dense<0.000000e+00> : vector<1x64xf32>
    %982 = tpu.matmul %98, %981, %cst_303 {dimension_numbers = #tpu.dot_dimension_numbers<[1], [0], [0], [1], [0, 0, 1, 1], [], []>} : vector<1x32xf32>, vector<32x64xf32>, vector<1x64xf32> -> vector<1x64xf32>
    %983 = arith.addf %979, %982 : vector<1x64xf32>
    %c0_304 = arith.constant 0 : index
    %c0_305 = arith.constant 0 : index
    %984 = vector.load %arg12[%c0_304, %c0_305] : memref<1x64xf32, #tpu.memory_space<vmem>>, vector<1x64xf32>
    %985 = arith.addf %983, %984 : vector<1x64xf32>
    %986 = vector.shape_cast %975 : vector<8x1x32xf32> to vector<8x32xf32>
    %c0_306 = arith.constant 0 : index
    %c0_307 = arith.constant 0 : index
    %c0_308 = arith.constant 0 : index
    %987 = vector.load %arg13[%c0_306, %c0_307, %c0_308] : memref<2x32x64xf32, #tpu.memory_space<vmem>>, vector<1x32x64xf32>
    %988 = vector.shape_cast %987 : vector<1x32x64xf32> to vector<32x64xf32>
    %cst_309 = arith.constant dense<0.000000e+00> : vector<8x64xf32>
    %989 = tpu.matmul %986, %988, %cst_309 {dimension_numbers = #tpu.dot_dimension_numbers<[1], [0], [0], [1], [0, 0, 1, 1], [], []>} : vector<8x32xf32>, vector<32x64xf32>, vector<8x64xf32> -> vector<8x64xf32>
    %990 = vector.shape_cast %976 : vector<8x1x32xf32> to vector<8x32xf32>
    %c1_310 = arith.constant 1 : index
    %c0_311 = arith.constant 0 : index
    %c0_312 = arith.constant 0 : index
    %991 = vector.load %arg13[%c1_310, %c0_311, %c0_312] : memref<2x32x64xf32, #tpu.memory_space<vmem>>, vector<1x32x64xf32>
    %992 = vector.shape_cast %991 : vector<1x32x64xf32> to vector<32x64xf32>
    %cst_313 = arith.constant dense<0.000000e+00> : vector<8x64xf32>
    %993 = tpu.matmul %990, %992, %cst_313 {dimension_numbers = #tpu.dot_dimension_numbers<[1], [0], [0], [1], [0, 0, 1, 1], [], []>} : vector<8x32xf32>, vector<32x64xf32>, vector<8x64xf32> -> vector<8x64xf32>
    %994 = arith.addf %989, %993 : vector<8x64xf32>
    %c0_314 = arith.constant 0 : index
    %c0_315 = arith.constant 0 : index
    %995 = vector.load %arg14[%c0_314, %c0_315] : memref<1x64xf32, #tpu.memory_space<vmem>>, vector<1x64xf32>
    %996 = vector.broadcast %995 : vector<1x64xf32> to vector<8x64xf32>
    %997 = arith.addf %994, %996 : vector<8x64xf32>
    %998 = vector.shape_cast %997 : vector<8x64xf32> to vector<8x1x64xf32>
    %999 = vector.shape_cast %985 : vector<1x64xf32> to vector<1x1x64xf32>
    %1000 = vector.broadcast %999 : vector<1x1x64xf32> to vector<8x1x64xf32>
    %1001 = arith.addf %1000, %998 : vector<8x1x64xf32>
    %1002 = math.tanh %1001 : vector<8x1x64xf32>
    %c0_316 = arith.constant 0 : index
    %c0_317 = arith.constant 0 : index
    %1003 = vector.load %arg15[%c0_316, %c0_317] : memref<1x64xf32, #tpu.memory_space<vmem>>, vector<1x64xf32>
    %1004 = vector.shape_cast %1003 : vector<1x64xf32> to vector<1x1x64xf32>
    %1005 = vector.broadcast %1004 : vector<1x1x64xf32> to vector<8x1x64xf32>
    %1006 = arith.mulf %1002, %1005 : vector<8x1x64xf32>
    %cst_318 = arith.constant dense<0.000000e+00> : vector<8x1xf32>
    %1007 = vector.multi_reduction <add>, %1006, %cst_318 [2] : vector<8x1x64xf32> to vector<8x1xf32>
    %1008 = vector.shape_cast %1007 : vector<8x1xf32> to vector<8x1x1xf32>
    %c0_319 = arith.constant 0 : index
    %c0_320 = arith.constant 0 : index
    %1009 = vector.load %arg16[%c0_319, %c0_320] : memref<1x1xf32, #tpu.memory_space<vmem>>, vector<1x1xf32>
    %1010 = vector.shape_cast %1009 : vector<1x1xf32> to vector<1x1x1xf32>
    %1011 = vector.broadcast %1010 : vector<1x1x1xf32> to vector<8x1x1xf32>
    %1012 = arith.addf %1008, %1011 : vector<8x1x1xf32>
    %cst_321 = arith.constant dense<0xFF800000> : vector<1x1xf32>
    %1013 = vector.multi_reduction <maximumf>, %1012, %cst_321 [0] : vector<8x1x1xf32> to vector<1x1xf32>
    %1014 = vector.shape_cast %1013 : vector<1x1xf32> to vector<1x1x1xf32>
    %1015 = vector.broadcast %1014 : vector<1x1x1xf32> to vector<8x1x1xf32>
    %1016 = arith.subf %1012, %1015 : vector<8x1x1xf32>
    %1017 = math.exp %1016 : vector<8x1x1xf32>
    %cst_322 = arith.constant dense<0.000000e+00> : vector<1x1xf32>
    %1018 = vector.multi_reduction <add>, %1017, %cst_322 [0] : vector<8x1x1xf32> to vector<1x1xf32>
    %1019 = vector.shape_cast %1018 : vector<1x1xf32> to vector<1x1x1xf32>
    %1020 = tpu.reciprocal %1019 {approx = true} : vector<1x1x1xf32> -> vector<1x1x1xf32>
    %1021 = vector.broadcast %1020 : vector<1x1x1xf32> to vector<8x1x1xf32>
    %1022 = arith.mulf %1017, %1021 : vector<8x1x1xf32>
    %1023 = vector.broadcast %1022 : vector<8x1x1xf32> to vector<8x1x32xf32>
    %1024 = arith.mulf %1023, %975 : vector<8x1x32xf32>
    %cst_323 = arith.constant dense<0.000000e+00> : vector<1x32xf32>
    %1025 = vector.multi_reduction <add>, %1024, %cst_323 [0] : vector<8x1x32xf32> to vector<1x32xf32>
    %1026 = vector.broadcast %1022 : vector<8x1x1xf32> to vector<8x1x32xf32>
    %1027 = arith.mulf %1026, %976 : vector<8x1x32xf32>
    %cst_324 = arith.constant dense<0.000000e+00> : vector<1x32xf32>
    %1028 = vector.multi_reduction <add>, %1027, %cst_324 [0] : vector<8x1x32xf32> to vector<1x32xf32>
    %c0_325 = arith.constant 0 : index
    %c0_326 = arith.constant 0 : index
    %c0_327 = arith.constant 0 : index
    %1029 = vector.load %arg17[%c0_325, %c0_326, %c0_327] : memref<2x32x4xf32, #tpu.memory_space<vmem>>, vector<1x32x4xf32>
    %1030 = vector.shape_cast %1029 : vector<1x32x4xf32> to vector<32x4xf32>
    %cst_328 = arith.constant dense<0.000000e+00> : vector<1x4xf32>
    %1031 = tpu.matmul %1025, %1030, %cst_328 {dimension_numbers = #tpu.dot_dimension_numbers<[1], [0], [0], [1], [0, 0, 1, 1], [], []>} : vector<1x32xf32>, vector<32x4xf32>, vector<1x4xf32> -> vector<1x4xf32>
    %c1_329 = arith.constant 1 : index
    %c0_330 = arith.constant 0 : index
    %c0_331 = arith.constant 0 : index
    %1032 = vector.load %arg17[%c1_329, %c0_330, %c0_331] : memref<2x32x4xf32, #tpu.memory_space<vmem>>, vector<1x32x4xf32>
    %1033 = vector.shape_cast %1032 : vector<1x32x4xf32> to vector<32x4xf32>
    %cst_332 = arith.constant dense<0.000000e+00> : vector<1x4xf32>
    %1034 = tpu.matmul %1028, %1033, %cst_332 {dimension_numbers = #tpu.dot_dimension_numbers<[1], [0], [0], [1], [0, 0, 1, 1], [], []>} : vector<1x32xf32>, vector<32x4xf32>, vector<1x4xf32> -> vector<1x4xf32>
    %1035 = arith.addf %1031, %1034 : vector<1x4xf32>
    %c0_333 = arith.constant 0 : index
    %c0_334 = arith.constant 0 : index
    %1036 = vector.load %arg18[%c0_333, %c0_334] : memref<1x4xf32, #tpu.memory_space<vmem>>, vector<1x4xf32>
    %1037 = arith.addf %1035, %1036 : vector<1x4xf32>
    %1038 = vector.shape_cast %1037 : vector<1x4xf32> to vector<1x1x4xf32>
    %c0_335 = arith.constant 0 : index
    %c0_336 = arith.constant 0 : index
    %c0_337 = arith.constant 0 : index
    %1039 = vector.load %arg19[%c0_335, %c0_336, %c0_337] : memref<1x1x4xf32, #tpu.memory_space<vmem>>, vector<1x1x4xf32>
    tpu.vector_store %arg19[%c0_335, %c0_336, %c0_337], %1038 {strides = array<i32>} : memref<1x1x4xf32, #tpu.memory_space<vmem>>, vector<1x1x4xf32>,
    return
  }
  func.func @transform_0(%arg0: i32) -> (i32, i32, i32) {
    %c0_i32 = arith.constant 0 : i32
    %c0_i32_0 = arith.constant 0 : i32
    %c0_i32_1 = arith.constant 0 : i32
    return %arg0, %c0_i32, %c0_i32_0 : i32, i32, i32
  }
  func.func @transform_1(%arg0: i32) -> (i32, i32) {
    %c0_i32 = arith.constant 0 : i32
    %c0_i32_0 = arith.constant 0 : i32
    %c0_i32_1 = arith.constant 0 : i32
    return %c0_i32, %c0_i32_0 : i32, i32
  }
  func.func @transform_2(%arg0: i32) -> (i32, i32, i32) {
    %c0_i32 = arith.constant 0 : i32
    %c0_i32_0 = arith.constant 0 : i32
    %c0_i32_1 = arith.constant 0 : i32
    %c0_i32_2 = arith.constant 0 : i32
    return %c0_i32, %c0_i32_0, %c0_i32_1 : i32, i32, i32
  }
  func.func @transform_3(%arg0: i32) -> (i32, i32, i32) {
    %c0_i32 = arith.constant 0 : i32
    %c0_i32_0 = arith.constant 0 : i32
    %c0_i32_1 = arith.constant 0 : i32
    %c0_i32_2 = arith.constant 0 : i32
    return %c0_i32, %c0_i32_0, %c0_i32_1 : i32, i32, i32
  }
  func.func @transform_4(%arg0: i32) -> (i32, i32, i32) {
    %c0_i32 = arith.constant 0 : i32
    %c0_i32_0 = arith.constant 0 : i32
    %c0_i32_1 = arith.constant 0 : i32
    %c0_i32_2 = arith.constant 0 : i32
    return %c0_i32, %c0_i32_0, %c0_i32_1 : i32, i32, i32
  }
  func.func @transform_5(%arg0: i32) -> (i32, i32, i32) {
    %c0_i32 = arith.constant 0 : i32
    %c0_i32_0 = arith.constant 0 : i32
    %c0_i32_1 = arith.constant 0 : i32
    %c0_i32_2 = arith.constant 0 : i32
    return %c0_i32, %c0_i32_0, %c0_i32_1 : i32, i32, i32
  }
  func.func @transform_6(%arg0: i32) -> (i32, i32, i32) {
    %c0_i32 = arith.constant 0 : i32
    %c0_i32_0 = arith.constant 0 : i32
    %c0_i32_1 = arith.constant 0 : i32
    %c0_i32_2 = arith.constant 0 : i32
    return %c0_i32, %c0_i32_0, %c0_i32_1 : i32, i32, i32
  }
  func.func @transform_7(%arg0: i32) -> (i32, i32, i32) {
    %c0_i32 = arith.constant 0 : i32
    %c0_i32_0 = arith.constant 0 : i32
    %c0_i32_1 = arith.constant 0 : i32
    %c0_i32_2 = arith.constant 0 : i32
    return %c0_i32, %c0_i32_0, %c0_i32_1 : i32, i32, i32
  }
  func.func @transform_8(%arg0: i32) -> (i32, i32, i32) {
    %c0_i32 = arith.constant 0 : i32
    %c0_i32_0 = arith.constant 0 : i32
    %c0_i32_1 = arith.constant 0 : i32
    %c0_i32_2 = arith.constant 0 : i32
    return %c0_i32, %c0_i32_0, %c0_i32_1 : i32, i32, i32
  }
  func.func @transform_9(%arg0: i32) -> (i32, i32, i32) {
    %c0_i32 = arith.constant 0 : i32
    %c0_i32_0 = arith.constant 0 : i32
    %c0_i32_1 = arith.constant 0 : i32
    %c0_i32_2 = arith.constant 0 : i32
    return %c0_i32, %c0_i32_0, %c0_i32_1 : i32, i32, i32
  }
  func.func @transform_10(%arg0: i32) -> (i32, i32, i32) {
    %c0_i32 = arith.constant 0 : i32
    %c0_i32_0 = arith.constant 0 : i32
    %c0_i32_1 = arith.constant 0 : i32
    %c0_i32_2 = arith.constant 0 : i32
    return %c0_i32, %c0_i32_0, %c0_i32_1 : i32, i32, i32
  }
  func.func @transform_11(%arg0: i32) -> (i32, i32) {
    %c0_i32 = arith.constant 0 : i32
    %c0_i32_0 = arith.constant 0 : i32
    %c0_i32_1 = arith.constant 0 : i32
    return %c0_i32, %c0_i32_0 : i32, i32
  }
  func.func @transform_12(%arg0: i32) -> (i32, i32, i32) {
    %c0_i32 = arith.constant 0 : i32
    %c0_i32_0 = arith.constant 0 : i32
    %c0_i32_1 = arith.constant 0 : i32
    %c0_i32_2 = arith.constant 0 : i32
    return %c0_i32, %c0_i32_0, %c0_i32_1 : i32, i32, i32
  }
  func.func @transform_13(%arg0: i32) -> (i32, i32) {
    %c0_i32 = arith.constant 0 : i32
    %c0_i32_0 = arith.constant 0 : i32
    %c0_i32_1 = arith.constant 0 : i32
    return %c0_i32, %c0_i32_0 : i32, i32
  }
  func.func @transform_14(%arg0: i32) -> (i32, i32) {
    %c0_i32 = arith.constant 0 : i32
    %c0_i32_0 = arith.constant 0 : i32
    %c0_i32_1 = arith.constant 0 : i32
    return %c0_i32, %c0_i32_0 : i32, i32
  }
  func.func @transform_15(%arg0: i32) -> (i32, i32) {
    %c0_i32 = arith.constant 0 : i32
    %c0_i32_0 = arith.constant 0 : i32
    %c0_i32_1 = arith.constant 0 : i32
    return %c0_i32, %c0_i32_0 : i32, i32
  }
  func.func @transform_16(%arg0: i32) -> (i32, i32, i32) {
    %c0_i32 = arith.constant 0 : i32
    %c0_i32_0 = arith.constant 0 : i32
    %c0_i32_1 = arith.constant 0 : i32
    %c0_i32_2 = arith.constant 0 : i32
    return %c0_i32, %c0_i32_0, %c0_i32_1 : i32, i32, i32
  }
  func.func @transform_17(%arg0: i32) -> (i32, i32) {
    %c0_i32 = arith.constant 0 : i32
    %c0_i32_0 = arith.constant 0 : i32
    %c0_i32_1 = arith.constant 0 : i32
    return %c0_i32, %c0_i32_0 : i32, i32
  }
  func.func @transform_18(%arg0: i32) -> (i32, i32, i32) {
    %c0_i32 = arith.constant 0 : i32
    %c0_i32_0 = arith.constant 0 : i32
    %c0_i32_1 = arith.constant 0 : i32
    return %arg0, %c0_i32, %c0_i32_0 : i32, i32, i32
  }
}

</mosaic_0001>

<bundles_post_ra>
// kernel: base_model_forward.1
= control target key start
LH: loop header
LB: loop body
LE: loop exit
PB: predicated region body
PF: predicated region fallthrough
CT: control target
= control target key end

     0   :  { %s6847_s0 = inlined_call_operand.vmem [shape: s32[2,16,1], index: 0, kind: input, shape index: {}]   ;;  %s6848_s1 = inlined_call_operand.vmem [shape: f32[50,32], index: 1, kind: input, shape index: {}]   ;;  %s6849_s2 = inlined_call_operand.vmem [shape: f32[2,32,96], index: 2, kind: input, shape index: {}]   ;;  %s6850_s3 = inlined_call_operand.vmem [shape: f32[2,32,96], index: 3, kind: input, shape index: {}]   ;;  %s6851_s4 = inlined_call_operand.vmem [shape: f32[2,1,96], index: 4, kind: input, shape index: {}]   ;;  %s6852_s5 = inlined_call_operand.vmem [shape: f32[2,1,96], index: 5, kind: input, shape index: {}]   ;;  %s6853_s6 = inlined_call_operand.vmem [shape: f32[2,32,96], index: 6, kind: input, shape index: {}]   ;;  %s6854_s7 = inlined_call_operand.hbm [shape: f32[2,32,96], index: 7, kind: input, shape index: {}]   ;;  %s6855_s8 = inlined_call_operand.vmem [shape: f32[2,1,96], index: 8, kind: input, shape index: {}]   ;;  %s6856_s9 = inlined_call_operand.vmem [shape: f32[2,1,96], index: 9, kind: input, shape index: {}]   ;;  %s6857_s10 = inlined_call_operand.hbm [shape: f32[2,32,64], index: 10, kind: input, shape index: {}]   ;;  %s6858_s11 = inlined_call_operand.vmem [shape: f32[1,64], index: 11, kind: input, shape index: {}]   ;;  %s6859_s12 = inlined_call_operand.hbm [shape: f32[2,32,64], index: 12, kind: input, shape index: {}]   ;;  %s6860_s13 = inlined_call_operand.vmem [shape: f32[1,64], index: 13, kind: input, shape index: {}]   ;;  %s6861_s14 = inlined_call_operand.vmem [shape: f32[1,64], index: 14, kind: input, shape index: {}]   ;;  %s6862_s15 = inlined_call_operand.<no memory space> [shape: f32[1,1], index: 15, kind: input, shape index: {}]   ;;  %s6863_s16 = inlined_call_operand.vmem [shape: f32[2,32,4], index: 16, kind: input, shape index: {}]   ;;  %s6864_s17 = inlined_call_operand.vmem [shape: f32[1,4], index: 17, kind: input, shape index: {}]   ;;  %s6865_s18 = inlined_call_operand.hbm [shape: f32[2,1,4], index: 18, kind: output, shape index: {}]  }
   0x1   :  { %6881 = sst [smem:[#allocation23_spill]] %s6847_s0  ;;  %v23_v0 = vstv %s6862_s15 }
   0x2   :  { %6882 = sst [smem:[#allocation24_spill]] %s6848_s1  ;;  %24 = vst [vmem:[#allocation4] sm:$0x1] %v23_v0 }
   0x3   :  { %6883 = sst [smem:[#allocation25_spill]] %s6849_s2 }
   0x4   :  { %6884 = sst [smem:[#allocation26_spill]] %s6864_s17 }
   0x5   :  { %6885 = sst [smem:[#allocation27_spill]] %s6865_s18 }
   0x6   :  { %25 = vsyncpa [#allocation6], 0 }
   0x7   :  { %26 = vsyncpa [#allocation9], 0 }
   0x8   :  { %27 = vsyncpa [#allocation7], 0 }
   0x9   :  { %29 = vsyncpa [#allocation7 + $0x1], 0  ;;  %s5804_s29 = smov 0   ;;  %s5806_s30 = smov 0  }
   0xa   :  { %s5808_s0 = smov 0   ;;  %s5810_s19 = smov 0  }
   0xb LB: > { %6886 = sst [smem:[#allocation15_spill]] %s5679_s29  ;;  %s5825_s15 = sadd.s32 4294967295, %s5691_s19   ;;  %s5691_s19 = sphi %s5810_s19, %s6916_s19   ;;  %s5687_s0 = sphi %s5808_s0, %s6919_s0   ;;  %s5683_s30 = sphi %s5806_s30, %s6918_s30   ;;  %s5679_s29 = sphi %s5804_s29, %s6917_s29  }
   0xc   : > { %6887 = sst [smem:[#allocation16_spill]] %s5683_s30  ;;  %s4477_s1 = sadd.s32 4294967294, %s5691_s19  }
   0xd   : > { %6888 = sst [smem:[#allocation17_spill]] %s5687_s0  ;;  %s5829_s20 = sadd.s32 1, %s5691_s19  }
   0xe   : > { %6889 = sst [smem:[#allocation18_spill]] %s5691_s19  ;;  %s425_s21 = sadd.s32 1, %s5687_s0 }
   0xf   : > { %6890 = sst [smem:[#allocation19_spill]] %s5829_s20  ;;  %s422_s22 = ssub.s32 %s5691_s19, %s5829_s20 }
  0x10   : > { %p435_p0 = scmp.ne.s32.totalorder %s5687_s0, %s5683_s30  ;;  %p423_p1 = scmp.eq.s32.totalorder %s422_s22, 0 }
  0x11   : > { %p436_p2 = scmp.eq.s32.totalorder %s5825_s15, 1  ;;  %p441_p3 = scmp.ne.s32.totalorder %s5683_s30, %s5679_s29 }
  0x12   : > { %p442_p4 = scmp.eq.s32.totalorder %s4477_s1, 1  ;;  %p4478_p7 = scmp.ge.s32.totalorder %s5691_s19, 1 }
  0x13   : > { %s5840_s2 = scalar_select %p423_p1, %s5687_s0, %s425_s21  }
  0x14   : > { %p5842_p5 = por %p436_p2, %p435_p0  ;;  %p5846_p6 = por %p442_p4, %p441_p3 }
  0x15   : > { %6891 = sst [smem:[#allocation20_spill]] %s5840_s2  ;;  %p449_p8 = scmp.lt.s32.totalorder %s5691_s19, 3 }
  0x16   : > { %s6892_s23 = scalar_select %p5842_p5, 1, 0 }
  0x17   : > { %s6894_s24 = scalar_select %p5846_p6, 1, 0 }
  0x18   : > { %6893 = sst [smem:[#allocation21_spill]] %s6892_s23  ;;  %p6874_p9 = scmp.eq.s32.totalorder %s5825_s15, 0 }
  0x19   : > { %6895 = sst [smem:[#allocation22_spill]] %s6894_s24  ;;  %p5853_p10 = pnand %p4478_p7, %p449_p8 }
  0x1a   : > { %s5693_s26 = smov [#allocation8]   ;;  %s5694_s1 = smov [#allocation5]  }
  0x1b   : > { %s6896_s25 = scalar_select %p5853_p10, 1, 0 }
  0x1c   : > { %p5283_p11 = pneg %p5853_p10  ;;  %s498_s27 = sshll.u32 %s5693_s26, 4  ;;  %s5859_s27 = int_to_ptr.vmem [resolvable:$true] %s498_s27 }
  0x1d   : > { %s479_s21 = sshll.u32 %s5694_s1, 4  ;;  %s5695_s22 = smov [#allocation10]   ;;  %s5867_s21 = int_to_ptr.vmem [resolvable:$true] %s479_s21 }
  0x1e   : > { %p5863_p12 = pnand %p6874_p9, %p5283_p11  ;;  %s5869_s2 = sshll.u32 %s5695_s22, 4  ;;  %s515_s2 = int_to_ptr.vmem [resolvable:$true] %s5869_s2 }
  0x1f   : > { %s5537_s24 = scalar_lea.hbm %s6857_s10, 1024 }
  0x20   : > { %p5538_p13 = scmp.ne.s32.totalorder %s6857_s10, %s5537_s24  ;;  %p5879_p0 = pneg %p5863_p12 }
  0x21   : > { %p5544_p3 = scmp.lt.u32.totalorder %s5537_s24, %s6857_s10 }
  0x22   : > { %p5540_p1 = pnand %p5879_p0, %p5538_p13 }
  0x24   : > { %p5541_p2 = pneg %p5540_p1 }
  0x26   : > { %p5546_p4 = pnand %p5544_p3, %p5541_p2 }
  0x28   : > { %5549 = shalt.err (!%p5546_p4)
}
  0x29   : > { %s5550_s29 = scalar_lea.vmem %s5859_s27, 1024  ;;  %p5558_p9 = scmp.lt.s32.totalorder %s5859_s27, %s5859_s27 }
  0x2a   : > { %p5551_p7 = scmp.ne.s32.totalorder %s5859_s27, %s5550_s29  ;;  %p5559_p6 = scmp.lt.s32.totalorder %s5550_s29, %s5550_s29 }
  0x2c   : > { %p5553_p8 = pnand %p5551_p7, %p5879_p0  ;;  %p5560_p13 = por %p5559_p6, %p5558_p9 }
  0x2e   : > { %p5554_p11 = pneg %p5553_p8 }
  0x30   : > { %p5561_p1 = pnand %p5560_p13, %p5554_p11 }
  0x32   : > { %5564 = shalt.err (!%p5561_p1)
}
  0x33   : > { %s5696_s0 = smov 128   ;;  %s5697_s20 = smov 8  }
  0x34   : > { %5289 = dma.hbm_to_vmem [thread:$0]  (!%p5863_p12), %s6857_s10, 1024, %s5859_s27, [#allocation9], %s5696_s0, %s5696_s0, %s5697_s20  }
  0x35   : > { %s5565_s29 = scalar_lea.hbm %s6854_s7, 1024 }
  0x36   : > { %p5566_p6 = scmp.ne.s32.totalorder %s6854_s7, %s5565_s29  ;;  %p5572_p3 = scmp.lt.u32.totalorder %s5565_s29, %s6854_s7 }
  0x38   : > { %p5568_p9 = pnand %p5566_p6, %p5879_p0 }
  0x3a   : > { %p5569_p2 = pneg %p5568_p9 }
  0x3c   : > { %p5574_p4 = pnand %p5572_p3, %p5569_p2 }
  0x3e   : > { %5577 = shalt.err (!%p5574_p4)
}
  0x3f   : > { %s5578_s27 = scalar_lea.vmem %s5867_s21, 1024  ;;  %p5586_p13 = scmp.lt.s32.totalorder %s5867_s21, %s5867_s21 }
  0x40   : > { %p5579_p7 = scmp.ne.s32.totalorder %s5867_s21, %s5578_s27  ;;  %p5587_p1 = scmp.lt.s32.totalorder %s5578_s27, %s5578_s27 }
  0x42   : > { %p5581_p8 = pnand %p5579_p7, %p5879_p0  ;;  %p5588_p6 = por %p5587_p1, %p5586_p13 }
  0x44   : > { %p5582_p11 = pneg %p5581_p8 }
  0x46   : > { %p5589_p9 = pnand %p5588_p6, %p5582_p11 }
  0x48   : > { %5592 = shalt.err (!%p5589_p9)
}
  0x49   : > { %5286 = dma.hbm_to_vmem [thread:$0]  (!%p5863_p12), %s6854_s7, 1024, %s5867_s21, [#allocation6], %s5696_s0, %s5696_s0, %s5697_s20  }
  0x4a   : > { %s5593_s24 = scalar_lea.hbm %s6859_s12, 1024 }
  0x4b   : > { %p5594_p2 = scmp.ne.s32.totalorder %s6859_s12, %s5593_s24  ;;  %p5600_p7 = scmp.lt.u32.totalorder %s5593_s24, %s6859_s12 }
  0x4d   : > { %p5596_p3 = pnand %p5594_p2, %p5879_p0 }
  0x4f   : > { %p5597_p4 = pneg %p5596_p3 }
  0x51   : > { %p5602_p8 = pnand %p5600_p7, %p5597_p4 }
  0x53   : > { %5605 = shalt.err (!%p5602_p8)
}
  0x54   : > { %s5606_s27 = scalar_lea.vmem %s515_s2, 1024  ;;  %p5614_p6 = scmp.lt.s32.totalorder %s515_s2, %s515_s2 }
  0x55   : > { %p5607_p11 = scmp.ne.s32.totalorder %s515_s2, %s5606_s27  ;;  %p5615_p9 = scmp.lt.s32.totalorder %s5606_s27, %s5606_s27 }
  0x57   : > { %p5609_p13 = pnand %p5607_p11, %p5879_p0  ;;  %p5616_p5 = por %p5615_p9, %p5614_p6 }
  0x59   : > { %p5610_p1 = pneg %p5609_p13 }
  0x5b   : > { %p5617_p10 = pnand %p5616_p5, %p5610_p1 }
  0x5d   : > { %5620 = shalt.err (!%p5617_p10)
}
  0x5e   : > { %5292 = dma.hbm_to_vmem [thread:$0]  (!%p5863_p12), %s6859_s12, 1024, %s515_s2, [#allocation9], %s5696_s0, %s5696_s0, %s5697_s20  }
  0x5f   : > { %p6899_p2 = scmp.ne.s32.totalorder %s6896_s25, 0 }
  0x60   : > { %p6900_p0 = scmp.eq.s32.totalorder (!%p6899_p2), %s5825_s15, 0 }
  0x61   : > { %553 = sbr.rel (%p6899_p2) target bundleno = 6794 (0x1a8a), region = 92 }
  0x68   : > { %5666 = dma.done.wait (%p6900_p0), [#allocation6], 1024   ;;  %p6901_p3 = pmov %p6900_p0 }
  0x69   : > { %p6902_p5 = pmov %p6900_p0 }
  0x6a   : > { %5668 = vsyncadd (%p6901_p3), [#allocation6], 4294966272 }
  0x6b   : > { %5670 = dma.done.wait (%p6902_p5), [#allocation9], 2048   ;;  %p6903_p10 = pmov %p6900_p0 }
  0x6c   : > { %p614_p4 = scmp.lt.s32.totalorder %s5825_s15, 1  ;;  %v5698_v1 = vmov 0   ;;  %s6904_s0 = sld [smem:[#allocation23_spill]]  ;;  %v728_v13 = vld [vmem:[%s6853_s6] sm:$0xff]  ;;  %v729_v14 = vld [vmem:[%s6853_s6 + $0x8] sm:$0xff]  ;;  %v5699_v15 = vmov 0.0|0.0   ;;  %v621_v21 = vlaneseq }
  0x6d   : > { %5672 = vsyncadd (%p6903_p10), [#allocation9], 4294965248  ;;  %5348 = vset.pattern.permute.xlu0 %v5698_v1  ;;  %5349 = vset.pattern.permute.xlu1 %v5698_v1  ;;  %s6905_s23 = sld [smem:[#allocation24_spill]]  ;;  %v5084_v16 = vpack.c.bf16 %v729_v14, %v728_v13  ;;  %v730_v17 = vld [vmem:[%s6853_s6 + $0x10] sm:$0xff]  ;;  %v731_v18 = vld [vmem:[%s6853_s6 + $0x18] sm:$0xff]  ;;  %vm649_vm0 = vcmask 1041408  }
  0x6e   : > { %s615_s19 = scalar_select %p614_p4, %s5825_s15, 1  ;;  %5083 = vmatprep.subr.bf16.mxu1 %v5699_v15  ;;  %v5087_v19 = vpack.c.bf16 %v731_v18, %v730_v17  ;;  %v622_v22 = vand.u32 127, %v621_v21  ;;  %vm642_vm1 = vcmask 408576   ;;  %v5700_v26 = vmov 0.0   ;;  %v6028_v35 = vld [vmem:[%s6856_s9] sm:$0x1] }
  0x6f   : > { %5085 = vmatpush3.bf16.msra.mxu1 %v5084_v16  ;;  %s6906_s21 = sld [smem:[#allocation25_spill]]  ;;  %vm5701_vm4 = vmmov 0   ;;  %v6023_v34 = vshrl.u32 %v621_v21, 7  ;;  %v6036_v37 = vld [vmem:[%s6852_s5] sm:$0x1]  ;;  %s5702_s22 = smov 64  }
  0x70   : > { %s4548_s2 = sshll.u32 %s615_s19, 4  ;;  %5086 = vmatprep.subr.bf16.mxu1 %v5699_v15  ;;  %4738 = vmatprep.mubr.msk.f32.mxu1 %vm5701_vm4, %v5700_v26  ;;  %v6041_v38 = vld [vmem:[%s6856_s9 + $0x1] sm:$0x1]  ;;  %v4497_v43 = vld [vmem:[%s6853_s6 + $0x28] sm:$0xff]  ;;  %vm739_vm5 = vcmask 261120   ;;  %v4498_v45 = vld [vmem:[%s6853_s6 + $0x30] sm:$0xff] }
  0x71   : > { %v6031_v36 = vsub.s32 0, %v6023_v34  ;;  %v4496_v42 = vld [vmem:[%s6853_s6 + $0x20] sm:$0xff]  ;;  %v4499_v46 = vld [vmem:[%s6853_s6 + $0x38] sm:$0xff]  ;;  %vm1196_vm6 = vcmask 253952   ;;  %vm1203_vm7 = vcmask 261127   ;;  %vm1522_vm8 = vcmask 254977  }
  0x72   : > { %s618_s20 = scalar_lea.vmem %s6904_s0, %s4548_s2  ;;  %v5090_v44 = vpack.c.bf16 %v4497_v43, %v4496_v42  ;;  %v5093_v49 = vpack.c.bf16 %v4499_v46, %v4498_v45  ;;  %v4494_v57 = vld [vmem:[%s6855_s8] ss:$0 sm:$0xff]  ;;  %v980_v45 = vld [vmem:[#allocation5] sm:$0xff]  ;;  %vm1529_vm9 = vcmask 260102   ;;  %vm1852_vm10 = vcmask 256002   ;;  %s6907_s25 = sld [smem:[#allocation16_spill]] }
  0x73   : > { %v619_v2 = vld [vmem:[%s618_s20] sm:$0xff]  ;;  %v636_v4 = vld [vmem:[%s6905_s23 + $0x8] sm:$0xff]  ;;  %v637_v5 = vld [vmem:[%s6905_s23 + $0x10] sm:$0xff]  ;;  %5088 = vmatpush3.bf16.msra.mxu1 %v5087_v19  ;;  %v1118_v39 = vrot.slane %v6028_v35, %v6031_v36  ;;  %v1175_v40 = vrot.slane %v6036_v37, %v6031_v36  ;;  %v1139_v41 = vrot.slane %v6041_v38, %v6031_v36  ;;  %vm1859_vm11 = vcmask 259077   ;;  %s6908_s30 = sld [smem:[#allocation26_spill]]  ;;  %s4545_s26 = sshll.u32 %s5825_s15, 4 }
  0x74   : > { %v635_v3 = vld [vmem:[%s6905_s23] sm:$0xff]  ;;  %624 = vperm.xlu0 %5348, %v619_v2   ;;  %v638_v6 = vld [vmem:[%s6905_s23 + $0x18] sm:$0xff]  ;;  %v620_v7 = vld [vmem:[%s618_s20 + $0x8] sm:$0xff]  ;;  %5089 = vmatprep.subr.bf16.mxu1 %v5699_v15  ;;  %s5703_s20 = smov 96   ;;  %vm2182_vm12 = vcmask 257027   ;;  %vm2189_vm13 = vcmask 258052  }
  0x75   : > { %v5071_v8 = vpack.c.bf16 %v636_v4, %v635_v3  ;;  %v5075_v9 = vpack.c.bf16 %v638_v6, %v637_v5  ;;  %v639_v10 = vld [vmem:[%s6905_s23 + $0x20] sm:$0xff]  ;;  %v640_v11 = vld [vmem:[%s6905_s23 + $0x28] sm:$0xff]  ;;  %v641_v20 = vld [vmem:[%s6905_s23 + $0x30] sm:$0x3]  ;;  %1119 = vrot.lane.b32.xlu1 %v1118_v39, %s5702_s22  ;;  %vm4035_vm14 = vcmask 516096   ;;  %vm4069_vm15 = vcmask 0  }
  0x76   : > { %v5079_v12 = vpack.c.bf16 %v640_v11, %v639_v10  ;;  %v896_v24 = vld [vmem:[%s6906_s21] sm:$0xff]  ;;  %v897_v25 = vld [vmem:[%s6906_s21 + $0x8] sm:$0xff]  ;;  %v898_v30 = vld [vmem:[%s6906_s21 + $0x10] sm:$0xff]  ;;  %s6909_s24 = sld [smem:[#allocation21_spill]]  ;;  %s6910_s27 = sld [smem:[#allocation27_spill]] }
  0x77   : > { %5072 = vmatprep.subr.bf16.mxu0 %v5071_v8  ;;  %v5096_v29 = vpack.c.bf16 %v897_v25, %v896_v24  ;;  %v899_v31 = vld [vmem:[%s6906_s21 + $0x18] sm:$0xff]  ;;  %v4506_v50 = vld [vmem:[%s6906_s21 + $0x20] sm:$0xff]  ;;  %v4507_v51 = vld [vmem:[%s6906_s21 + $0x28] sm:$0xff]  ;;  %s5705_s2 = smov [#allocation11]  }
  0x78   : > { %627 = vperm.xlu0 %5348, %v620_v7   ;;  %5074 = vmatpush3.bf16.msra.mxu0 %v5071_v8  ;;  %v5099_v33 = vpack.c.bf16 %v899_v31, %v898_v30  ;;  %v5102_v52 = vpack.c.bf16 %v4507_v51, %v4506_v50  ;;  %v4508_v53 = vld [vmem:[%s6906_s21 + $0x30] sm:$0xff]  ;;  %v4509_v54 = vld [vmem:[%s6906_s21 + $0x38] sm:$0xff]  ;;  %v4503_v58 = vld [vmem:[%s6851_s4] ss:$0 sm:$0xff]  ;;  %s612_s28 = sand.u32 1, %s6907_s25   ;;  %s5625_s25 = sshll.u32 %s5705_s2, 4  ;;  %s5626_s25 = int_to_ptr.vmem [resolvable:$false] %s5625_s25 }
  0x79   : > { %5076 = vmatprep.subr.bf16.mxu0 %v5075_v9  ;;  %1148 = vrot.lane.b32.xlu1 %v1139_v41, %s5702_s22  ;;  %v5105_v55 = vpack.c.bf16 %v4509_v54, %v4508_v53  ;;  %v4501_v4 = vld [vmem:[%s6855_s8 + $0x1] ss:$0 sm:$0xff]  ;;  %v981_v46 = vld [vmem:[#allocation5 + $0x8] sm:$0xff]  ;;  %v986_v53 = vld [vmem:[#allocation5 + $0x20] sm:$0xff]  ;;  %s613_s1 = scalar_lea.vmem [#allocation11], %s612_s28  ;;  %s4379_s19 = scalar_lea.sflag [#allocation7], %s612_s28 }
  0x7a   : > { %v987_v54 = vld [vmem:[#allocation5 + $0x28] sm:$0xff]  ;;  %s5627_s0 = scalar_lea.vmem %s5626_s25, 32 }
  0x7c   : > { %5078 = vmatpush3.bf16.msra.mxu0 %v5075_v9  ;;  %1176 = vrot.lane.b32.xlu0 %v1175_v40, %s5702_s22  ;;  %s6805_s17 = scalar_lea.hbm %s6910_s27, %s4545_s26  ;;  %p6911_p7 = scmp.ne.s32.totalorder %s6909_s24, 0 }
  0x7d   : > { %5080 = vmatprep.subr.bf16.mxu0 %v5079_v12 }
  0x80   : > { %5082 = vmatpush3.bf16.msra.mxu0 %v5079_v12 }
  0x81   : > { %4725 = vmatprep.subr.msk.mxu0 %vm649_vm0, %v641_v20 }
  0x84   : > { %4726 = vmatpush3.msk.msra.mxu0 %vm649_vm0, %v641_v20  ;;  %vm4376_vm0 = vcmask 24576  }
  0x85   : > { %5095 = vmatprep.subr.bf16.mxu0 %v5699_v15 }
  0xf3   : > { %v625_v23 = vpop.permute.xlu0 %624 }
  0xf4   : > { %vm629_vm2 = vcmp.eq.s32.totalorder %v625_v23, %v622_v22  ;;  %v1120_v23 = vpop.permute.xlu1 %1119 }
  0xf5   : > { %v4489_v27 = vsel %vm629_vm2, 1.0, %v5700_v26 }
  0xf6   : > { %4727 = vmatprep.mubr.msk.f32.mxu0 %vm642_vm1, %v4489_v27 }
  0xf7   : > { %v628_v28 = vpop.permute.xlu0 %627 }
  0xf8   : > { %vm630_vm3 = vcmp.eq.s32.totalorder %v628_v28, %v622_v22  ;;  %v1149_v30 = vpop.permute.xlu1 %1148 }
  0xf9   : > { %v4490_v32 = vsel %vm630_vm3, 1.0, %v5700_v26 }
  0xfa   : > { %4728 = vmatmul.mubr.msk.f32.vlgmr.msra.gmra.mrb[0].mxu0 %vm642_vm1, %v4490_v32 }
  0xfb   : > { %5097 = vmatpush3.bf16.msra.mxu0 %v5096_v29  ;;  %4760 = vmatprep.mubr.msk.f32.mxu0 %vm5701_vm4, %v5700_v26  ;;  %v1177_v28 = vpop.permute.xlu0 %1176 }
  0xfc   : > { %5098 = vmatprep.subr.bf16.mxu0 %v5699_v15 }
  0xff   : > { %5100 = vmatpush3.bf16.msra.mxu0 %v5099_v33 }
 0x100   : > { %5107 = vmatprep.subr.bf16.mxu0 %v5699_v15 }
 0x1cd   : > { %v4729_v47 = vpop.f32.mrb[0].mxu0 }
 0x1ce   : > { %v719_v48 = vpop.f32.mrb[1].mxu0  ;;  %4739 = vmatmul.mubr.msk.f32.vlgmr.msra.gmra.mrb[0].mxu1 %vm739_vm5, %v4729_v47 }
 0x1cf   : > { %5091 = vmatpush3.bf16.msra.mxu1 %v5090_v44  ;;  %4761 = vmatmul.mubr.msk.f32.vlgmr.msra.gmra.mrb[2].mxu0 %vm739_vm5, %v719_v48  ;;  %v1004_v56 = vrot.slane %v719_v48, 7  ;;  %v6121_v48 = vpack.c.bf16 %v981_v46, %v980_v45 }
 0x1d0   : > { %5092 = vmatprep.subr.bf16.mxu1 %v5699_v15  ;;  %4749 = vmatprep.mubr.msk.f32.mxu1 %vm5701_vm4, %v5700_v26 }
 0x1d1   : > { %4782 = vmatprep.mubr.msk.f32.mxu0 %vm5701_vm4, %v5700_v26  ;;  %5109 = vmatpush3.bf16.msra.mxu0 %v6121_v48 }
 0x1d2   : > { %5110 = vmatprep.subr.bf16.mxu0 %v5699_v15 }
 0x1d3   : > { %5094 = vmatpush3.bf16.msra.mxu1 %v5093_v49  ;;  %v983_v49 = vld [vmem:[#allocation5 + $0x18] sm:$0xff] }
 0x1d4   : > { %5101 = vmatprep.subr.bf16.mxu1 %v5699_v15 }
 0x1d6   : > { %4750 = vmatmul.mubr.msk.f32.vlgmr.msra.gmra.mrb[2].mxu1 %vm739_vm5, %v4729_v47  ;;  %v982_v47 = vld [vmem:[#allocation5 + $0x10] sm:$0xff] }
 0x1d7   : > { %5103 = vmatpush3.bf16.msra.mxu1 %v5102_v52  ;;  %4771 = vmatprep.mubr.msk.f32.mxu1 %vm5701_vm4, %v5700_v26  ;;  %v6124_v50 = vpack.c.bf16 %v983_v49, %v982_v47 }
 0x1d8   : > { %5104 = vmatprep.subr.bf16.mxu1 %v5699_v15 }
 0x1d9   : > { %5112 = vmatpush3.bf16.msra.mxu0 %v6124_v50 }
 0x1da   : > { %5119 = vmatprep.subr.bf16.mxu0 %v5699_v15 }
 0x1db   : > { %5106 = vmatpush3.bf16.msra.mxu1 %v5105_v55  ;;  %v6131_v55 = vpack.c.bf16 %v987_v54, %v986_v53 }
 0x1dc   : > { %5113 = vmatprep.subr.bf16.mxu1 %v5699_v15 }
 0x1de   : > { %4772 = vmatmul.mubr.msk.f32.vlgmr.msra.gmra.mrb[4].mxu1 %vm739_vm5, %v1004_v56  ;;  %v988_v56 = vld [vmem:[#allocation5 + $0x30] sm:$0xff] }
 0x1df   : > { %4793 = vmatprep.mubr.msk.f32.mxu1 %vm5701_vm4, %v5700_v26  ;;  %5115 = vmatpush3.bf16.msra.mxu1 %v6131_v55 }
 0x1e0   : > { %5116 = vmatprep.subr.bf16.mxu1 %v5699_v15 }
 0x2a1   : > { %v809_v59 = vpop.f32.mrb[0].mxu1 }
 0x2a2   : > { %v6098_v60 = vadd.f32 %v4494_v57, %v809_v59  ;;  %v4740_v61 = vpop.f32.mrb[1].mxu1  ;;  %v976_v62 = vpop.f32.mrb[2].mxu0  ;;  %v989_v57 = vld [vmem:[#allocation5 + $0x38] sm:$0xff] }
 0x2a3   : > { %v6100_v63 = vadd.f32 %v4503_v58, %v976_v62  ;;  %v4762_v0 = vpop.f32.mrb[3].mxu0  ;;  %v6135_v58 = vpack.c.bf16 %v989_v57, %v988_v56 }
 0x2a4   : > { %v1107_v1 = vadd.f32 %v6028_v35, %v6098_v60 }
 0x2a5   : > { %v1164_v2 = vadd.f32 %v6036_v37, %v6100_v63  ;;  %5118 = vmatpush3.bf16.msra.mxu1 %v6135_v58 }
 0x2a6   : > { %v1108_v3 = vsub.f32 0.0, %v1107_v1  ;;  %5125 = vmatprep.subr.bf16.mxu1 %v5699_v15 }
 0x2a7   : > { %v1165_v5 = vsub.f32 0.0, %v1164_v2 }
 0x2a8   : > { %v1109_v6 = vmul.f32 1.442695, %v1108_v3 }
 0x2a9   : > { %v892_v7 = vpop.f32.mrb[2].mxu1  ;;  %v1166_v8 = vmul.f32 1.442695, %v1165_v5 }
 0x2aa   : > { %v6109_v9 = vadd.f32 %v4501_v4, %v892_v7  ;;  %v4751_v10 = vpop.f32.mrb[3].mxu1  ;;  %5350 = vpow2.f32 %v1109_v6  ;;  %v992_v7 = vld [vmem:[%s6850_s3] sm:$0xff] }
 0x2ab   : > { %5352 = vpow2.f32 %v1166_v8  ;;  %v993_v8 = vld [vmem:[%s6850_s3 + $0x8] sm:$0xff] }
 0x2ac   : > { %v1141_v11 = vadd.f32 %v1139_v41, %v6109_v9  ;;  %v6157_v10 = vpack.c.bf16 %v993_v8, %v992_v7 }
 0x2ae   : > { %v1142_v12 = vsub.f32 0.0, %v1141_v11  ;;  %v994_v11 = vld [vmem:[%s6850_s3 + $0x10] sm:$0xff] }
 0x2b0   : > { %v1143_v13 = vmul.f32 1.442695, %v1142_v12  ;;  %v995_v12 = vld [vmem:[%s6850_s3 + $0x18] sm:$0xff] }
 0x2b1   : > { %v6112_v14 = vpop.f32.mrb[4].mxu1 }
 0x2b2   : > { %v4773_v16 = vpop.f32.mrb[5].mxu1  ;;  %5354 = vpow2.f32 %v1143_v13 }
 0x2b3   : > { %v6168_v16 = vpack.c.bf16 %v995_v12, %v994_v11 }
 0x2b4   : > { %v5351_v17 = vpop.eup %5350 }
 0x2b5   : > { %v5353_v18 = vpop.eup %5352  ;;  %v1111_v19 = vadd.f32 1.0, %v5351_v17 }
 0x2b6   : > { %v1168_v20 = vadd.f32 1.0, %v5353_v18 }
 0x2b7   : > { %5356 = vrcp.f32 %v1111_v19 }
 0x2b8   : > { %5358 = vrcp.f32 %v1168_v20 }
 0x2bc   : > { %v5355_v21 = vpop.eup %5354 }
 0x2bd   : > { %v1145_v22 = vadd.f32 1.0, %v5355_v21 }
 0x2bf   : > { %5360 = vrcp.f32 %v1145_v22 }
 0x2c1   : > { %v5357_v24 = vpop.eup %5356 }
 0x2c2   : > { %v1122_v25 = vmul.f32 %v5357_v24, %v1120_v23  ;;  %v5359_v27 = vpop.eup %5358  ;;  %v1129_v59 = vsub.f32 1.0, %v5357_v24 }
 0x2c3   : > { %v1179_v29 = vmul.f32 %v5359_v27, %v1177_v28  ;;  %v1186_v0 = vsub.f32 1.0, %v5359_v27 }
 0x2c4   : > { %1124 = vrot.lane.b32.xlu1 %v1122_v25, %s5702_s22 }
 0x2c8   : > { %1181 = vrot.lane.b32.xlu1 %v1179_v29, %s5702_s22 }
 0x2c9   : > { %v5361_v31 = vpop.eup %5360 }
 0x2ca   : > { %v1151_v32 = vmul.f32 %v5361_v31, %v1149_v30  ;;  %v1158_v3 = vsub.f32 1.0, %v5361_v31 }
 0x2cc   : > { %1153 = vrot.lane.b32.xlu0 %v1151_v32, %s5702_s22 }
 0x336   : > { %v1125_v33 = vpop.permute.xlu1 %1124 }
 0x337   : > { %v1127_v39 = vadd.f32 %v1125_v33, %v6098_v60 }
 0x339   : > { %5362 = vtanh.f32 %v1127_v39 }
 0x33a   : > { %v1182_v40 = vpop.permute.xlu1 %1181 }
 0x33b   : > { %v1184_v41 = vadd.f32 %v1182_v40, %v6100_v63 }
 0x33d   : > { %5364 = vtanh.f32 %v1184_v41 }
 0x33e   : > { %v1154_v42 = vpop.permute.xlu0 %1153 }
 0x33f   : > { %v1156_v43 = vadd.f32 %v1154_v42, %v6109_v9 }
 0x341   : > { %5366 = vtanh.f32 %v1156_v43 }
 0x343   : > { %v5363_v44 = vpop.eup %5362 }
 0x344   : > { %1131 = vrot.lane.b32.xlu0 %v5363_v44, %s5703_s20 }
 0x347   : > { %v5365_v51 = vpop.eup %5364 }
 0x348   : > { %1188 = vrot.lane.b32.xlu0 %v5365_v51, %s5703_s20 }
 0x34b   : > { %v5367_v52 = vpop.eup %5366 }
 0x34c   : > { %1160 = vrot.lane.b32.xlu1 %v5367_v52, %s5703_s20 }
 0x3b6   : > { %v1132_v61 = vpop.permute.xlu0 %1131 }
 0x3b7   : > { %v6139_v62 = vmul.f32 %v1132_v61, %v1129_v59 }
 0x3b9   : > { %1193 = vrot.lane.b32.xlu1 %v6139_v62, %s5703_s20 }
 0x3ba   : > { %v1189_v1 = vpop.permute.xlu0 %1188 }
 0x3bb   : > { %v6143_v2 = vmul.f32 %v1189_v1, %v1186_v0 }
 0x3bd   : > { %1413 = vrot.lane.b32.xlu1 %v6143_v2, %s5703_s20 }
 0x3be   : > { %v1161_v4 = vpop.permute.xlu1 %1160 }
 0x3bf   : > { %v6147_v5 = vmul.f32 %v1161_v4, %v1158_v3 }
 0x3c1   : > { %v1307_v6 = vrot.slane %v6147_v5, 7 }
 0x3c3   : > { %1308 = vrot.lane.b32.xlu0 %v1307_v6, %s5703_s20 }
 0x42b   : > { %v1194_v13 = vpop.permute.xlu1 %1193 }
 0x42c   : > { %1197 = vst.msk [vmem:[#allocation2] sm:$0x1] %vm1196_vm6, %v1194_v13  ;;  %4783 = vmatmul.mubr.msk.f32.vlgmr.msra.gmra.mrb[4].mxu0 %vm739_vm5, %v1194_v13 }
 0x42d   : > { %5121 = vmatpush3.bf16.msra.mxu0 %v6157_v10  ;;  %4804 = vmatprep.mubr.msk.f32.mxu0 %vm5701_vm4, %v5700_v26 }
 0x42e   : > { %5122 = vmatprep.subr.bf16.mxu0 %v5699_v15 }
 0x42f   : > { %v1414_v17 = vpop.permute.xlu1 %1413 }
 0x431   : > { %5124 = vmatpush3.bf16.msra.mxu0 %v6168_v16 }
 0x432   : > { %5131 = vmatprep.subr.bf16.mxu0 %v5699_v15 }
 0x434   : > { %4805 = vmatmul.mubr.msk.f32.vlgmr.msra.gmra.mrb[6].mxu0 %vm739_vm5, %v1414_v17 }
 0x435   : > { %v1309_v18 = vpop.permute.xlu0 %1308  ;;  %5133 = vmatpush3.bf16.msra.mxu0 %v6131_v55  ;;  %4826 = vmatprep.mubr.msk.f32.mxu0 %vm5701_vm4, %v5700_v26 }
 0x436   : > { %4794 = vmatmul.mubr.msk.f32.vlgmr.msra.gmra.mrb[6].mxu1 %vm739_vm5, %v1309_v18  ;;  %5134 = vmatprep.subr.bf16.mxu0 %v5699_v15 }
 0x437   : > { %5127 = vmatpush3.bf16.msra.mxu1 %v6121_v48  ;;  %4815 = vmatprep.mubr.msk.f32.mxu1 %vm5701_vm4, %v5700_v26 }
 0x438   : > { %5128 = vmatprep.subr.bf16.mxu1 %v5699_v15 }
 0x439   : > { %5136 = vmatpush3.bf16.msra.mxu0 %v6135_v58 }
 0x43a   : > { %5143 = vmatprep.subr.bf16.mxu0 %v5699_v15 }
 0x43b   : > { %5130 = vmatpush3.bf16.msra.mxu1 %v6124_v50 }
 0x43c   : > { %5137 = vmatprep.subr.bf16.mxu1 %v5699_v15 }
 0x4ff   : > { %v1273_v19 = vpop.f32.mrb[4].mxu0 }
 0x500   : > { %v1274_v20 = vadd.f32 %v1273_v19, %v6028_v35  ;;  %v4784_v21 = vpop.f32.mrb[5].mxu0 }
 0x502   : > { %v1278_v22 = vrot.slane %v1274_v20, 7  ;;  %v1303_v20 = vrot.slane %v6139_v62, 7 }
 0x504   : > { %1287 = vrot.lane.b32.xlu0 %v1278_v22, %s5702_s22  ;;  %v1280_v32 = vadd.f32 %v1278_v22, %v6098_v60 }
 0x506   : > { %v1281_v33 = vsub.f32 0.0, %v1280_v32 }
 0x507   : > { %v1483_v23 = vpop.f32.mrb[6].mxu0 }
 0x508   : > { %v1484_v24 = vadd.f32 %v1483_v23, %v6036_v37  ;;  %v4806_v25 = vpop.f32.mrb[7].mxu0  ;;  %v1282_v39 = vmul.f32 1.442695, %v1281_v33 }
 0x509   : > { %v1378_v27 = vpop.f32.mrb[6].mxu1 }
 0x50a   : > { %v1488_v28 = vrot.slane %v1484_v24, 7  ;;  %v1379_v29 = vadd.f32 %v6041_v38, %v1378_v27  ;;  %v4795_v30 = vpop.f32.mrb[7].mxu1  ;;  %5368 = vpow2.f32 %v1282_v39 }
 0x50c   : > { %v1383_v31 = vrot.slane %v1379_v29, 2  ;;  %1497 = vrot.lane.b32.xlu0 %v1488_v28, %s5702_s22  ;;  %v1490_v40 = vadd.f32 %v1488_v28, %v6100_v63  ;;  %v1513_v28 = vrot.slane %v6143_v2, 7 }
 0x50e   : > { %1392 = vrot.lane.b32.xlu1 %v1383_v31, %s5702_s22  ;;  %v1385_v41 = vadd.f32 %v1383_v31, %v6109_v9  ;;  %v1491_v42 = vsub.f32 0.0, %v1490_v40  ;;  %v1408_v31 = vrot.slane %v6147_v5, 1 }
 0x510   : > { %v1386_v43 = vsub.f32 0.0, %v1385_v41  ;;  %v1492_v44 = vmul.f32 1.442695, %v1491_v42 }
 0x512   : > { %v1387_v45 = vmul.f32 1.442695, %v1386_v43  ;;  %5370 = vpow2.f32 %v1492_v44 }
 0x514   : > { %v5369_v46 = vpop.eup %5368  ;;  %5372 = vpow2.f32 %v1387_v45 }
 0x515   : > { %v1284_v47 = vadd.f32 1.0, %v5369_v46 }
 0x517   : > { %5374 = vrcp.f32 %v1284_v47 }
 0x51c   : > { %v5371_v49 = vpop.eup %5370 }
 0x51d   : > { %v1494_v52 = vadd.f32 1.0, %v5371_v49 }
 0x51e   : > { %v5373_v51 = vpop.eup %5372 }
 0x51f   : > { %v1389_v53 = vadd.f32 1.0, %v5373_v51  ;;  %5376 = vrcp.f32 %v1494_v52 }
 0x521   : > { %v5375_v54 = vpop.eup %5374  ;;  %5378 = vrcp.f32 %v1389_v53 }
 0x522   : > { %v1297_v21 = vsub.f32 1.0, %v5375_v54  ;;  %v1305_v23 = vmul.f32 %v5375_v54, %v1303_v20 }
 0x529   : > { %v5377_v59 = vpop.eup %5376 }
 0x52a   : > { %v1507_v29 = vsub.f32 1.0, %v5377_v59  ;;  %v1515_v32 = vmul.f32 %v5377_v59, %v1513_v28 }
 0x52b   : > { %v5379_v1 = vpop.eup %5378 }
 0x52c   : > { %v1402_v39 = vsub.f32 1.0, %v5379_v1  ;;  %v1410_v41 = vmul.f32 %v5379_v1, %v1408_v31 }
 0x576   : > { %v1288_v56 = vpop.permute.xlu0 %1287 }
 0x577   : > { %v1290_v57 = vmul.f32 %v5375_v54, %v1288_v56 }
 0x579   : > { %1292 = vrot.lane.b32.xlu1 %v1290_v57, %s5702_s22 }
 0x57e   : > { %v1498_v61 = vpop.permute.xlu0 %1497 }
 0x57f   : > { %v1500_v0 = vmul.f32 %v5377_v59, %v1498_v61 }
 0x580   : > { %v1393_v3 = vpop.permute.xlu1 %1392 }
 0x581   : > { %v1395_v4 = vmul.f32 %v5379_v1, %v1393_v3  ;;  %1502 = vrot.lane.b32.xlu1 %v1500_v0, %s5702_s22 }
 0x583   : > { %1397 = vrot.lane.b32.xlu0 %v1395_v4, %s5702_s22 }
 0x5eb   : > { %v1293_v6 = vpop.permute.xlu1 %1292 }
 0x5ec   : > { %v1295_v7 = vadd.f32 %v1293_v6, %v6098_v60 }
 0x5ee   : > { %5380 = vtanh.f32 %v1295_v7 }
 0x5f3   : > { %v1503_v8 = vpop.permute.xlu1 %1502 }
 0x5f4   : > { %v1505_v11 = vadd.f32 %v1503_v8, %v6100_v63 }
 0x5f5   : > { %v1398_v12 = vpop.permute.xlu0 %1397 }
 0x5f6   : > { %5382 = vtanh.f32 %v1505_v11  ;;  %v1400_v13 = vadd.f32 %v1398_v12, %v6109_v9 }
 0x5f8   : > { %v5381_v17 = vpop.eup %5380  ;;  %5384 = vtanh.f32 %v1400_v13 }
 0x5f9   : > { %1299 = vrot.lane.b32.xlu0 %v5381_v17, %s5703_s20 }
 0x600   : > { %v5383_v18 = vpop.eup %5382 }
 0x601   : > { %1509 = vrot.lane.b32.xlu0 %v5383_v18, %s5703_s20 }
 0x602   : > { %v5385_v19 = vpop.eup %5384 }
 0x603   : > { %1404 = vrot.lane.b32.xlu1 %v5385_v19, %s5703_s20 }
 0x66b   : > { %v1300_v22 = vpop.permute.xlu0 %1299 }
 0x66c   : > { %v1302_v24 = vmul.f32 %v1300_v22, %v1297_v21 }
 0x66e   : > { %v6208_v25 = vadd.f32 %v1305_v23, %v1302_v24 }
 0x670   : > { %v1531_v27 = vrot.slane %v6208_v25, 1 }
 0x672   : > { %1532 = vrot.lane.b32.xlu1 %v1531_v27, %s5703_s20 }
 0x673   : > { %v1510_v30 = vpop.permute.xlu0 %1509 }
 0x674   : > { %v1512_v33 = vmul.f32 %v1510_v30, %v1507_v29 }
 0x675   : > { %v1405_v62 = vpop.permute.xlu1 %1404 }
 0x676   : > { %v6214_v40 = vadd.f32 %v1515_v32, %v1512_v33  ;;  %v1407_v42 = vmul.f32 %v1405_v62, %v1402_v39 }
 0x678   : > { %v6216_v43 = vadd.f32 %v1410_v41, %v1407_v42  ;;  %v1742_v44 = vrot.slane %v6214_v40, 1 }
 0x67a   : > { %1743 = vrot.lane.b32.xlu1 %v1742_v44, %s5703_s20  ;;  %v1636_v2 = vrot.slane %v6216_v43, 6 }
 0x67c   : > { %1637 = vrot.lane.b32.xlu0 %v1636_v2, %s5703_s20 }
 0x6e4   : > { %v1533_v45 = vpop.permute.xlu1 %1532 }
 0x6e5   : > { %4816 = vmatmul.mubr.msk.f32.vlgmr.msra.gmra.mrb[8].mxu1 %vm739_vm5, %v1533_v45 }
 0x6e6   : > { %5139 = vmatpush3.bf16.msra.mxu1 %v6157_v10  ;;  %4837 = vmatprep.mubr.msk.f32.mxu1 %vm5701_vm4, %v5700_v26 }
 0x6e7   : > { %5140 = vmatprep.subr.bf16.mxu1 %v5699_v15 }
 0x6ea   : > { %5142 = vmatpush3.bf16.msra.mxu1 %v6168_v16 }
 0x6eb   : > { %5149 = vmatprep.subr.bf16.mxu1 %v5699_v15 }
 0x6ec   : > { %v1744_v46 = vpop.permute.xlu1 %1743 }
 0x6ed   : > { %4838 = vmatmul.mubr.msk.f32.vlgmr.msra.gmra.mrb[10].mxu1 %vm739_vm5, %v1744_v46 }
 0x6ee   : > { %v1638_v47 = vpop.permute.xlu0 %1637  ;;  %5151 = vmatpush3.bf16.msra.mxu1 %v6131_v55  ;;  %4859 = vmatprep.mubr.msk.f32.mxu1 %vm5701_vm4, %v5700_v26 }
 0x6ef   : > { %4827 = vmatmul.mubr.msk.f32.vlgmr.msra.gmra.mrb[8].mxu0 %vm739_vm5, %v1638_v47  ;;  %5152 = vmatprep.subr.bf16.mxu1 %v5699_v15 }
 0x6f0   : > { %5145 = vmatpush3.bf16.msra.mxu0 %v6121_v48  ;;  %4848 = vmatprep.mubr.msk.f32.mxu0 %vm5701_vm4, %v5700_v26 }
 0x6f1   : > { %5146 = vmatprep.subr.bf16.mxu0 %v5699_v15 }
 0x6f2   : > { %5154 = vmatpush3.bf16.msra.mxu1 %v6135_v58 }
 0x6f3   : > { %5161 = vmatprep.subr.bf16.mxu1 %v5699_v15 }
 0x6f4   : > { %5148 = vmatpush3.bf16.msra.mxu0 %v6124_v50 }
 0x6f5   : > { %5155 = vmatprep.subr.bf16.mxu0 %v5699_v15 }
 0x7b8   : > { %v1602_v49 = vpop.f32.mrb[8].mxu1 }
 0x7b9   : > { %v1603_v51 = vadd.f32 %v1602_v49, %v6028_v35  ;;  %v4817_v52 = vpop.f32.mrb[9].mxu1 }
 0x7bb   : > { %v1607_v53 = vrot.slane %v1603_v51, 6 }
 0x7bd   : > { %1616 = vrot.lane.b32.xlu0 %v1607_v53, %s5702_s22  ;;  %v1609_v4 = vadd.f32 %v1607_v53, %v6098_v60  ;;  %v1632_v53 = vrot.slane %v6208_v25, 7 }
 0x7bf   : > { %v1610_v6 = vsub.f32 0.0, %v1609_v4 }
 0x7c0   : > { %v1813_v54 = vpop.f32.mrb[10].mxu1 }
 0x7c1   : > { %v1814_v56 = vadd.f32 %v1813_v54, %v6036_v37  ;;  %v4839_v57 = vpop.f32.mrb[11].mxu1  ;;  %v1611_v7 = vmul.f32 1.442695, %v1610_v6 }
 0x7c2   : > { %v1707_v59 = vpop.f32.mrb[8].mxu0 }
 0x7c3   : > { %v1818_v61 = vrot.slane %v1814_v56, 6  ;;  %v1708_v0 = vadd.f32 %v6041_v38, %v1707_v59  ;;  %v4828_v1 = vpop.f32.mrb[9].mxu0  ;;  %5386 = vpow2.f32 %v1611_v7 }
 0x7c5   : > { %v1712_v3 = vrot.slane %v1708_v0, 3  ;;  %1827 = vrot.lane.b32.xlu0 %v1818_v61, %s5702_s22  ;;  %v1820_v8 = vadd.f32 %v1818_v61, %v6100_v63  ;;  %v1843_v0 = vrot.slane %v6214_v40, 7 }
 0x7c7   : > { %1721 = vrot.lane.b32.xlu1 %v1712_v3, %s5702_s22  ;;  %v1714_v11 = vadd.f32 %v1712_v3, %v6109_v9  ;;  %v1821_v12 = vsub.f32 0.0, %v1820_v8  ;;  %v1737_v8 = vrot.slane %v6216_v43, 1 }
 0x7c9   : > { %v1715_v13 = vsub.f32 0.0, %v1714_v11  ;;  %v1822_v17 = vmul.f32 1.442695, %v1821_v12 }
 0x7cb   : > { %v1716_v18 = vmul.f32 1.442695, %v1715_v13  ;;  %5388 = vpow2.f32 %v1822_v17 }
 0x7cd   : > { %v5387_v19 = vpop.eup %5386  ;;  %5390 = vpow2.f32 %v1716_v18 }
 0x7ce   : > { %v1613_v20 = vadd.f32 1.0, %v5387_v19 }
 0x7d0   : > { %5392 = vrcp.f32 %v1613_v20 }
 0x7d5   : > { %v5389_v21 = vpop.eup %5388 }
 0x7d6   : > { %v1824_v23 = vadd.f32 1.0, %v5389_v21 }
 0x7d7   : > { %v5391_v22 = vpop.eup %5390 }
 0x7d8   : > { %v1718_v24 = vadd.f32 1.0, %v5391_v22  ;;  %5394 = vrcp.f32 %v1824_v23 }
 0x7da   : > { %v5393_v27 = vpop.eup %5392  ;;  %5396 = vrcp.f32 %v1718_v24 }
 0x7db   : > { %v1626_v52 = vsub.f32 1.0, %v5393_v27  ;;  %v1634_v56 = vmul.f32 %v5393_v27, %v1632_v53 }
 0x7e2   : > { %v5395_v30 = vpop.eup %5394 }
 0x7e3   : > { %v1837_v1 = vsub.f32 1.0, %v5395_v30  ;;  %v1845_v4 = vmul.f32 %v5395_v30, %v1843_v0 }
 0x7e4   : > { %v5397_v33 = vpop.eup %5396 }
 0x7e5   : > { %v1731_v7 = vsub.f32 1.0, %v5397_v33  ;;  %v1739_v13 = vmul.f32 %v5397_v33, %v1737_v8 }
 0x82f   : > { %v1617_v28 = vpop.permute.xlu0 %1616 }
 0x830   : > { %v1619_v29 = vmul.f32 %v5393_v27, %v1617_v28 }
 0x832   : > { %1621 = vrot.lane.b32.xlu1 %v1619_v29, %s5702_s22 }
 0x837   : > { %v1828_v31 = vpop.permute.xlu0 %1827 }
 0x838   : > { %v1830_v32 = vmul.f32 %v5395_v30, %v1828_v31 }
 0x839   : > { %v1722_v39 = vpop.permute.xlu1 %1721 }
 0x83a   : > { %v1724_v62 = vmul.f32 %v5397_v33, %v1722_v39  ;;  %1832 = vrot.lane.b32.xlu1 %v1830_v32, %s5702_s22 }
 0x83c   : > { %1726 = vrot.lane.b32.xlu0 %v1724_v62, %s5702_s22 }
 0x8a4   : > { %v1622_v41 = vpop.permute.xlu1 %1621 }
 0x8a5   : > { %v1624_v42 = vadd.f32 %v1622_v41, %v6098_v60 }
 0x8a7   : > { %5398 = vtanh.f32 %v1624_v42 }
 0x8ac   : > { %v1833_v44 = vpop.permute.xlu1 %1832 }
 0x8ad   : > { %v1835_v2 = vadd.f32 %v1833_v44, %v6100_v63 }
 0x8ae   : > { %v1727_v45 = vpop.permute.xlu0 %1726 }
 0x8af   : > { %5400 = vtanh.f32 %v1835_v2  ;;  %v1729_v46 = vadd.f32 %v1727_v45, %v6109_v9 }
 0x8b1   : > { %v5399_v47 = vpop.eup %5398  ;;  %5402 = vtanh.f32 %v1729_v46 }
 0x8b2   : > { %1628 = vrot.lane.b32.xlu0 %v5399_v47, %s5703_s20 }
 0x8b9   : > { %v5401_v49 = vpop.eup %5400 }
 0x8ba   : > { %1839 = vrot.lane.b32.xlu0 %v5401_v49, %s5703_s20 }
 0x8bb   : > { %v5403_v51 = vpop.eup %5402 }
 0x8bc   : > { %1733 = vrot.lane.b32.xlu1 %v5403_v51, %s5703_s20 }
 0x924   : > { %v1629_v54 = vpop.permute.xlu0 %1628 }
 0x925   : > { %v1631_v57 = vmul.f32 %v1629_v54, %v1626_v52 }
 0x927   : > { %v6262_v59 = vadd.f32 %v1634_v56, %v1631_v57 }
 0x929   : > { %v1861_v61 = vrot.slane %v6262_v59, 2 }
 0x92b   : > { %1862 = vrot.lane.b32.xlu1 %v1861_v61, %s5703_s20 }
 0x92c   : > { %v1840_v3 = vpop.permute.xlu0 %1839 }
 0x92d   : > { %v1842_v6 = vmul.f32 %v1840_v3, %v1837_v1 }
 0x92e   : > { %v1734_v11 = vpop.permute.xlu1 %1733 }
 0x92f   : > { %v6268_v12 = vadd.f32 %v1845_v4, %v1842_v6  ;;  %v1736_v17 = vmul.f32 %v1734_v11, %v1731_v7 }
 0x931   : > { %v6270_v18 = vadd.f32 %v1739_v13, %v1736_v17  ;;  %v2072_v19 = vrot.slane %v6268_v12, 2 }
 0x933   : > { %2073 = vrot.lane.b32.xlu1 %v2072_v19, %s5703_s20  ;;  %v1966_v40 = vrot.slane %v6270_v18, 5 }
 0x935   : > { %1967 = vrot.lane.b32.xlu0 %v1966_v40, %s5703_s20 }
 0x99d   : > { %v1863_v20 = vpop.permute.xlu1 %1862 }
 0x99e   : > { %4849 = vmatmul.mubr.msk.f32.vlgmr.msra.gmra.mrb[10].mxu0 %vm739_vm5, %v1863_v20 }
 0x99f   : > { %5157 = vmatpush3.bf16.msra.mxu0 %v6157_v10  ;;  %4870 = vmatprep.mubr.msk.f32.mxu0 %vm5701_vm4, %v5700_v26 }
 0x9a0   : > { %5158 = vmatprep.subr.bf16.mxu0 %v5699_v15 }
 0x9a3   : > { %5160 = vmatpush3.bf16.msra.mxu0 %v6168_v16 }
 0x9a4   : > { %5167 = vmatprep.subr.bf16.mxu0 %v5699_v15 }
 0x9a5   : > { %v2074_v21 = vpop.permute.xlu1 %2073 }
 0x9a6   : > { %4871 = vmatmul.mubr.msk.f32.vlgmr.msra.gmra.mrb[12].mxu0 %vm739_vm5, %v2074_v21 }
 0x9a7   : > { %v1968_v22 = vpop.permute.xlu0 %1967  ;;  %5169 = vmatpush3.bf16.msra.mxu0 %v6131_v55  ;;  %4892 = vmatprep.mubr.msk.f32.mxu0 %vm5701_vm4, %v5700_v26 }
 0x9a8   : > { %4860 = vmatmul.mubr.msk.f32.vlgmr.msra.gmra.mrb[12].mxu1 %vm739_vm5, %v1968_v22  ;;  %5170 = vmatprep.subr.bf16.mxu0 %v5699_v15 }
 0x9a9   : > { %5163 = vmatpush3.bf16.msra.mxu1 %v6121_v48  ;;  %4881 = vmatprep.mubr.msk.f32.mxu1 %vm5701_vm4, %v5700_v26 }
 0x9aa   : > { %5164 = vmatprep.subr.bf16.mxu1 %v5699_v15 }
 0x9ab   : > { %5172 = vmatpush3.bf16.msra.mxu0 %v6135_v58 }
 0x9ac   : > { %5179 = vmatprep.subr.bf16.mxu0 %v5699_v15 }
 0x9ad   : > { %5166 = vmatpush3.bf16.msra.mxu1 %v6124_v50 }
 0x9ae   : > { %5173 = vmatprep.subr.bf16.mxu1 %v5699_v15 }
 0xa71   : > { %v1932_v23 = vpop.f32.mrb[10].mxu0 }
 0xa72   : > { %v1933_v24 = vadd.f32 %v1932_v23, %v6028_v35  ;;  %v4850_v27 = vpop.f32.mrb[11].mxu0 }
 0xa74   : > { %v1937_v28 = vrot.slane %v1933_v24, 5 }
 0xa76   : > { %1946 = vrot.lane.b32.xlu0 %v1937_v28, %s5702_s22  ;;  %v1939_v42 = vadd.f32 %v1937_v28, %v6098_v60 }
 0xa78   : > { %v1940_v44 = vsub.f32 0.0, %v1939_v42 }
 0xa79   : > { %v2143_v29 = vpop.f32.mrb[12].mxu0 }
 0xa7a   : > { %v2144_v30 = vadd.f32 %v2143_v29, %v6036_v37  ;;  %v4872_v31 = vpop.f32.mrb[13].mxu0  ;;  %v1941_v2 = vmul.f32 1.442695, %v1940_v44 }
 0xa7b   : > { %v2037_v32 = vpop.f32.mrb[12].mxu1 }
 0xa7c   : > { %v2148_v33 = vrot.slane %v2144_v30, 5  ;;  %v2038_v39 = vadd.f32 %v6041_v38, %v2037_v32  ;;  %v4861_v62 = vpop.f32.mrb[13].mxu1  ;;  %5404 = vpow2.f32 %v1941_v2  ;;  %v1962_v30 = vrot.slane %v6262_v59, 7 }
 0xa7e   : > { %v2042_v41 = vrot.slane %v2038_v39, 4  ;;  %2157 = vrot.lane.b32.xlu0 %v2148_v33, %s5702_s22  ;;  %v2150_v45 = vadd.f32 %v2148_v33, %v6100_v63 }
 0xa80   : > { %2051 = vrot.lane.b32.xlu1 %v2042_v41, %s5702_s22  ;;  %v2044_v46 = vadd.f32 %v2042_v41, %v6109_v9  ;;  %v2151_v47 = vsub.f32 0.0, %v2150_v45  ;;  %v2173_v41 = vrot.slane %v6268_v12, 7 }
 0xa82   : > { %v2045_v49 = vsub.f32 0.0, %v2044_v46  ;;  %v2152_v51 = vmul.f32 1.442695, %v2151_v47  ;;  %v2067_v47 = vrot.slane %v6270_v18, 1 }
 0xa84   : > { %v2046_v52 = vmul.f32 1.442695, %v2045_v49  ;;  %5406 = vpow2.f32 %v2152_v51 }
 0xa86   : > { %v5405_v53 = vpop.eup %5404  ;;  %5408 = vpow2.f32 %v2046_v52 }
 0xa87   : > { %v1943_v54 = vadd.f32 1.0, %v5405_v53 }
 0xa89   : > { %5410 = vrcp.f32 %v1943_v54 }
 0xa8e   : > { %v5407_v56 = vpop.eup %5406 }
 0xa8f   : > { %v2154_v61 = vadd.f32 1.0, %v5407_v56 }
 0xa90   : > { %v5409_v57 = vpop.eup %5408 }
 0xa91   : > { %v2048_v0 = vadd.f32 1.0, %v5409_v57  ;;  %5412 = vrcp.f32 %v2154_v61 }
 0xa93   : > { %v5411_v1 = vpop.eup %5410  ;;  %5414 = vrcp.f32 %v2048_v0 }
 0xa94   : > { %v1956_v29 = vsub.f32 1.0, %v5411_v1  ;;  %v1964_v32 = vmul.f32 %v5411_v1, %v1962_v30 }
 0xa9b   : > { %v5413_v6 = vpop.eup %5412 }
 0xa9c   : > { %v2167_v42 = vsub.f32 1.0, %v5413_v6  ;;  %v2175_v2 = vmul.f32 %v5413_v6, %v2173_v41 }
 0xa9d   : > { %v5415_v11 = vpop.eup %5414 }
 0xa9e   : > { %v2061_v46 = vsub.f32 1.0, %v5415_v11  ;;  %v2069_v52 = vmul.f32 %v5415_v11, %v2067_v47 }
 0xae8   : > { %v1947_v3 = vpop.permute.xlu0 %1946 }
 0xae9   : > { %v1949_v4 = vmul.f32 %v5411_v1, %v1947_v3 }
 0xaeb   : > { %1951 = vrot.lane.b32.xlu1 %v1949_v4, %s5702_s22 }
 0xaf0   : > { %v2158_v7 = vpop.permute.xlu0 %2157 }
 0xaf1   : > { %v2160_v8 = vmul.f32 %v5413_v6, %v2158_v7 }
 0xaf2   : > { %v2052_v13 = vpop.permute.xlu1 %2051 }
 0xaf3   : > { %v2054_v17 = vmul.f32 %v5415_v11, %v2052_v13  ;;  %2162 = vrot.lane.b32.xlu1 %v2160_v8, %s5702_s22 }
 0xaf5   : > { %2056 = vrot.lane.b32.xlu0 %v2054_v17, %s5702_s22 }
 0xb5d   : > { %v1952_v19 = vpop.permute.xlu1 %1951 }
 0xb5e   : > { %v1954_v40 = vadd.f32 %v1952_v19, %v6098_v60 }
 0xb60   : > { %5416 = vtanh.f32 %v1954_v40 }
 0xb65   : > { %v2163_v20 = vpop.permute.xlu1 %2162 }
 0xb66   : > { %v2165_v21 = vadd.f32 %v2163_v20, %v6100_v63 }
 0xb67   : > { %v2057_v22 = vpop.permute.xlu0 %2056 }
 0xb68   : > { %5418 = vtanh.f32 %v2165_v21  ;;  %v2059_v23 = vadd.f32 %v2057_v22, %v6109_v9 }
 0xb6a   : > { %v5417_v24 = vpop.eup %5416  ;;  %5420 = vtanh.f32 %v2059_v23 }
 0xb6b   : > { %1958 = vrot.lane.b32.xlu0 %v5417_v24, %s5703_s20 }
 0xb72   : > { %v5419_v27 = vpop.eup %5418 }
 0xb73   : > { %2169 = vrot.lane.b32.xlu0 %v5419_v27, %s5703_s20 }
 0xb74   : > { %v5421_v28 = vpop.eup %5420 }
 0xb75   : > { %2063 = vrot.lane.b32.xlu1 %v5421_v28, %s5703_s20 }
 0xbdd   : > { %v1959_v31 = vpop.permute.xlu0 %1958 }
 0xbde   : > { %v1961_v33 = vmul.f32 %v1959_v31, %v1956_v29 }
 0xbe0   : > { %v6316_v39 = vadd.f32 %v1964_v32, %v1961_v33 }
 0xbe2   : > { %v2191_v62 = vrot.slane %v6316_v39, 3 }
 0xbe4   : > { %2192 = vrot.lane.b32.xlu1 %v2191_v62, %s5703_s20 }
 0xbe5   : > { %v2170_v44 = vpop.permute.xlu0 %2169 }
 0xbe6   : > { %v2172_v45 = vmul.f32 %v2170_v44, %v2167_v42 }
 0xbe7   : > { %v2064_v49 = vpop.permute.xlu1 %2063 }
 0xbe8   : > { %v6322_v51 = vadd.f32 %v2175_v2, %v2172_v45  ;;  %v2066_v53 = vmul.f32 %v2064_v49, %v2061_v46 }
 0xbea   : > { %v6324_v54 = vadd.f32 %v2069_v52, %v2066_v53  ;;  %v2402_v56 = vrot.slane %v6322_v51, 3 }
 0xbec   : > { %2403 = vrot.lane.b32.xlu1 %v2402_v56, %s5703_s20  ;;  %v2296_v12 = vrot.slane %v6324_v54, 4 }
 0xbee   : > { %2297 = vrot.lane.b32.xlu0 %v2296_v12, %s5703_s20 }
 0xc56   : > { %v2193_v57 = vpop.permute.xlu1 %2192 }
 0xc57   : > { %4882 = vmatmul.mubr.msk.f32.vlgmr.msra.gmra.mrb[14].mxu1 %vm739_vm5, %v2193_v57 }
 0xc58   : > { %5175 = vmatpush3.bf16.msra.mxu1 %v6157_v10  ;;  %4903 = vmatprep.mubr.msk.f32.mxu1 %vm5701_vm4, %v5700_v26 }
 0xc59   : > { %5176 = vmatprep.subr.bf16.mxu1 %v5699_v15 }
 0xc5c   : > { %5178 = vmatpush3.bf16.msra.mxu1 %v6168_v16 }
 0xc5d   : > { %5185 = vmatprep.subr.bf16.mxu1 %v5699_v15 }
 0xc5e   : > { %v2404_v61 = vpop.permute.xlu1 %2403 }
 0xc5f   : > { %4904 = vmatmul.mubr.msk.f32.vlgmr.msra.gmra.mrb[16].mxu1 %vm739_vm5, %v2404_v61 }
 0xc60   : > { %v2298_v0 = vpop.permute.xlu0 %2297  ;;  %5187 = vmatpush3.bf16.msra.mxu1 %v6131_v55  ;;  %4925 = vmatprep.mubr.msk.f32.mxu1 %vm5701_vm4, %v5700_v26 }
 0xc61   : > { %4893 = vmatmul.mubr.msk.f32.vlgmr.msra.gmra.mrb[14].mxu0 %vm739_vm5, %v2298_v0  ;;  %5188 = vmatprep.subr.bf16.mxu1 %v5699_v15 }
 0xc62   : > { %5181 = vmatpush3.bf16.msra.mxu0 %v6121_v48  ;;  %4914 = vmatprep.mubr.msk.f32.mxu0 %vm5701_vm4, %v5700_v26 }
 0xc63   : > { %5182 = vmatprep.subr.bf16.mxu0 %v5699_v15 }
 0xc64   : > { %5190 = vmatpush3.bf16.msra.mxu1 %v6135_v58 }
 0xc65   : > { %5197 = vmatprep.subr.bf16.mxu1 %v5699_v15 }
 0xc66   : > { %5184 = vmatpush3.bf16.msra.mxu0 %v6124_v50 }
 0xc67   : > { %5191 = vmatprep.subr.bf16.mxu0 %v5699_v15 }
 0xd2a   : > { %v2262_v1 = vpop.f32.mrb[14].mxu1 }
 0xd2b   : > { %v2263_v3 = vadd.f32 %v2262_v1, %v6028_v35  ;;  %v4883_v4 = vpop.f32.mrb[15].mxu1 }
 0xd2d   : > { %v2267_v6 = vrot.slane %v2263_v3, 4 }
 0xd2f   : > { %2276 = vrot.lane.b32.xlu0 %v2267_v6, %s5702_s22  ;;  %v2269_v35 = vadd.f32 %v2267_v6, %v6098_v60 }
 0xd31   : > { %v2270_v21 = vsub.f32 0.0, %v2269_v35 }
 0xd32   : > { %v2473_v7 = vpop.f32.mrb[16].mxu1 }
 0xd33   : > { %v2474_v8 = vadd.f32 %v2473_v7, %v6036_v37  ;;  %v4905_v11 = vpop.f32.mrb[17].mxu1  ;;  %v2271_v22 = vmul.f32 1.442695, %v2270_v21  ;;  %v2292_v7 = vrot.slane %v6316_v39, 7 }
 0xd34   : > { %v2367_v13 = vpop.f32.mrb[14].mxu0 }
 0xd35   : > { %v2478_v17 = vrot.slane %v2474_v8, 4  ;;  %v2368_v19 = vadd.f32 %v6041_v38, %v2367_v13  ;;  %v4894_v40 = vpop.f32.mrb[15].mxu0  ;;  %5422 = vpow2.f32 %v2271_v22 }
 0xd36   : > { %v2503_v40 = vrot.slane %v6322_v51, 7 }
 0xd37   : > { %v2372_v20 = vrot.slane %v2368_v19, 5  ;;  %2487 = vrot.lane.b32.xlu0 %v2478_v17, %s5702_s22  ;;  %v2480_v23 = vadd.f32 %v2478_v17, %v6100_v63 }
 0xd39   : > { %2381 = vrot.lane.b32.xlu1 %v2372_v20, %s5702_s22  ;;  %v2374_v24 = vadd.f32 %v2372_v20, %v6109_v9  ;;  %v2481_v37 = vsub.f32 0.0, %v2480_v23 }
 0xd3b   : > { %v2375_v27 = vsub.f32 0.0, %v2374_v24  ;;  %v2482_v28 = vmul.f32 1.442695, %v2481_v37  ;;  %v2397_v24 = vrot.slane %v6324_v54, 1 }
 0xd3d   : > { %v2376_v29 = vmul.f32 1.442695, %v2375_v27  ;;  %5424 = vpow2.f32 %v2482_v28 }
 0xd3f   : > { %v5423_v38 = vpop.eup %5422  ;;  %5426 = vpow2.f32 %v2376_v29 }
 0xd40   : > { %v2273_v30 = vadd.f32 1.0, %v5423_v38 }
 0xd42   : > { %5428 = vrcp.f32 %v2273_v30 }
 0xd47   : > { %v5425_v31 = vpop.eup %5424 }
 0xd48   : > { %v2484_v33 = vadd.f32 1.0, %v5425_v31 }
 0xd49   : > { %v5427_v32 = vpop.eup %5426 }
 0xd4a   : > { %v2378_v62 = vadd.f32 1.0, %v5427_v32  ;;  %5430 = vrcp.f32 %v2484_v33 }
 0xd4c   : > { %v5429_v41 = vpop.eup %5428  ;;  %5432 = vrcp.f32 %v2378_v62 }
 0xd4d   : > { %v2286_v6 = vsub.f32 1.0, %v5429_v41  ;;  %v2294_v11 = vmul.f32 %v5429_v41, %v2292_v7 }
 0xd54   : > { %v5431_v2 = vpop.eup %5430 }
 0xd55   : > { %v2497_v20 = vsub.f32 1.0, %v5431_v2  ;;  %v2505_v21 = vmul.f32 %v5431_v2, %v2503_v40 }
 0xd56   : > { %v5433_v47 = vpop.eup %5432 }
 0xd57   : > { %v2391_v23 = vsub.f32 1.0, %v5433_v47  ;;  %v2399_v28 = vmul.f32 %v5433_v47, %v2397_v24 }
 0xda1   : > { %v2277_v42 = vpop.permute.xlu0 %2276 }
 0xda2   : > { %v2279_v44 = vmul.f32 %v5429_v41, %v2277_v42  ;;  %v6408_v41 = vld [vmem:[%s6856_s9] sm:$0x1] }
 0xda4   : > { %2281 = vrot.lane.b32.xlu1 %v2279_v44, %s5702_s22 }
 0xda9   : > { %v2488_v45 = vpop.permute.xlu0 %2487 }
 0xdaa   : > { %v2490_v46 = vmul.f32 %v5431_v2, %v2488_v45 }
 0xdab   : > { %v2382_v49 = vpop.permute.xlu1 %2381 }
 0xdac   : > { %v2384_v52 = vmul.f32 %v5433_v47, %v2382_v49  ;;  %2492 = vrot.lane.b32.xlu1 %v2490_v46, %s5702_s22  ;;  %v6415_v46 = vld [vmem:[%s6852_s5] sm:$0x1] }
 0xdae   : > { %2386 = vrot.lane.b32.xlu0 %v2384_v52, %s5702_s22 }
 0xe16   : > { %v2282_v53 = vpop.permute.xlu1 %2281 }
 0xe17   : > { %v2284_v56 = vadd.f32 %v2282_v53, %v6098_v60 }
 0xe19   : > { %5434 = vtanh.f32 %v2284_v56  ;;  %v6421_v56 = vld [vmem:[%s6856_s9 + $0x1] sm:$0x1] }
 0xe1e   : > { %v2493_v12 = vpop.permute.xlu1 %2492 }
 0xe1f   : > { %v2495_v57 = vadd.f32 %v2493_v12, %v6100_v63 }
 0xe20   : > { %v2387_v61 = vpop.permute.xlu0 %2386 }
 0xe21   : > { %5436 = vtanh.f32 %v2495_v57  ;;  %v2389_v0 = vadd.f32 %v2387_v61, %v6109_v9 }
 0xe23   : > { %v5435_v1 = vpop.eup %5434  ;;  %5438 = vtanh.f32 %v2389_v0 }
 0xe24   : > { %2288 = vrot.lane.b32.xlu0 %v5435_v1, %s5703_s20 }
 0xe2b   : > { %v5437_v3 = vpop.eup %5436 }
 0xe2c   : > { %2499 = vrot.lane.b32.xlu0 %v5437_v3, %s5703_s20 }
 0xe2d   : > { %v5439_v4 = vpop.eup %5438 }
 0xe2e   : > { %2393 = vrot.lane.b32.xlu1 %v5439_v4, %s5703_s20 }
 0xe96   : > { %v2289_v8 = vpop.permute.xlu0 %2288 }
 0xe97   : > { %v2291_v13 = vmul.f32 %v2289_v8, %v2286_v6 }
 0xe99   : > { %v6370_v17 = vadd.f32 %v2294_v11, %v2291_v13 }
 0xe9b   : > { %v2519_v19 = vrot.slane %v6370_v17, 4 }
 0xe9d   : > { %2520 = vrot.lane.b32.xlu1 %v2519_v19, %s5703_s20 }
 0xe9e   : > { %v2500_v35 = vpop.permute.xlu0 %2499 }
 0xe9f   : > { %v2502_v22 = vmul.f32 %v2500_v35, %v2497_v20 }
 0xea0   : > { %v2394_v37 = vpop.permute.xlu1 %2393 }
 0xea1   : > { %v6376_v27 = vadd.f32 %v2505_v21, %v2502_v22  ;;  %v2396_v29 = vmul.f32 %v2394_v37, %v2391_v23 }
 0xea3   : > { %v6378_v38 = vadd.f32 %v2399_v28, %v2396_v29  ;;  %v2730_v30 = vrot.slane %v6376_v27, 4 }
 0xea5   : > { %2731 = vrot.lane.b32.xlu1 %v2730_v30, %s5703_s20  ;;  %v2624_v51 = vrot.slane %v6378_v38, 3 }
 0xea7   : > { %2625 = vrot.lane.b32.xlu0 %v2624_v51, %s5703_s20 }
 0xf0f   : > { %v2521_v31 = vpop.permute.xlu1 %2520 }
 0xf10   : > { %4915 = vmatmul.mubr.msk.f32.vlgmr.msra.gmra.mrb[16].mxu0 %vm739_vm5, %v2521_v31 }
 0xf11   : > { %5193 = vmatpush3.bf16.msra.mxu0 %v6157_v10  ;;  %4936 = vmatprep.mubr.msk.f32.mxu0 %vm5701_vm4, %v5700_v26 }
 0xf12   : > { %5194 = vmatprep.subr.bf16.mxu0 %v5699_v15 }
 0xf15   : > { %5196 = vmatpush3.bf16.msra.mxu0 %v6168_v16 }
 0xf16   : > { %5203 = vmatprep.subr.bf16.mxu0 %v5699_v15 }
 0xf17   : > { %v2732_v32 = vpop.permute.xlu1 %2731 }
 0xf18   : > { %4937 = vmatmul.mubr.msk.f32.vlgmr.msra.gmra.mrb[18].mxu0 %vm739_vm5, %v2732_v32 }
 0xf19   : > { %v2626_v33 = vpop.permute.xlu0 %2625  ;;  %5205 = vmatpush3.bf16.msra.mxu0 %v6131_v55  ;;  %4958 = vmatprep.mubr.msk.f32.mxu0 %vm5701_vm4, %v5700_v26 }
 0xf1a   : > { %4926 = vmatmul.mubr.msk.f32.vlgmr.msra.gmra.mrb[18].mxu1 %vm739_vm5, %v2626_v33  ;;  %5206 = vmatprep.subr.bf16.mxu0 %v5699_v15 }
 0xf1b   : > { %5199 = vmatpush3.bf16.msra.mxu1 %v6121_v48  ;;  %4947 = vmatprep.mubr.msk.f32.mxu1 %vm5701_vm4, %v5700_v26 }
 0xf1c   : > { %5200 = vmatprep.subr.bf16.mxu1 %v5699_v15 }
 0xf1d   : > { %5208 = vmatpush3.bf16.msra.mxu0 %v6135_v58 }
 0xf1e   : > { %5215 = vmatprep.subr.bf16.mxu0 %v5699_v15 }
 0xf1f   : > { %5202 = vmatpush3.bf16.msra.mxu1 %v6124_v50 }
 0xf20   : > { %5209 = vmatprep.subr.bf16.mxu1 %v5699_v15 }
 0xfe3   : > { %v2590_v62 = vpop.f32.mrb[16].mxu0 }
 0xfe4   : > { %v2591_v42 = vadd.f32 %v6408_v41, %v2590_v62  ;;  %v4916_v44 = vpop.f32.mrb[17].mxu0 }
 0xfe6   : > { %v2595_v2 = vrot.slane %v2591_v42, 3 }
 0xfe8   : > { %2604 = vrot.lane.b32.xlu0 %v2595_v2, %s5702_s22  ;;  %v2597_v0 = vadd.f32 %v2595_v2, %v6098_v60 }
 0xfea   : > { %v2598_v1 = vsub.f32 0.0, %v2597_v0 }
 0xfeb   : > { %v2801_v45 = vpop.f32.mrb[18].mxu0 }
 0xfec   : > { %v2802_v47 = vadd.f32 %v6415_v46, %v2801_v45  ;;  %v4938_v49 = vpop.f32.mrb[19].mxu0  ;;  %v2599_v3 = vmul.f32 1.442695, %v2598_v1 }
 0xfed   : > { %v2695_v52 = vpop.f32.mrb[18].mxu1 }
 0xfee   : > { %v2806_v53 = vrot.slane %v2802_v47, 3  ;;  %v2696_v12 = vadd.f32 %v6421_v56, %v2695_v52  ;;  %v4927_v57 = vpop.f32.mrb[19].mxu1  ;;  %5440 = vpow2.f32 %v2599_v3 }
 0xff0   : > { %v2700_v61 = vrot.slane %v2696_v12, 6  ;;  %2815 = vrot.lane.b32.xlu0 %v2806_v53, %s5702_s22  ;;  %v2808_v4 = vadd.f32 %v2806_v53, %v6100_v63  ;;  %v2620_v12 = vrot.slane %v6370_v17, 7 }
 0xff2   : > { %2709 = vrot.lane.b32.xlu1 %v2700_v61, %s5702_s22  ;;  %v2702_v6 = vadd.f32 %v2700_v61, %v6109_v9  ;;  %v2809_v7 = vsub.f32 0.0, %v2808_v4  ;;  %v2831_v4 = vrot.slane %v6376_v27, 7 }
 0xff4   : > { %v2703_v8 = vsub.f32 0.0, %v2702_v6  ;;  %v2810_v11 = vmul.f32 1.442695, %v2809_v7 }
 0xff6   : > { %v2704_v13 = vmul.f32 1.442695, %v2703_v8  ;;  %5442 = vpow2.f32 %v2810_v11 }
 0xff8   : > { %v5441_v19 = vpop.eup %5440  ;;  %5444 = vpow2.f32 %v2704_v13 }
 0xff9   : > { %v2601_v40 = vadd.f32 1.0, %v5441_v19  ;;  %v2725_v19 = vrot.slane %v6378_v38, 1 }
 0xffb   : > { %5446 = vrcp.f32 %v2601_v40 }
0x1000   : > { %v5443_v20 = vpop.eup %5442 }
0x1001   : > { %v2812_v21 = vadd.f32 1.0, %v5443_v20 }
0x1002   : > { %v5445_v35 = vpop.eup %5444 }
0x1003   : > { %v2706_v22 = vadd.f32 1.0, %v5445_v35  ;;  %5448 = vrcp.f32 %v2812_v21 }
0x1005   : > { %v5447_v23 = vpop.eup %5446  ;;  %5450 = vrcp.f32 %v2706_v22 }
0x1006   : > { %v2614_v53 = vsub.f32 1.0, %v5447_v23  ;;  %v2622_v61 = vmul.f32 %v5447_v23, %v2620_v12 }
0x100d   : > { %v5449_v28 = vpop.eup %5448 }
0x100e   : > { %v2825_v6 = vsub.f32 1.0, %v5449_v28  ;;  %v2833_v8 = vmul.f32 %v5449_v28, %v2831_v4 }
0x100f   : > { %v5451_v51 = vpop.eup %5450 }
0x1010   : > { %v2719_v13 = vsub.f32 1.0, %v5451_v51  ;;  %v2727_v35 = vmul.f32 %v5451_v51, %v2725_v19 }
0x105a   : > { %v2605_v24 = vpop.permute.xlu0 %2604 }
0x105b   : > { %v2607_v37 = vmul.f32 %v5447_v23, %v2605_v24 }
0x105d   : > { %2609 = vrot.lane.b32.xlu1 %v2607_v37, %s5702_s22 }
0x1062   : > { %v2816_v29 = vpop.permute.xlu0 %2815 }
0x1063   : > { %v2818_v30 = vmul.f32 %v5449_v28, %v2816_v29 }
0x1064   : > { %v2710_v31 = vpop.permute.xlu1 %2709 }
0x1065   : > { %v2712_v32 = vmul.f32 %v5451_v51, %v2710_v31  ;;  %2820 = vrot.lane.b32.xlu1 %v2818_v30, %s5702_s22 }
0x1067   : > { %2714 = vrot.lane.b32.xlu0 %v2712_v32, %s5702_s22 }
0x10cf   : > { %v2610_v33 = vpop.permute.xlu1 %2609 }
0x10d0   : > { %v2612_v62 = vadd.f32 %v2610_v33, %v6098_v60 }
0x10d2   : > { %5452 = vtanh.f32 %v2612_v62 }
0x10d7   : > { %v2821_v42 = vpop.permute.xlu1 %2820 }
0x10d8   : > { %v2823_v44 = vadd.f32 %v2821_v42, %v6100_v63 }
0x10d9   : > { %v2715_v2 = vpop.permute.xlu0 %2714 }
0x10da   : > { %5454 = vtanh.f32 %v2823_v44  ;;  %v2717_v45 = vadd.f32 %v2715_v2, %v6109_v9 }
0x10dc   : > { %v5453_v47 = vpop.eup %5452  ;;  %5456 = vtanh.f32 %v2717_v45 }
0x10dd   : > { %2616 = vrot.lane.b32.xlu0 %v5453_v47, %s5703_s20 }
0x10e4   : > { %v5455_v49 = vpop.eup %5454 }
0x10e5   : > { %2827 = vrot.lane.b32.xlu0 %v5455_v49, %s5703_s20 }
0x10e6   : > { %v5457_v52 = vpop.eup %5456 }
0x10e7   : > { %2721 = vrot.lane.b32.xlu1 %v5457_v52, %s5703_s20 }
0x114f   : > { %v2617_v57 = vpop.permute.xlu0 %2616 }
0x1150   : > { %v2619_v0 = vmul.f32 %v2617_v57, %v2614_v53 }
0x1152   : > { %v6439_v1 = vadd.f32 %v2622_v61, %v2619_v0 }
0x1154   : > { %v2847_v3 = vrot.slane %v6439_v1, 5 }
0x1156   : > { %2848 = vrot.lane.b32.xlu1 %v2847_v3, %s5703_s20 }
0x1157   : > { %v2828_v7 = vpop.permute.xlu0 %2827 }
0x1158   : > { %v2830_v11 = vmul.f32 %v2828_v7, %v2825_v6 }
0x1159   : > { %v2722_v40 = vpop.permute.xlu1 %2721 }
0x115a   : > { %v6445_v20 = vadd.f32 %v2833_v8, %v2830_v11  ;;  %v2724_v21 = vmul.f32 %v2722_v40, %v2719_v13 }
0x115c   : > { %v6447_v22 = vadd.f32 %v2727_v35, %v2724_v21  ;;  %v3058_v23 = vrot.slane %v6445_v20, 5 }
0x115e   : > { %3059 = vrot.lane.b32.xlu1 %v3058_v23, %s5703_s20  ;;  %v2952_v27 = vrot.slane %v6447_v22, 2 }
0x1160   : > { %2953 = vrot.lane.b32.xlu0 %v2952_v27, %s5703_s20 }
0x11c8   : > { %v2849_v24 = vpop.permute.xlu1 %2848 }
0x11c9   : > { %4948 = vmatmul.mubr.msk.f32.vlgmr.msra.gmra.mrb[20].mxu1 %vm739_vm5, %v2849_v24 }
0x11ca   : > { %5211 = vmatpush3.bf16.msra.mxu1 %v6157_v10  ;;  %4969 = vmatprep.mubr.msk.f32.mxu1 %vm5701_vm4, %v5700_v26 }
0x11cb   : > { %5212 = vmatprep.subr.bf16.mxu1 %v5699_v15 }
0x11ce   : > { %5214 = vmatpush3.bf16.msra.mxu1 %v6168_v16 }
0x11cf   : > { %5221 = vmatprep.subr.bf16.mxu1 %v5699_v15 }
0x11d0   : > { %v3060_v37 = vpop.permute.xlu1 %3059 }
0x11d1   : > { %4970 = vmatmul.mubr.msk.f32.vlgmr.msra.gmra.mrb[22].mxu1 %vm739_vm5, %v3060_v37 }
0x11d2   : > { %v2954_v28 = vpop.permute.xlu0 %2953  ;;  %5223 = vmatpush3.bf16.msra.mxu1 %v6131_v55  ;;  %4991 = vmatprep.mubr.msk.f32.mxu1 %vm5701_vm4, %v5700_v26 }
0x11d3   : > { %4959 = vmatmul.mubr.msk.f32.vlgmr.msra.gmra.mrb[20].mxu0 %vm739_vm5, %v2954_v28  ;;  %5224 = vmatprep.subr.bf16.mxu1 %v5699_v15 }
0x11d4   : > { %5217 = vmatpush3.bf16.msra.mxu0 %v6121_v48  ;;  %4980 = vmatprep.mubr.msk.f32.mxu0 %vm5701_vm4, %v5700_v26 }
0x11d5   : > { %5218 = vmatprep.subr.bf16.mxu0 %v5699_v15 }
0x11d6   : > { %5226 = vmatpush3.bf16.msra.mxu1 %v6135_v58 }
0x11d7   : > { %5233 = vmatprep.subr.bf16.mxu1 %v5699_v15 }
0x11d8   : > { %5220 = vmatpush3.bf16.msra.mxu0 %v6124_v50 }
0x11d9   : > { %5227 = vmatprep.subr.bf16.mxu0 %v5699_v15 }
0x129c   : > { %v2918_v55 = vpop.f32.mrb[20].mxu1 }
0x129d   : > { %v2919_v29 = vadd.f32 %v6408_v41, %v2918_v55  ;;  %v4949_v30 = vpop.f32.mrb[21].mxu1 }
0x129f   : > { %v2923_v51 = vrot.slane %v2919_v29, 2 }
0x12a1   : > { %2932 = vrot.lane.b32.xlu0 %v2923_v51, %s5702_s22  ;;  %v2925_v50 = vadd.f32 %v2923_v51, %v6098_v60 }
0x12a3   : > { %v2926_v2 = vsub.f32 0.0, %v2925_v50 }
0x12a4   : > { %v3129_v48 = vpop.f32.mrb[22].mxu1 }
0x12a5   : > { %v3130_v31 = vadd.f32 %v6415_v46, %v3129_v48  ;;  %v4971_v32 = vpop.f32.mrb[23].mxu1  ;;  %v2927_v45 = vmul.f32 1.442695, %v2926_v2  ;;  %v3159_v2 = vrot.slane %v6445_v20, 7 }
0x12a6   : > { %v3023_v33 = vpop.f32.mrb[20].mxu0 }
0x12a7   : > { %v3134_v62 = vrot.slane %v3130_v31, 2  ;;  %v3024_v58 = vadd.f32 %v6421_v56, %v3023_v33  ;;  %v4960_v42 = vpop.f32.mrb[21].mxu0  ;;  %5458 = vpow2.f32 %v2927_v45  ;;  %v2948_v33 = vrot.slane %v6439_v1, 7 }
0x12a9   : > { %v3028_v44 = vrot.slane %v3024_v58, 7  ;;  %3143 = vrot.lane.b32.xlu0 %v3134_v62, %s5702_s22  ;;  %v3136_v47 = vadd.f32 %v3134_v62, %v6100_v63 }
0x12ab   : > { %3037 = vrot.lane.b32.xlu1 %v3028_v44, %s5702_s22  ;;  %v3030_v49 = vadd.f32 %v3028_v44, %v6109_v9  ;;  %v3137_v52 = vsub.f32 0.0, %v3136_v47 }
0x12ad   : > { %v3031_v53 = vsub.f32 0.0, %v3030_v49  ;;  %v3138_v12 = vmul.f32 1.442695, %v3137_v52 }
0x12af   : > { %v3032_v57 = vmul.f32 1.442695, %v3031_v53  ;;  %5460 = vpow2.f32 %v3138_v12  ;;  %v3053_v12 = vrot.slane %v6447_v22, 1 }
0x12b1   : > { %v5459_v61 = vpop.eup %5458  ;;  %5462 = vpow2.f32 %v3032_v57 }
0x12b2   : > { %v2929_v0 = vadd.f32 1.0, %v5459_v61 }
0x12b4   : > { %5464 = vrcp.f32 %v2929_v0 }
0x12b9   : > { %v5461_v3 = vpop.eup %5460 }
0x12ba   : > { %v3140_v6 = vadd.f32 1.0, %v5461_v3 }
0x12bb   : > { %v5463_v4 = vpop.eup %5462 }
0x12bc   : > { %v3034_v7 = vadd.f32 1.0, %v5463_v4  ;;  %5466 = vrcp.f32 %v3140_v6 }
0x12be   : > { %v5465_v8 = vpop.eup %5464  ;;  %5468 = vrcp.f32 %v3034_v7 }
0x12bf   : > { %v2942_v32 = vsub.f32 1.0, %v5465_v8  ;;  %v2950_v58 = vmul.f32 %v5465_v8, %v2948_v33 }
0x12c6   : > { %v5467_v19 = vpop.eup %5466 }
0x12c7   : > { %v3153_v45 = vsub.f32 1.0, %v5467_v19  ;;  %v3161_v49 = vmul.f32 %v5467_v19, %v3159_v2 }
0x12c8   : > { %v5469_v21 = vpop.eup %5468 }
0x12c9   : > { %v3047_v53 = vsub.f32 1.0, %v5469_v21  ;;  %v3055_v0 = vmul.f32 %v5469_v21, %v3053_v12 }
0x1313   : > { %v2933_v11 = vpop.permute.xlu0 %2932 }
0x1314   : > { %v2935_v13 = vmul.f32 %v5465_v8, %v2933_v11 }
0x1316   : > { %2937 = vrot.lane.b32.xlu1 %v2935_v13, %s5702_s22 }
0x131b   : > { %v3144_v40 = vpop.permute.xlu0 %3143 }
0x131c   : > { %v3146_v35 = vmul.f32 %v5467_v19, %v3144_v40 }
0x131d   : > { %v3038_v23 = vpop.permute.xlu1 %3037 }
0x131e   : > { %v3040_v27 = vmul.f32 %v5469_v21, %v3038_v23  ;;  %3148 = vrot.lane.b32.xlu1 %v3146_v35, %s5702_s22 }
0x1320   : > { %3042 = vrot.lane.b32.xlu0 %v3040_v27, %s5702_s22 }
0x1388   : > { %v2938_v24 = vpop.permute.xlu1 %2937 }
0x1389   : > { %v2940_v37 = vadd.f32 %v2938_v24, %v6098_v60 }
0x138b   : > { %5470 = vtanh.f32 %v2940_v37 }
0x1390   : > { %v3149_v28 = vpop.permute.xlu1 %3148 }
0x1391   : > { %v3151_v55 = vadd.f32 %v3149_v28, %v6100_v63  ;;  %v4512_v28 = vld [vmem:[%s6852_s5 + $0x1] sm:$0x1] }
0x1392   : > { %v3043_v29 = vpop.permute.xlu0 %3042 }
0x1393   : > { %5472 = vtanh.f32 %v3151_v55  ;;  %v3045_v30 = vadd.f32 %v3043_v29, %v6109_v9 }
0x1395   : > { %v5471_v51 = vpop.eup %5470  ;;  %5474 = vtanh.f32 %v3045_v30 }
0x1396   : > { %2944 = vrot.lane.b32.xlu0 %v5471_v51, %s5703_s20 }
0x139d   : > { %v5473_v48 = vpop.eup %5472 }
0x139e   : > { %3155 = vrot.lane.b32.xlu0 %v5473_v48, %s5703_s20 }
0x139f   : > { %v5475_v31 = vpop.eup %5474 }
0x13a0   : > { %3049 = vrot.lane.b32.xlu1 %v5475_v31, %s5703_s20 }
0x1408   : > { %v2945_v62 = vpop.permute.xlu0 %2944 }
0x1409   : > { %v2947_v42 = vmul.f32 %v2945_v62, %v2942_v32 }
0x140b   : > { %v6493_v44 = vadd.f32 %v2950_v58, %v2947_v42 }
0x140d   : > { %v3175_v50 = vrot.slane %v6493_v44, 6 }
0x140f   : > { %3176 = vrot.lane.b32.xlu1 %v3175_v50, %s5703_s20 }
0x1410   : > { %v3156_v47 = vpop.permute.xlu0 %3155 }
0x1411   : > { %v3158_v52 = vmul.f32 %v3156_v47, %v3153_v45 }
0x1412   : > { %v3050_v57 = vpop.permute.xlu1 %3049 }
0x1413   : > { %v6499_v61 = vadd.f32 %v3161_v49, %v3158_v52  ;;  %v3052_v3 = vmul.f32 %v3050_v57, %v3047_v53 }
0x1415   : > { %v6501_v4 = vadd.f32 %v3055_v0, %v3052_v3  ;;  %v3383_v6 = vrot.slane %v6499_v61, 6 }
0x1417   : > { %3384 = vrot.lane.b32.xlu1 %v3383_v6, %s5703_s20  ;;  %v3280_v20 = vrot.slane %v6501_v4, 1 }
0x1419   : > { %3281 = vrot.lane.b32.xlu0 %v3280_v20, %s5703_s20 }
0x1481   : > { %v3177_v7 = vpop.permute.xlu1 %3176 }
0x1482   : > { %4981 = vmatmul.mubr.msk.f32.vlgmr.msra.gmra.mrb[22].mxu0 %vm739_vm5, %v3177_v7 }
0x1483   : > { %5229 = vmatpush3.bf16.msra.mxu0 %v6157_v10  ;;  %5002 = vmatprep.mubr.msk.f32.mxu0 %vm5701_vm4, %v5700_v26 }
0x1484   : > { %5230 = vmatprep.subr.bf16.mxu0 %v5699_v15 }
0x1487   : > { %5232 = vmatpush3.bf16.msra.mxu0 %v6168_v16 }
0x1488   : > { %5239 = vmatprep.subr.bf16.mxu0 %v5699_v15 }
0x1489   : > { %v3385_v8 = vpop.permute.xlu1 %3384 }
0x148a   : > { %5003 = vmatmul.mubr.msk.f32.vlgmr.msra.gmra.mrb[24].mxu0 %vm739_vm5, %v3385_v8 }
0x148b   : > { %v3282_v11 = vpop.permute.xlu0 %3281  ;;  %5024 = vmatprep.mubr.msk.f32.mxu0 %vm5701_vm4, %v5700_v26 }
0x148c   : > { %4992 = vmatmul.mubr.msk.f32.vlgmr.msra.gmra.mrb[24].mxu1 %vm739_vm5, %v3282_v11 }
0x148d   : > { %5013 = vmatprep.mubr.msk.f32.mxu1 %vm5701_vm4, %v5700_v26 }
0x1555   : > { %v3246_v10 = vpop.f32.mrb[22].mxu0 }
0x1556   : > { %v3247_v13 = vadd.f32 %v6408_v41, %v3246_v10  ;;  %v4982_v19 = vpop.f32.mrb[23].mxu0  ;;  %v1090_v41 = vrot.slane %v4512_v28, %v6031_v36 }
0x1558   : > { %v3251_v40 = vrot.slane %v3247_v13, 1 }
0x155a   : > { %3260 = vrot.lane.b32.xlu0 %v3251_v40, %s5702_s22 }
0x155d   : > { %v3454_v16 = vpop.f32.mrb[24].mxu0 }
0x155e   : > { %v3455_v35 = vadd.f32 %v6415_v46, %v3454_v16  ;;  %v5004_v21 = vpop.f32.mrb[25].mxu0  ;;  %v3253_v46 = vadd.f32 %v3251_v40, %v6098_v60 }
0x155f   : > { %v3351_v23 = vpop.f32.mrb[24].mxu1 }
0x1560   : > { %v3459_v27 = vrot.slane %v3455_v35, 1  ;;  %v3352_v24 = vadd.f32 %v6421_v56, %v3351_v23  ;;  %v4993_v37 = vpop.f32.mrb[25].mxu1  ;;  %v3254_v55 = vsub.f32 0.0, %v3253_v46  ;;  %v4510_v56 = vld [vmem:[%s6851_s4 + $0x1] sm:$0x1] }
0x1561   : > { %v1074_v30 = vadd.f32 %v4510_v56, %v6112_v14 }
0x1562   : > { %3468 = vrot.lane.b32.xlu0 %v3459_v27, %s5702_s22  ;;  %3363 = vrot.lane.b32.xlu1 %v3352_v24, %s5702_s22  ;;  %v3461_v29 = vadd.f32 %v3459_v27, %v6100_v63  ;;  %v3255_v51 = vmul.f32 1.442695, %v3254_v55  ;;  %v3355_v48 = vadd.f32 %v3352_v24, %v6109_v9 }
0x1563   : > { %v1079_v32 = vadd.f32 %v4512_v28, %v1074_v30 }
0x1564   : > { %v3462_v31 = vsub.f32 0.0, %v3461_v29  ;;  %5476 = vpow2.f32 %v3255_v51  ;;  %v3356_v36 = vsub.f32 0.0, %v3355_v48 }
0x1565   : > { %v1080_v62 = vsub.f32 0.0, %v1079_v32  ;;  %v3484_v32 = vrot.slane %v6499_v61, 7 }
0x1566   : > { %1091 = vrot.lane.b32.xlu1 %v1090_v41, %s5702_s22  ;;  %v3463_v33 = vmul.f32 1.442695, %v3462_v31  ;;  %v3357_v58 = vmul.f32 1.442695, %v3356_v36 }
0x1567   : > { %v1081_v42 = vmul.f32 1.442695, %v1080_v62 }
0x1568   : > { %5478 = vpow2.f32 %v3463_v33 }
0x1569   : > { %5480 = vpow2.f32 %v3357_v58 }
0x156a   : > { %5482 = vpow2.f32 %v1081_v42 }
0x156e   : > { %v5477_v50 = vpop.eup %5476 }
0x156f   : > { %v3257_v2 = vadd.f32 1.0, %v5477_v50 }
0x1571   : > { %5484 = vrcp.f32 %v3257_v2 }
0x1572   : > { %v5479_v45 = vpop.eup %5478 }
0x1573   : > { %v5481_v47 = vpop.eup %5480  ;;  %v3465_v14 = vadd.f32 1.0, %v5479_v45 }
0x1574   : > { %v3359_v49 = vadd.f32 1.0, %v5481_v47  ;;  %v5483_v52 = vpop.eup %5482 }
0x1575   : > { %5486 = vrcp.f32 %v3465_v14  ;;  %v1083_v53 = vadd.f32 1.0, %v5483_v52 }
0x1576   : > { %5488 = vrcp.f32 %v3359_v49 }
0x1577   : > { %5490 = vrcp.f32 %v1083_v53 }
0x157b   : > { %v6540_v12 = vpop.eup %5484 }
0x157f   : > { %v6544_v3 = vpop.eup %5486 }
0x1580   : > { %v6546_v6 = vpop.eup %5488  ;;  %v3486_v42 = vmul.f32 %v6544_v3, %v3484_v32 }
0x1581   : > { %v6552_v13 = vpop.eup %5490  ;;  %v3373_v31 = vsub.f32 1.0, %v6546_v6  ;;  %v3380_v33 = vmul.f32 %v6546_v6, %v3280_v20 }
0x1582   : > { %v1101_v45 = vsub.f32 1.0, %v6552_v13 }
0x15cc   : > { %v3261_v57 = vpop.permute.xlu0 %3260 }
0x15cd   : > { %v3263_v0 = vmul.f32 %v6540_v12, %v3261_v57 }
0x15cf   : > { %3265 = vrot.lane.b32.xlu0 %v3263_v0, %s5702_s22 }
0x15d4   : > { %v3364_v7 = vpop.permute.xlu1 %3363  ;;  %v3469_v8 = vpop.permute.xlu0 %3468 }
0x15d5   : > { %v3366_v11 = vmul.f32 %v6546_v6, %v3364_v7  ;;  %v3471_v10 = vmul.f32 %v6544_v3, %v3469_v8 }
0x15d7   : > { %3368 = vrot.lane.b32.xlu1 %v3366_v11, %s5702_s22  ;;  %3473 = vrot.lane.b32.xlu0 %v3471_v10, %s5702_s22 }
0x15d8   : > { %v1092_v19 = vpop.permute.xlu1 %1091 }
0x15d9   : > { %v1094_v40 = vmul.f32 %v6552_v13, %v1092_v19  ;;  %v5704_v13 = vmov 1966171168  }
0x15da   : > { %v3699_v19 = vunpack.c.l.s4 %v5704_v13 }
0x15db   : > { %1096 = vrot.lane.b32.xlu1 %v1094_v40, %s5702_s22  ;;  %s4391_s22 = sshll.u32 %s613_s1, 4  ;;  %s6807_s22 = int_to_ptr.vmem [resolvable:$true] %s4391_s22 }
0x15dc   : > { %s5621_s15 = scalar_lea.vmem %s6807_s22, 16  ;;  %p5628_p13 = scmp.lt.s32.totalorder %s6807_s22, %s5626_s25 }
0x15dd   : > { %p5622_p12 = scmp.ne.s32.totalorder %s6807_s22, %s5621_s15  ;;  %p5629_p1 = scmp.lt.s32.totalorder %s5627_s0, %s5621_s15 }
0x15df   : > { %p5623_p8 = pnand %p5622_p12, %p6911_p7  ;;  %p5630_p6 = por %p5629_p1, %p5628_p13 }
0x15e1   : > { %p5624_p11 = pneg %p5623_p8 }
0x15e3   : > { %p5631_p9 = pnand %p5630_p6, %p5624_p11 }
0x1641   : > { %v3266_v16 = vpop.permute.xlu0 %3265 }
0x1642   : > { %v3268_v35 = vadd.f32 %v3266_v16, %v6098_v60 }
0x1644   : > { %5492 = vtanh.f32 %v3268_v35  ;;  %v3700_v35 = vunpack.c.0.s8 %v3699_v19 }
0x1649   : > { %v3369_v21 = vpop.permute.xlu1 %3368  ;;  %v3474_v23 = vpop.permute.xlu0 %3473 }
0x164a   : > { %v3371_v27 = vadd.f32 %v3369_v21, %v6109_v9  ;;  %v3476_v24 = vadd.f32 %v3474_v23, %v6100_v63  ;;  %v3520_v63 = vld [vmem:[#allocation8 + $0x20] sm:$0xff]  ;;  %v3521_v9 = vld [vmem:[#allocation8 + $0x28] sm:$0xff] }
0x164c   : > { %5494 = vtanh.f32 %v3371_v27 }
0x164d   : > { %5496 = vtanh.f32 %v3476_v24  ;;  %v1097_v37 = vpop.permute.xlu1 %1096  ;;  %v6626_v24 = vld [vmem:[#allocation2] sm:$0x1] }
0x164e   : > { %v5493_v28 = vpop.eup %5492  ;;  %v1099_v41 = vadd.f32 %v1097_v37, %v1074_v30 }
0x164f   : > { %3272 = vrot.lane.b32.xlu0 %v5493_v28, %s5703_s20  ;;  %v6631_v28 = vsub.s32 %v3700_v35, %v6023_v34 }
0x1650   : > { %5498 = vtanh.f32 %v1099_v41  ;;  %v3682_v41 = vld [vmem:[#allocation10 + $0x20] sm:$0xff] }
0x1656   : > { %v5495_v46 = vpop.eup %5494 }
0x1657   : > { %v5497_v55 = vpop.eup %5496  ;;  %3375 = vrot.lane.b32.xlu1 %v5495_v46, %s5703_s20  ;;  %v3683_v46 = vld [vmem:[#allocation10 + $0x28] sm:$0xff] }
0x1658   : > { %3480 = vrot.lane.b32.xlu0 %v5497_v55, %s5703_s20 }
0x165a   : > { %v5499_v60 = vpop.eup %5498 }
0x165b   : > { %1103 = vrot.lane.b32.xlu1 %v5499_v60, %s5703_s20 }
0x165c   : > { %1199 = vrot.lane.b32.xlu0 %v6147_v5, %s5703_s20  ;;  %v3515_v5 = vld [vmem:[#allocation8] sm:$0xff] }
0x165f   : > { %1518 = vrot.lane.b32.xlu1 %v6208_v25, %s5703_s20  ;;  %v5234_v25 = vpack.c.bf16 %v3521_v9, %v3520_v63  ;;  %v3677_v63 = vld [vmem:[#allocation10] sm:$0xff]  ;;  %v3678_v9 = vld [vmem:[#allocation10 + $0x8] sm:$0xff] }
0x1660   : > { %1525 = vrot.lane.b32.xlu0 %v6216_v43, %s5703_s20  ;;  %v3516_v43 = vld [vmem:[#allocation8 + $0x8] sm:$0xff] }
0x1661   : > { %5235 = vmatpush3.bf16.msra.mxu1 %v5234_v25 }
0x1662   : > { %5236 = vmatprep.subr.bf16.mxu1 %v5699_v15 }
0x1663   : > { %1848 = vrot.lane.b32.xlu1 %v6262_v59, %s5703_s20  ;;  %v3522_v59 = vld [vmem:[#allocation8 + $0x30] sm:$0xff] }
0x1664   : > { %1855 = vrot.lane.b32.xlu0 %v6270_v18, %s5703_s20  ;;  %v3523_v18 = vld [vmem:[#allocation8 + $0x38] sm:$0xff] }
0x1667   : > { %2178 = vrot.lane.b32.xlu1 %v6316_v39, %s5703_s20  ;;  %v5240_v39 = vpack.c.bf16 %v3516_v43, %v3515_v5 }
0x1668   : > { %2185 = vrot.lane.b32.xlu0 %v6324_v54, %s5703_s20  ;;  %v5237_v54 = vpack.c.bf16 %v3523_v18, %v3522_v59  ;;  %v5246_v59 = vpack.c.bf16 %v3683_v46, %v3682_v41 }
0x1669   : > { %5241 = vmatpush3.bf16.msra.mxu0 %v5240_v39 }
0x166a   : > { %5242 = vmatprep.subr.bf16.mxu0 %v5699_v15  ;;  %5238 = vmatpush3.bf16.msra.mxu1 %v5237_v54 }
0x166b   : > { %2508 = vrot.lane.b32.xlu1 %v6370_v17, %s5703_s20  ;;  %v3517_v17 = vld [vmem:[#allocation8 + $0x10] sm:$0xff]  ;;  %5245 = vmatprep.subr.bf16.mxu1 %v5699_v15 }
0x166c   : > { %2514 = vrot.lane.b32.xlu0 %v6378_v38, %s5703_s20  ;;  %v3518_v38 = vld [vmem:[#allocation8 + $0x18] sm:$0xff] }
0x166d   : > { %v5243_v56 = vpack.c.bf16 %v3518_v38, %v3517_v17  ;;  %v3684_v38 = vld [vmem:[#allocation10 + $0x30] sm:$0xff] }
0x166f   : > { %2836 = vrot.lane.b32.xlu1 %v6439_v1, %s5703_s20  ;;  %v3270_v1 = vsub.f32 1.0, %v6540_v12  ;;  %5244 = vmatpush3.bf16.msra.mxu0 %v5243_v56  ;;  %v5252_v56 = vpack.c.bf16 %v3678_v9, %v3677_v63  ;;  %v4538_v63 = vld [vmem:[%s6860_s13] ss:$0 sm:$0xff] }
0x1670   : > { %2842 = vrot.lane.b32.xlu0 %v6447_v22, %s5703_s20  ;;  %v3276_v22 = vrot.slane %v6493_v44, 7  ;;  %5251 = vmatprep.subr.bf16.mxu0 %v5699_v15 }
0x1672   : > { %v3278_v30 = vmul.f32 %v6540_v12, %v3276_v22 }
0x1673   : > { %3164 = vrot.lane.b32.xlu1 %v6493_v44, %s5703_s20  ;;  %v3478_v44 = vsub.f32 1.0, %v6544_v3 }
0x1674   : > { %3170 = vrot.lane.b32.xlu0 %v6501_v4, %s5703_s20 }
0x16c1   : > { %v3273_v29 = vpop.permute.xlu0 %3272 }
0x16c2   : > { %v3275_v51 = vmul.f32 %v3273_v29, %v3270_v1  ;;  %v3685_v1 = vld [vmem:[#allocation10 + $0x38] sm:$0xff] }
0x16c4   : > { %v3279_v48 = vadd.f32 %v3278_v30, %v3275_v51  ;;  %v3679_v51 = vld [vmem:[#allocation10 + $0x10] sm:$0xff] }
0x16c6   : > { %3489 = vrot.lane.b32.xlu1 %v3279_v48, %s5703_s20  ;;  %v3680_v48 = vld [vmem:[#allocation10 + $0x18] sm:$0xff] }
0x16c9   : > { %v3376_v36 = vpop.permute.xlu1 %3375 }
0x16ca   : > { %v3378_v62 = vmul.f32 %v3376_v36, %v3373_v31  ;;  %v3481_v58 = vpop.permute.xlu0 %3480 }
0x16cb   : > { %v3483_v50 = vmul.f32 %v3481_v58, %v3478_v44 }
0x16cc   : > { %v3381_v2 = vadd.f32 %v3380_v33, %v3378_v62  ;;  %v5249_v62 = vpack.c.bf16 %v3685_v1, %v3684_v38 }
0x16cd   : > { %v3487_v47 = vadd.f32 %v3486_v42, %v3483_v50  ;;  %v1104_v14 = vpop.permute.xlu1 %1103 }
0x16ce   : > { %v1106_v49 = vmul.f32 %v1104_v14, %v1101_v45  ;;  %v1200_v61 = vpop.permute.xlu0 %1199  ;;  %3495 = vrot.lane.b32.xlu0 %v3381_v2, %s5703_s20  ;;  %v5255_v45 = vpack.c.bf16 %v3680_v48, %v3679_v51 }
0x16cf   : > { %1204 = vst.msk [vmem:[#allocation3] sm:$0x80] %vm1203_vm7, %v1200_v61  ;;  %v3600_v4 = vrot.slane %v3487_v47, 7 }
0x16d0   : > { %3525 = vrot.lane.b32.xlu1 %v1106_v49, %s5703_s20 }
0x16d1   : > { %v1519_v20 = vpop.permute.xlu1 %1518 }
0x16d2   : > { %1523 = vst.msk [vmem:[#allocation2] sm:$0x2] %vm1522_vm8, %v1519_v20  ;;  %v1526_v52 = vpop.permute.xlu0 %1525  ;;  %3601 = vrot.lane.b32.xlu0 %v3600_v4, %s5703_s20 }
0x16d3   : > { %1530 = vst.msk [vmem:[#allocation3] sm:$0x40] %vm1529_vm9, %v1526_v52 }
0x16d5   : > { %v1849_v53 = vpop.permute.xlu1 %1848 }
0x16d6   : > { %1853 = vst.msk [vmem:[#allocation2] sm:$0x4] %vm1852_vm10, %v1849_v53  ;;  %v1856_v12 = vpop.permute.xlu0 %1855  ;;  %v6663_v42 = vld [vmem:[#allocation3 + $0x7] sm:$0x1] }
0x16d7   : > { %1860 = vst.msk [vmem:[#allocation3] sm:$0x20] %vm1859_vm11, %v1856_v12 }
0x16d9   : > { %v2179_v57 = vpop.permute.xlu1 %2178  ;;  %v6620_v21 = vld [vmem:[#allocation2 + $0x1] sm:$0x1] }
0x16da   : > { %2183 = vst.msk [vmem:[#allocation2] sm:$0x8] %vm2182_vm12, %v2179_v57  ;;  %v2186_v0 = vpop.permute.xlu0 %2185  ;;  %v3823_v55 = vcombine.low %v6626_v24, %v6620_v21  ;;  %v6652_v30 = vld [vmem:[#allocation3 + $0x6] sm:$0x1] }
0x16db   : > { %2190 = vst.msk [vmem:[#allocation3] sm:$0x10] %vm2189_vm13, %v2186_v0  ;;  %v3697_v2 = vcombine.low %v6652_v30, %v6663_v42 }
0x16dc   : > { %v3833_v17 = vrot.slane %v3823_v55, %v6631_v28 }
0x16dd   : > { %v2509_v3 = vpop.permute.xlu1 %2508  ;;  %v6622_v23 = vld [vmem:[#allocation2 + $0x2] sm:$0x1]  ;;  %v3725_v57 = vrot.slane %v3697_v2, %v6631_v28 }
0x16de   : > { %2512 = vst.msk [vmem:[#allocation2] sm:$0x10] %vm2189_vm13, %v2509_v3  ;;  %v2515_v6 = vpop.permute.xlu0 %2514  ;;  %v6650_v29 = vld [vmem:[#allocation3 + $0x5] sm:$0x1] }
0x16df   : > { %2518 = vst.msk [vmem:[#allocation3] sm:$0x8] %vm2182_vm12, %v2515_v6 }
0x16e1   : > { %v2837_v7 = vpop.permute.xlu1 %2836  ;;  %v6617_v16 = vld [vmem:[#allocation2 + $0x3] sm:$0x1] }
0x16e2   : > { %2840 = vst.msk [vmem:[#allocation2] sm:$0x20] %vm1859_vm11, %v2837_v7  ;;  %v2843_v8 = vpop.permute.xlu0 %2842  ;;  %v3824_v27 = vcombine.low %v6622_v23, %v6617_v16  ;;  %v6644_v39 = vld [vmem:[#allocation3 + $0x4] sm:$0x1] }
0x16e3   : > { %2846 = vst.msk [vmem:[#allocation3] sm:$0x4] %vm1852_vm10, %v2843_v8  ;;  %v3696_v44 = vcombine.low %v6644_v39, %v6650_v29 }
0x16e4   : > { %v3840_v25 = vrot.slane %v3824_v27, %v6631_v28 }
0x16e5   : > { %v3165_v11 = vpop.permute.xlu1 %3164  ;;  %v6635_v60 = vld [vmem:[#allocation2 + $0x4] sm:$0x1]  ;;  %v3718_v4 = vrot.slane %v3696_v44, %v6631_v28 }
0x16e6   : > { %3168 = vst.msk [vmem:[#allocation2] sm:$0x40] %vm1529_vm9, %v3165_v11  ;;  %v3171_v10 = vpop.permute.xlu0 %3170  ;;  %v3855_v36 = vcombine.low %v3833_v17, %v3840_v25  ;;  %v6671_v47 = vld [vmem:[#allocation3 + $0x3] sm:$0x1] }
0x16e7   : > { %3174 = vst.msk [vmem:[#allocation3] sm:$0x2] %vm1522_vm8, %v3171_v10  ;;  %v3727_v6 = vcombine.low %v3718_v4, %v3725_v57 }
0x16e8   : > { %v3863_v14 = vrot.slane %v3855_v36, %v6631_v28 }
0x16e9   : > { %v6628_v37 = vld [vmem:[#allocation2 + $0x5] sm:$0x1]  ;;  %v3741_v11 = vrot.slane %v3727_v6, %v6631_v28 }
0x16ea   : > { %v3825_v5 = vcombine.low %v6635_v60, %v6628_v37  ;;  %v6661_v58 = vld [vmem:[#allocation3 + $0x2] sm:$0x1] }
0x16eb   : > { %v3695_v61 = vcombine.low %v6661_v58, %v6671_v47 }
0x16ec   : > { %v3847_v31 = vrot.slane %v3825_v5, %v6631_v28 }
0x16ed   : > { %v6640_v18 = vld [vmem:[#allocation2 + $0x6] sm:$0x1]  ;;  %v3711_v3 = vrot.slane %v3695_v61, %v6631_v28 }
0x16ee   : > { %v6681_v52 = vld [vmem:[#allocation3 + $0x1] sm:$0x1] }
0x1738   : > { %v3490_v40 = vpop.permute.xlu1 %3489 }
0x1739   : > { %3493 = vst.msk [vmem:[#allocation2] sm:$0x80] %vm1203_vm7, %v3490_v40 }
0x1740   : > { %v3496_v43 = vpop.permute.xlu0 %3495  ;;  %v6642_v34 = vld [vmem:[#allocation2 + $0x7] sm:$0x1] }
0x1741   : > { %3498 = vst.msk [vmem:[#allocation3] sm:$0x1] %vm1196_vm6, %v3496_v43  ;;  %v3826_v54 = vcombine.low %v6640_v18, %v6642_v34  ;;  %v3675_v43 = vld [vmem:[%s6858_s11] sm:$0x1] }
0x1742   : > { %v3526_v22 = vpop.permute.xlu1 %3525 }
0x1743   : > { %5014 = vmatmul.mubr.msk.f32.vlgmr.msra.gmra.mrb[26].mxu1 %vm739_vm5, %v3526_v22  ;;  %v3854_v32 = vrot.slane %v3826_v54, %v6631_v28 }
0x1744   : > { %v3602_v33 = vpop.permute.xlu0 %3601  ;;  %5247 = vmatpush3.bf16.msra.mxu1 %v5246_v59  ;;  %5035 = vmatprep.mubr.msk.f32.mxu1 %vm5701_vm4, %v5700_v26 }
0x1745   : > { %5025 = vmatmul.mubr.msk.f32.vlgmr.msra.gmra.mrb[26].mxu0 %vm739_vm5, %v3602_v33  ;;  %v3856_v50 = vcombine.low %v3847_v31, %v3854_v32  ;;  %5248 = vmatprep.subr.bf16.mxu1 %v5699_v15 }
0x1746   : > { %5253 = vmatpush3.bf16.msra.mxu0 %v5252_v56  ;;  %5046 = vmatprep.mubr.msk.f32.mxu0 %vm5701_vm4, %v5700_v26 }
0x1747   : > { %5254 = vmatprep.subr.bf16.mxu0 %v5699_v15  ;;  %v3870_v49 = vrot.slane %v3856_v50, %v6631_v28 }
0x1748   : > { %5250 = vmatpush3.bf16.msra.mxu1 %v5249_v62  ;;  %v6679_v20 = vld [vmem:[#allocation3] sm:$0x1] }
0x1749   : > { %v3871_v53 = vcombine.low %v3863_v14, %v3870_v49  ;;  %v3694_v12 = vcombine.low %v6679_v20, %v6681_v52  ;;  %5257 = vmatprep.subr.bf16.mxu1 %v5699_v15 }
0x174a   : > { %5256 = vmatpush3.bf16.msra.mxu0 %v5255_v45 }
0x174b   : > { %v3704_v0 = vrot.slane %v3694_v12, %v6631_v28  ;;  %5263 = vmatprep.subr.bf16.mxu0 %v5699_v15 }
0x174d   : > { %5047 = vmatmul.mubr.msk.f32.vlgmr.msra.gmra.mrb[28].mxu0 %vm739_vm5, %v3871_v53  ;;  %v3726_v7 = vcombine.low %v3704_v0, %v3711_v3 }
0x174e   : > { %5068 = vmatprep.mubr.msk.f32.mxu0 %vm5701_vm4, %v5700_v26 }
0x174f   : > { %v3734_v8 = vrot.slane %v3726_v7, %v6631_v28 }
0x1751   : > { %v3742_v10 = vcombine.low %v3734_v8, %v3741_v11 }
0x1753   : > { %5036 = vmatmul.mubr.msk.f32.vlgmr.msra.gmra.mrb[28].mxu1 %vm739_vm5, %v3742_v10 }
0x1754   : > { %5057 = vmatprep.mubr.msk.f32.mxu1 %vm5701_vm4, %v5700_v26 }
0x1816   : > { %v3595_v13 = vpop.f32.mrb[26].mxu1 }
0x1817   : > { %v5015_v19 = vpop.f32.mrb[27].mxu1 }
0x1818   : > { %v3671_v40 = vpop.f32.mrb[26].mxu0 }
0x1819   : > { %v3672_v35 = vadd.f32 %v3671_v40, %v3595_v13  ;;  %v5026_v27 = vpop.f32.mrb[27].mxu0 }
0x181b   : > { %v3676_v1 = vadd.f32 %v3675_v43, %v3672_v35 }
0x1820   : > { %v3940_v41 = vpop.f32.mrb[28].mxu0 }
0x1821   : > { %v5048_v46 = vpop.f32.mrb[29].mxu0 }
0x1826   : > { %v3811_v55 = vpop.f32.mrb[28].mxu1 }
0x1827   : > { %v3941_v9 = vadd.f32 %v3940_v41, %v3811_v55  ;;  %v5037_v5 = vpop.f32.mrb[29].mxu1 }
0x1829   : > { %v3951_v25 = vadd.f32 %v4538_v63, %v3941_v9 }
0x182b   : > { %v3953_v26 = vcombine.high %v3951_v25, %v3951_v25  ;;  %v3960_v59 = vrot.slane %v3951_v25, %v6631_v28 }
0x182d   : > { %v3967_v54 = vrot.slane %v3953_v26, %v6631_v28  ;;  %v3968_v17 = vcombine.high %v3960_v59, %v3960_v59  ;;  %v3976_v38 = vrot.slane %v3960_v59, %v6631_v28 }
0x182f   : > { %v3969_v22 = vcombine.high %v3967_v54, %v3967_v54  ;;  %v3983_v56 = vrot.slane %v3967_v54, %v6631_v28  ;;  %v3990_v51 = vrot.slane %v3968_v17, %v6631_v28  ;;  %v3998_v48 = vcombine.high %v3976_v38, %v3976_v38 }
0x1830   : > { %v4010_v31 = vadd.f32 %v3976_v38, %v3676_v1  ;;  %v4060_v38 = vld [vmem:[#allocation4] sm:$0x1] }
0x1831   : > { %v3997_v32 = vrot.slane %v3969_v22, %v6631_v28  ;;  %v3999_v36 = vcombine.high %v3983_v56, %v3983_v56  ;;  %v4000_v44 = vcombine.high %v3990_v51, %v3990_v51  ;;  %v4011_v33 = vadd.f32 %v3990_v51, %v3676_v1  ;;  %v4026_v28 = vld [vmem:[%s6861_s14] sm:$0x1] }
0x1832   : > { %v4012_v62 = vadd.f32 %v3998_v48, %v3676_v1  ;;  %v4014_v50 = vadd.f32 %v3983_v56, %v3676_v1  ;;  %5500 = vtanh.f32 %v4010_v31 }
0x1833   : > { %v4001_v2 = vcombine.high %v3997_v32, %v3997_v32  ;;  %v4013_v45 = vadd.f32 %v4000_v44, %v3676_v1  ;;  %v4015_v14 = vadd.f32 %v3997_v32, %v3676_v1  ;;  %v4016_v49 = vadd.f32 %v3999_v36, %v3676_v1 }
0x1834   : > { %5502 = vtanh.f32 %v4011_v33 }
0x1835   : > { %v4017_v61 = vadd.f32 %v4001_v2, %v3676_v1  ;;  %5504 = vtanh.f32 %v4012_v62 }
0x1836   : > { %5506 = vtanh.f32 %v4013_v45 }
0x1837   : > { %5508 = vtanh.f32 %v4014_v50 }
0x1838   : > { %5510 = vtanh.f32 %v4015_v14 }
0x1839   : > { %5512 = vtanh.f32 %v4017_v61 }
0x183a   : > { %5514 = vtanh.f32 %v4016_v49 }
0x183c   : > { %v5501_v4 = vpop.eup %5500 }
0x183d   : > { %v4027_v53 = vmul.f32 %v5501_v4, %v4026_v28 }
0x183e   : > { %v5503_v12 = vpop.eup %5502 }
0x183f   : > { %v5505_v57 = vpop.eup %5504  ;;  %v4036_v0 = vsel %vm4035_vm14, %v4027_v53, 0.0  ;;  %v4028_v3 = vmul.f32 %v5503_v12, %v4026_v28 }
0x1840   : > { %v5507_v6 = vpop.eup %5506  ;;  %4037 = vadd.xlane.f32.xlu1 %v4036_v0  ;;  %v4029_v10 = vmul.f32 %v5505_v57, %v4026_v28 }
0x1841   : > { %v5509_v7 = vpop.eup %5508  ;;  %v4039_v8 = vsel %vm4035_vm14, %v4028_v3, 0.0  ;;  %v4030_v11 = vmul.f32 %v5507_v6, %v4026_v28 }
0x1842   : > { %v5511_v13 = vpop.eup %5510  ;;  %4040 = vadd.xlane.f32.xlu0 %v4039_v8  ;;  %v4042_v27 = vsel %vm4035_vm14, %v4029_v10, 0.0  ;;  %v4031_v41 = vmul.f32 %v5509_v7, %v4026_v28 }
0x1843   : > { %v4045_v19 = vsel %vm4035_vm14, %v4030_v11, 0.0  ;;  %v4032_v40 = vmul.f32 %v5511_v13, %v4026_v28  ;;  %v5513_v35 = vpop.eup %5512 }
0x1844   : > { %4046 = vadd.xlane.f32.xlu1 %v4045_v19  ;;  %v5515_v46 = vpop.eup %5514  ;;  %v4034_v63 = vmul.f32 %v5513_v35, %v4026_v28  ;;  %v4048_v9 = vsel %vm4035_vm14, %v4031_v41, 0.0 }
0x1845   : > { %v4051_v55 = vsel %vm4035_vm14, %v4032_v40, 0.0  ;;  %v4033_v5 = vmul.f32 %v5515_v46, %v4026_v28 }
0x1846   : > { %4043 = vadd.xlane.f32.xlu0 %v4042_v27  ;;  %v4057_v25 = vsel %vm4035_vm14, %v4034_v63, 0.0 }
0x1847   : > { %v4054_v43 = vsel %vm4035_vm14, %v4033_v5, 0.0 }
0x1848   : > { %4052 = vadd.xlane.f32.xlu1 %v4051_v55 }
0x184a   : > { %4049 = vadd.xlane.f32.xlu0 %v4048_v9 }
0x184c   : > { %4058 = vadd.xlane.f32.xlu1 %v4057_v25 }
0x184e   : > { %4055 = vadd.xlane.f32.xlu0 %v4054_v43 }
0x18cd   : > { %v4038_v26 = vpop.xlane.xlu1 %4037 }
0x18ce   : > { %v4061_v56 = vadd.f32 %v4060_v38, %v4038_v26 }
0x18cf   : > { %v4041_v59 = vpop.xlane.xlu0 %4040 }
0x18d0   : > { %v4062_v31 = vadd.f32 %v4060_v38, %v4041_v59  ;;  %v4070_v2 = vsel %vm4069_vm15, %v4061_v56, -inf }
0x18d1   : > { %v4047_v54 = vpop.xlane.xlu1 %4046 }
0x18d2   : > { %v4064_v36 = vadd.f32 %v4060_v38, %v4047_v54  ;;  %v4071_v28 = vsel %vm4069_vm15, %v4062_v31, -inf }
0x18d3   : > { %v4044_v17 = vpop.xlane.xlu0 %4043 }
0x18d4   : > { %v4063_v44 = vadd.f32 %v4060_v38, %v4044_v17  ;;  %v4073_v4 = vsel %vm4069_vm15, %v4064_v36, -inf }
0x18d5   : > { %v4053_v1 = vpop.xlane.xlu1 %4052 }
0x18d6   : > { %v4066_v51 = vadd.f32 %v4060_v38, %v4053_v1  ;;  %v4072_v53 = vsel %vm4069_vm15, %v4063_v44, -inf }
0x18d7   : > { %v4050_v22 = vpop.xlane.xlu0 %4049 }
0x18d8   : > { %v4065_v48 = vadd.f32 %v4060_v38, %v4050_v22  ;;  %v4076_v45 = vsel %vm4069_vm15, %v4066_v51, -inf }
0x18d9   : > { %v4059_v32 = vpop.xlane.xlu1 %4058  ;;  %v4077_v57 = vmax.f32 %v4071_v28, %v4076_v45 }
0x18da   : > { %v4074_v33 = vsel %vm4069_vm15, %v4065_v48, -inf  ;;  %v4068_v62 = vadd.f32 %v4060_v38, %v4059_v32 }
0x18db   : > { %v4056_v50 = vpop.xlane.xlu0 %4055  ;;  %v4075_v61 = vmax.f32 %v4070_v2, %v4074_v33 }
0x18dc   : > { %v4080_v14 = vsel %vm4069_vm15, %v4068_v62, -inf  ;;  %v4067_v49 = vadd.f32 %v4060_v38, %v4056_v50 }
0x18dd   : > { %v4081_v0 = vmax.f32 %v4073_v4, %v4080_v14  ;;  %v4082_v6 = vmax.f32 %v4075_v61, %v4077_v57 }
0x18de   : > { %v4078_v12 = vsel %vm4069_vm15, %v4067_v49, -inf }
0x18df   : > { %v4079_v3 = vmax.f32 %v4072_v53, %v4078_v12 }
0x18e1   : > { %v4083_v7 = vmax.f32 %v4079_v3, %v4081_v0 }
0x18e3   : > { %v4084_v8 = vmax.f32 %v4082_v6, %v4083_v7 }
0x18e5   : > { %v4085_v11 = vsub.f32 %v4061_v56, %v4084_v8  ;;  %v4086_v10 = vsub.f32 %v4062_v31, %v4084_v8  ;;  %v4087_v13 = vsub.f32 %v4063_v44, %v4084_v8  ;;  %v4088_v19 = vsub.f32 %v4064_v36, %v4084_v8 }
0x18e6   : > { %v4089_v40 = vsub.f32 %v4065_v48, %v4084_v8  ;;  %v4090_v46 = vsub.f32 %v4066_v51, %v4084_v8  ;;  %v4091_v63 = vsub.f32 %v4067_v49, %v4084_v8  ;;  %v4092_v5 = vsub.f32 %v4068_v62, %v4084_v8 }
0x18e7   : > { %v4093_v35 = vmul.f32 1.442695, %v4085_v11  ;;  %v4095_v27 = vmul.f32 1.442695, %v4086_v10  ;;  %v4097_v41 = vmul.f32 1.442695, %v4087_v13 }
0x18e8   : > { %v4099_v55 = vmul.f32 1.442695, %v4088_v19  ;;  %v4101_v9 = vmul.f32 1.442695, %v4089_v40  ;;  %v4103_v25 = vmul.f32 1.442695, %v4090_v46 }
0x18e9   : > { %5516 = vpow2.f32 %v4093_v35  ;;  %v4105_v43 = vmul.f32 1.442695, %v4091_v63  ;;  %v4107_v26 = vmul.f32 1.442695, %v4092_v5  ;;  %v4539_v10 = vld [vmem:[%s6863_s16 + $0x20] sm:$0xff]  ;;  %v4540_v13 = vld [vmem:[%s6863_s16 + $0x28] sm:$0xff] }
0x18ea   : > { %5518 = vpow2.f32 %v4095_v27  ;;  %v4219_v19 = vld [vmem:[%s6863_s16] sm:$0xff]  ;;  %v5258_v40 = vpack.c.bf16 %v4540_v13, %v4539_v10  ;;  %v4220_v35 = vld [vmem:[%s6863_s16 + $0x8] sm:$0xff]  ;;  %v4542_v46 = vld [vmem:[%s6863_s16 + $0x38] sm:$0xff] }
0x18eb   : > { %5520 = vpow2.f32 %v4097_v41  ;;  %v5264_v27 = vpack.c.bf16 %v4220_v35, %v4219_v19  ;;  %v4541_v41 = vld [vmem:[%s6863_s16 + $0x30] sm:$0xff] }
0x18ec   : > { %5522 = vpow2.f32 %v4099_v55  ;;  %v4221_v55 = vld [vmem:[%s6863_s16 + $0x10] sm:$0xff]  ;;  %5259 = vmatpush3.bf16.msra.mxu1 %v5258_v40  ;;  %v5261_v63 = vpack.c.bf16 %v4542_v46, %v4541_v41 }
0x18ed   : > { %5524 = vpow2.f32 %v4101_v9  ;;  %v4222_v9 = vld [vmem:[%s6863_s16 + $0x18] sm:$0xff]  ;;  %5265 = vmatpush3.bf16.msra.mxu0 %v5264_v27  ;;  %5260 = vmatprep.subr.bf16.mxu1 %v5699_v15 }
0x18ee   : > { %5526 = vpow2.f32 %v4103_v25  ;;  %v5267_v5 = vpack.c.bf16 %v4222_v9, %v4221_v55  ;;  %5266 = vmatprep.subr.bf16.mxu0 %v5699_v15 }
0x18ef   : > { %5528 = vpow2.f32 %v4105_v43 }
0x18f0   : > { %5530 = vpow2.f32 %v4107_v26  ;;  %5262 = vmatpush3.bf16.msra.mxu1 %v5261_v63 }
0x18f1   : > { %5268 = vmatpush3.bf16.msra.mxu0 %v5267_v5 }
0x18f3   : > { %v5517_v59 = vpop.eup %5516 }
0x18f4   : > { %v5519_v54 = vpop.eup %5518  ;;  %v4109_v17 = vsel %vm4069_vm15, %v5517_v59, 0.0 }
0x18f5   : > { %v5521_v38 = vpop.eup %5520  ;;  %v4110_v1 = vsel %vm4069_vm15, %v5519_v54, 0.0 }
0x18f6   : > { %v5523_v22 = vpop.eup %5522  ;;  %v4111_v56 = vadd.f32 %v4110_v1, %v4109_v17  ;;  %v4112_v51 = vsel %vm4069_vm15, %v5521_v38, 0.0 }
0x18f7   : > { %v5525_v48 = vpop.eup %5524  ;;  %v4114_v32 = vsel %vm4069_vm15, %v5523_v22, 0.0 }
0x18f8   : > { %v4113_v31 = vadd.f32 %v4112_v51, %v4111_v56  ;;  %v5527_v36 = vpop.eup %5526  ;;  %v4116_v33 = vsel %vm4069_vm15, %v5525_v48, 0.0 }
0x18f9   : > { %v5529_v62 = vpop.eup %5528  ;;  %v4118_v2 = vsel %vm4069_vm15, %v5527_v36, 0.0 }
0x18fa   : > { %v4115_v44 = vadd.f32 %v4114_v32, %v4113_v31  ;;  %v5531_v45 = vpop.eup %5530  ;;  %v4120_v49 = vsel %vm4069_vm15, %v5529_v62, 0.0 }
0x18fb   : > { %v4122_v28 = vsel %vm4069_vm15, %v5531_v45, 0.0 }
0x18fc   : > { %v4117_v50 = vadd.f32 %v4116_v33, %v4115_v44 }
0x18fe   : > { %v4119_v14 = vadd.f32 %v4118_v2, %v4117_v50 }
0x1900   : > { %v4121_v61 = vadd.f32 %v4120_v49, %v4119_v14 }
0x1902   : > { %v4123_v4 = vadd.f32 %v4122_v28, %v4121_v61 }
0x1904   : > { %5532 = vrcp.f32 %v4123_v4 }
0x190e   : > { %v5533_v53 = vpop.eup %5532 }
0x190f   : > { %v4126_v12 = vmul.f32 %v5533_v53, %v5519_v54  ;;  %v4125_v57 = vmul.f32 %v5533_v53, %v5517_v59  ;;  %v4127_v0 = vmul.f32 %v5533_v53, %v5521_v38  ;;  %v4128_v3 = vmul.f32 %v5533_v53, %v5523_v22 }
0x1910   : > { %v4129_v6 = vmul.f32 %v5533_v53, %v5525_v48  ;;  %v4130_v7 = vmul.f32 %v5533_v53, %v5527_v36  ;;  %v4131_v8 = vmul.f32 %v5533_v53, %v5529_v62  ;;  %v4132_v11 = vmul.f32 %v5533_v53, %v5531_v45 }
0x1911   : > { %4140 = vperm.xlu1 %5349, %v4126_v12   ;;  %4135 = vperm.xlu0 %5348, %v4125_v57  }
0x1915   : > { %4145 = vperm.xlu1 %5349, %v4127_v0   ;;  %4150 = vperm.xlu0 %5348, %v4128_v3  }
0x1919   : > { %4155 = vperm.xlu1 %5349, %v4129_v6   ;;  %4160 = vperm.xlu0 %5348, %v4130_v7  }
0x191d   : > { %4165 = vperm.xlu1 %5349, %v4131_v8   ;;  %4170 = vperm.xlu0 %5348, %v4132_v11  }
0x1990   : > { %v4141_v25 = vpop.permute.xlu1 %4140  ;;  %v4136_v43 = vpop.permute.xlu0 %4135 }
0x1991   : > { %v4174_v26 = vmul.f32 %v4141_v25, %v6620_v21  ;;  %v4197_v59 = vmul.f32 %v4141_v25, %v6681_v52  ;;  %v4173_v54 = vmul.f32 %v4136_v43, %v6626_v24  ;;  %v4196_v17 = vmul.f32 %v4136_v43, %v6679_v20 }
0x1993   : > { %v4182_v38 = vsel %vm1196_vm6, %v4174_v26, 0.0  ;;  %v4205_v1 = vsel %vm1196_vm6, %v4197_v59, 0.0  ;;  %v4181_v22 = vsel %vm1196_vm6, %v4173_v54, 0.0  ;;  %v4204_v15 = vsel %vm1196_vm6, %v4196_v17, 0.0 }
0x1994   : > { %v4146_v56 = vpop.permute.xlu1 %4145  ;;  %v4151_v51 = vpop.permute.xlu0 %4150  ;;  %v4183_v31 = vadd.f32 %v4182_v38, %v4181_v22  ;;  %v4206_v20 = vadd.f32 %v4205_v1, %v4204_v15 }
0x1995   : > { %v4175_v48 = vmul.f32 %v4146_v56, %v6622_v23  ;;  %v4198_v21 = vmul.f32 %v4146_v56, %v6661_v58  ;;  %v4176_v52 = vmul.f32 %v4151_v51, %v6617_v16  ;;  %v4199_v24 = vmul.f32 %v4151_v51, %v6671_v47 }
0x1997   : > { %v4184_v32 = vsel %vm1196_vm6, %v4175_v48, 0.0  ;;  %v4207_v36 = vsel %vm1196_vm6, %v4198_v21, 0.0  ;;  %v4186_v62 = vsel %vm1196_vm6, %v4176_v52, 0.0  ;;  %v4209_v50 = vsel %vm1196_vm6, %v4199_v24, 0.0 }
0x1998   : > { %v4185_v44 = vadd.f32 %v4184_v32, %v4183_v31  ;;  %v4208_v33 = vadd.f32 %v4207_v36, %v4206_v20  ;;  %v4156_v2 = vpop.permute.xlu1 %4155  ;;  %v4161_v23 = vpop.permute.xlu0 %4160 }
0x1999   : > { %v4177_v58 = vmul.f32 %v4156_v2, %v6635_v60  ;;  %v4200_v16 = vmul.f32 %v4156_v2, %v6644_v39  ;;  %v4178_v47 = vmul.f32 %v4161_v23, %v6628_v37  ;;  %v4201_v45 = vmul.f32 %v4161_v23, %v6650_v29 }
0x199a   : > { %v4187_v14 = vadd.f32 %v4186_v62, %v4185_v44  ;;  %v4210_v49 = vadd.f32 %v4209_v50, %v4208_v33 }
0x199b   : > { %v4188_v61 = vsel %vm1196_vm6, %v4177_v58, 0.0  ;;  %v4211_v28 = vsel %vm1196_vm6, %v4200_v16, 0.0  ;;  %v4190_v12 = vsel %vm1196_vm6, %v4178_v47, 0.0  ;;  %v4213_v57 = vsel %vm1196_vm6, %v4201_v45, 0.0 }
0x199c   : > { %v4189_v4 = vadd.f32 %v4188_v61, %v4187_v14  ;;  %v4212_v53 = vadd.f32 %v4211_v28, %v4210_v49  ;;  %v4166_v0 = vpop.permute.xlu1 %4165  ;;  %v4171_v60 = vpop.permute.xlu0 %4170 }
0x199d   : > { %v4179_v39 = vmul.f32 %v4166_v0, %v6640_v18  ;;  %v4202_v37 = vmul.f32 %v4166_v0, %v6652_v30  ;;  %v4180_v29 = vmul.f32 %v4171_v60, %v6642_v34  ;;  %v4203_v3 = vmul.f32 %v4171_v60, %v6663_v42  ;;  %v4374_v42 = vld [vmem:[%s6908_s30] sm:$0x1] }
0x199e   : > { %v4191_v6 = vadd.f32 %v4190_v12, %v4189_v4  ;;  %v4214_v7 = vadd.f32 %v4213_v57, %v4212_v53 }
0x199f   : > { %v4192_v8 = vsel %vm1196_vm6, %v4179_v39, 0.0  ;;  %v4215_v11 = vsel %vm1196_vm6, %v4202_v37, 0.0  ;;  %v4194_v19 = vsel %vm1196_vm6, %v4180_v29, 0.0  ;;  %v4217_v18 = vsel %vm1196_vm6, %v4203_v3, 0.0 }
0x19a0   : > { %v4193_v10 = vadd.f32 %v4192_v8, %v4191_v6  ;;  %v4216_v13 = vadd.f32 %v4215_v11, %v4214_v7 }
0x19a2   : > { %v4195_v40 = vadd.f32 %v4194_v19, %v4193_v10  ;;  %v4218_v35 = vadd.f32 %v4217_v18, %v4216_v13 }
0x19a4   : > { %5058 = vmatmul.mubr.msk.f32.vlgmr.msra.gmra.mrb[30].mxu1 %vm739_vm5, %v4218_v35  ;;  %5069 = vmatmul.mubr.msk.f32.vlgmr.msra.gmra.mrb[30].mxu0 %vm739_vm5, %v4195_v40 }
0x1a77   : > { %v4297_v34 = vpop.f32.mrb[30].mxu1  ;;  %v4370_v30 = vpop.f32.mrb[30].mxu0 }
0x1a78   : > { %v4371_v27 = vadd.f32 %v4370_v30, %v4297_v34  ;;  %v5059_v41 = vpop.f32.mrb[31].mxu1  ;;  %v5070_v46 = vpop.f32.mrb[31].mxu0 }
0x1a7a   : > { %v4375_v55 = vadd.f32 %v4374_v42, %v4371_v27 }
0x1a7c   : > { %4377 = vst.msk [vmem:[%s613_s1] sm:$0x1] %vm4376_vm0, %v4375_v55 }
0x1a7d   : > { %5634 = shalt.err (!%p5631_p9)
}
0x1a7e   : > { %s5635_s28 = scalar_lea.hbm %s6805_s17, 16  ;;  %s5639_s26 = scalar_lea.hbm %s6910_s27, 32 }
0x1a7f   : > { %p5636_p2 = scmp.ne.s32.totalorder %s6805_s17, %s5635_s28  ;;  %p5640_p5 = scmp.lt.u32.totalorder %s6805_s17, %s6910_s27 }
0x1a80   : > { %p5641_p10 = scmp.lt.u32.totalorder %s5639_s26, %s5635_s28  ;;  %p5643_p12 = scmp.lt.u32.totalorder %s5635_s28, %s6805_s17 }
0x1a81   : > { %p5637_p0 = pnand %p5636_p2, %p6911_p7 }
0x1a82   : > { %p5642_p4 = por %p5641_p10, %p5640_p5 }
0x1a83   : > { %p5638_p3 = pneg %p5637_p0 }
0x1a84   : > { %p5644_p8 = por %p5643_p12, %p5642_p4 }
0x1a86   : > { %p5645_p11 = pnand %p5644_p8, %p5638_p3 }
0x1a88   : > { %5648 = shalt.err (!%p5645_p11)
}
0x1a89   : > { %5281 = dma.vmem_to_hbm [thread:$0]  (%p6911_p7), %s6807_s22, 16, %s6805_s17, %s4379_s19  }
0x1a8a PF: > { %s6912_s29 = sld [smem:[#allocation18_spill]]  ;;  %s6913_s15 = sld [smem:[#allocation15_spill]] }
0x1a8b   : > { %s6914_s2 = sld [smem:[#allocation22_spill]] }
0x1a90   : > { %p5303_p13 = scmp.ge.s32.totalorder %s6912_s29, 2  ;;  %s4403_s25 = sand.u32 1, %s6913_s15  }
0x1a91   : > { %p6915_p1 = scmp.ne.s32.totalorder %s6914_s2, 0  ;;  %s4404_s0 = scalar_lea.sflag [#allocation7], %s4403_s25 }
0x1a93   : > { %p5294_p6 = pnand %p5303_p13, %p6915_p1 }
0x1a95   : > { %5674 = dma.done.wait (!%p5294_p6), %s4404_s0, 16  }
0x1a96   : > { %5676 = vsyncadd (!%p5294_p6), %s4404_s0, 4294967280  ;;  %s6916_s19 = sld [smem:[#allocation19_spill]]  ;;  %s6917_s29 = sld [smem:[#allocation16_spill]] }
0x1a97   : > { %s6918_s30 = sld [smem:[#allocation17_spill]]  ;;  %s6919_s0 = sld [smem:[#allocation20_spill]] }
0x1a9c   : > { %p32_p9 = scmp.ge.s32.totalorder %s6916_s19, 4  }
0x1a9e   :  { %34 = sbr.rel (!%p32_p9) target bundleno = 11 (0xb), region = 164 }
0x1aa5   :  { %4408 = vsyncpa [#allocation6], 1 }
0x1aa6   :  { %4410 = vsyncpa [#allocation6 + $0x1], 1 }
0x1aa7   :  { %4411 = vsyncpa [#allocation9], 1 }
0x1aa8   :  { %4412 = vsyncpa [#allocation7], 1 }
0x1aa9   :  { %4414 = vsyncpa [#allocation7 + $0x1], 1 }

</bundles_post_ra>
